<compile_context>
chip_gen: v7x
topology: tpu7x:2x2x1
jax: 0.10.0
libtpu: 0.0.40
codegen_flags: <defaults>
</compile_context>

<pallas_src>
import numpy as np
import jax
import jax.numpy as jnp
from jax.experimental import pallas as pl
from jax.experimental.pallas import tpu as pltpu


# ----------------------------------------------------------------------------
# Glue: parameter setup only (no hot-path compute).
# ----------------------------------------------------------------------------
def build_rel_bias(table, window_size, N):
    """table: [(2wd-1)(2wh-1)(2ww-1), nh]  ->  bias [nh, N, N] (np.float32)."""
    wd, wh, ww = window_size
    coords = np.stack(
        np.meshgrid(np.arange(wd), np.arange(wh), np.arange(ww), indexing="ij"))
    cf = coords.reshape(3, -1)
    rel = cf[:, :, None] - cf[:, None, :]
    rel = rel.transpose(1, 2, 0).astype(np.int64)
    rel[:, :, 0] += wd - 1
    rel[:, :, 1] += wh - 1
    rel[:, :, 2] += ww - 1
    rel[:, :, 0] *= (2 * wh - 1) * (2 * ww - 1)
    rel[:, :, 1] *= 2 * ww - 1
    idx = rel.sum(-1)
    bias = np.asarray(table)[idx[:N, :N].reshape(-1)].reshape(N, N, -1)
    return bias.transpose(2, 0, 1).astype(np.float32)       # [nh, N, N]


def build_attn_bias_full(rel_bias, B, N):
    """Block-diagonal additive bias [nh, B*N, B*N]: relative-position bias on
    the diagonal (same-batch) blocks, -1e30 off-diagonal so the per-batch
    softmax stays exact when the batch is folded into the lane axis."""
    nh = rel_bias.shape[0]
    full = np.full((nh, B * N, B * N), -1e30, np.float32)
    for b in range(B):
        full[:, b * N:(b + 1) * N, b * N:(b + 1) * N] = rel_bias
    return jnp.asarray(full, dtype=jnp.bfloat16)


def build_dw_masks(B, D, H, W):
    """[27, B*N] float validity mask per 3x3x3 tap (zero padding at window
    boundaries; also zeroes any shift that would cross a batch block)."""
    N = D * H * W
    n = np.arange(N)
    d = n // (H * W)
    h = (n // W) % H
    w = n % W
    masks = np.zeros((27, B * N), np.float32)
    t = 0
    for a in (-1, 0, 1):
        for b in (-1, 0, 1):
            for c in (-1, 0, 1):
                valid = ((d + a >= 0) & (d + a < D) &
                         (h + b >= 0) & (h + b < H) &
                         (w + c >= 0) & (w + c < W)).astype(np.float32)
                masks[t] = np.tile(valid, B)
                t += 1
    return jnp.asarray(masks)


# ----------------------------------------------------------------------------
# Pallas kernel: whole batch in a single invocation, batch folded into lanes.
# ----------------------------------------------------------------------------
def make_cascade_attention_call(B, dim, key_dim, num_heads, d_head, D, H, W, scale):
    cph = dim // num_heads          # input channels per head
    dout = 2 * key_dim + d_head     # qkv output channels per head
    N = D * H * W
    BN = B * N
    taps = [(a, b, c) for a in (-1, 0, 1) for b in (-1, 0, 1) for c in (-1, 0, 1)]

    def lane_shift(x, delta):
        # y[:, l] = x[:, l + delta] (zeros shifted in at the B*N boundary).
        if delta == 0:
            return x
        pad = jnp.zeros((x.shape[0], abs(delta)), x.dtype)
        if delta > 0:
            return jnp.concatenate([x[:, delta:], pad], axis=1)
        return jnp.concatenate([pad, x[:, :delta]], axis=1)

    def kernel(x_ref, wqkv_ref, bqkv_ref, dww_ref, bdw_ref, dwmask_ref,
               bias_ref, wproj_ref, bproj_ref, out_ref):
        f32 = jnp.float32
        bf16 = jnp.bfloat16
        y = jnp.zeros((dim, BN), f32)
        prev = None
        for i in range(num_heads):                       # static cascade loop
            cin = x_ref[i * cph:(i + 1) * cph, :].astype(f32)    # [cph, BN]
            feat = cin if i == 0 else prev + cin
            # 1x1x1 conv + folded BN -> bf16 MXU matmul with f32 accumulate.
            qkv = jnp.dot(wqkv_ref[i], feat.astype(bf16),
                          preferred_element_type=f32) + bqkv_ref[i]
            q = qkv[:key_dim, :]                          # [kd, BN]
            k = qkv[key_dim:2 * key_dim, :]               # [kd, BN]
            v = qkv[2 * key_dim:, :]                      # [d,  BN]
            # depthwise 3x3x3 / pad=1 conv as 27 masked lane-shift MACs.
            wt = dww_ref[i]                               # [kd, 27] f32
            acc = jnp.zeros_like(q)
            for t, (da, db, dc) in enumerate(taps):
                delta = da * H * W + db * W + dc
                shifted = lane_shift(q, delta)
                acc = acc + wt[:, t:t + 1] * (dwmask_ref[t:t + 1, :] * shifted)
            qd = acc + bdw_ref[i]
            # attention scores, block-diagonal over the folded batch axis.
            scores = jax.lax.dot_general(
                qd.astype(bf16), k.astype(bf16),
                (((0,), (0,)), ((), ())),
                preferred_element_type=f32)               # [BN, BN]
            attn = scores * scale + bias_ref[i].astype(f32)
            m = jnp.max(attn, axis=-1, keepdims=True)
            e = jnp.exp(attn - m)
            p = e * pl.reciprocal(jnp.sum(e, axis=-1, keepdims=True), approx=True)
            # out = v @ p^T (cross-batch entries of p are exactly zero).
            out = jax.lax.dot_general(
                v.astype(bf16), p.astype(bf16),
                (((1,), (1,)), ((), ())),
                preferred_element_type=f32)               # [d, BN]
            prev = out
            # Per-head projection accumulation (no concat of head outputs).
            y = y + jnp.dot(wproj_ref[:, i * d_head:(i + 1) * d_head],
                            jnp.maximum(out, 0.0).astype(bf16),
                            preferred_element_type=f32)
        out_ref[...] = y + bproj_ref[...]

    grid_spec = pltpu.PrefetchScalarGridSpec(
        num_scalar_prefetch=0,
        grid=(1,),
        in_specs=[
            pl.BlockSpec((dim, BN), lambda i: (0, 0)),                    # x (bf16)
            pl.BlockSpec((num_heads, dout, cph), lambda i: (0, 0, 0)),    # w_qkv (bf16)
            pl.BlockSpec((num_heads, dout, 1), lambda i: (0, 0, 0)),      # b_qkv
            pl.BlockSpec((num_heads, key_dim, 27), lambda i: (0, 0, 0)),  # dw tap weights
            pl.BlockSpec((num_heads, key_dim, 1), lambda i: (0, 0, 0)),   # b_dw
            pl.BlockSpec((27, BN), lambda i: (0, 0)),                     # dw boundary masks
            pl.BlockSpec((num_heads, BN, BN), lambda i: (0, 0, 0)),       # attn bias (bf16)
            pl.BlockSpec((dim, d_head * num_heads), lambda i: (0, 0)),    # w_proj (bf16)
            pl.BlockSpec((dim, 1), lambda i: (0, 0)),                     # b_proj
        ],
        out_specs=pl.BlockSpec((dim, BN), lambda i: (0, 0)),
    )
    return pl.pallas_call(
        kernel,
        out_shape=jax.ShapeDtypeStruct((dim, BN), jnp.float32),
        grid_spec=grid_spec,
        compiler_params=pltpu.CompilerParams(
            dimension_semantics=("arbitrary",),
            vmem_limit_bytes=32 * 1024 * 1024),
    )


def cascade_attention_block_forward(x, params):
    """Mirrors CascadeAttentionBlock.forward for the D,H,W <= window_size case."""
    B, C, D, H, W = x.shape
    ws = params["window_size"]
    assert D <= ws[0] and H <= ws[1] and W <= ws[2], \
        "only the non-windowed branch is implemented"
    # TODO(synk): windowed / shifted-window branch (roll + window_partition +
    # attention mask via computer_mask) is not implemented.
    N = D * H * W
    BN = B * N
    nh = params["num_heads"]
    kd = params["key_dim"]

    # Lane-dense layout: [B, C, D, H, W] -> [C, B*N] (batch folded into lanes).
    x2 = jnp.transpose(x.reshape(B, C, N), (1, 0, 2)).reshape(C, BN)

    # Kernel-format parameters (setup glue; would be cached in deployment).
    attn_bias = build_attn_bias_full(np.asarray(params["rel_bias"]), B, N)
    dw_masks = build_dw_masks(B, D, H, W)
    dw_taps = params["w_dw"].reshape(nh, kd, 27)

    call = make_cascade_attention_call(
        B, C, kd, nh, params["d_head"], D, H, W, params["scale"])
    out2 = call(x2.astype(jnp.bfloat16),
                params["w_qkv"].astype(jnp.bfloat16),
                params["b_qkv"],
                dw_taps,
                params["b_dw"],
                dw_masks,
                attn_bias,
                params["w_proj"].astype(jnp.bfloat16),
                params["b_proj"])
    return out2.reshape(C, B, N).transpose(1, 0, 2).reshape(B, C, D, H, W)


# ----------------------------------------------------------------------------
# Pure-JAX f32 reference (uses lax.conv for the depthwise conv).
# ----------------------------------------------------------------------------
def reference_forward(x, params):
    B, C, D, H, W = x.shape
    N = D * H * W
    nh = params["num_heads"]
    kd = params["key_dim"]
    cph = C // nh
    x_flat = x.reshape(B, C, N)
    prev = None
    feats = []
    for i in range(nh):
        cin = x_flat[:, i * cph:(i + 1) * cph, :]
        feat = cin if i == 0 else prev + cin
        qkv = jnp.einsum("oc,bcn->bon", params["w_qkv"][i], feat) + params["b_qkv"][i][None]
        q, k, v = qkv[:, :kd], qkv[:, kd:2 * kd], qkv[:, 2 * kd:]
        q5 = q.reshape(B, kd, D, H, W)
        qdw = jax.lax.conv_general_dilated(
            q5, params["w_dw"][i][:, None],
            window_strides=(1, 1, 1), padding=((1, 1), (1, 1), (1, 1)),
            dimension_numbers=("NCDHW", "OIDHW", "NCDHW"),
            feature_group_count=kd)
        qdw = qdw.reshape(B, kd, N) + params["b_dw"][i][None]
        attn = jnp.einsum("bcn,bcm->bnm", qdw, k) * params["scale"] \
            + params["rel_bias"][i][None]
        attn = jax.nn.softmax(attn, axis=-1)
        out = jnp.einsum("bcm,bnm->bcn", v, attn)
        prev = out
        feats.append(out)
    cat = jnp.concatenate(feats, axis=1)
    y = jnp.einsum("oc,bcn->bon", params["w_proj"], jax.nn.relu(cat)) \
        + params["b_proj"][None]
    return y.reshape(B, C, D, H, W)


# ----------------------------------------------------------------------------
if __name__ == "__main__":
    # Module config (d_head must equal dim // num_heads for the cascade add).
    B, dim, key_dim, num_heads, attn_ratio = 2, 16, 8, 2, 1.0
    window_size = (4, 4, 4)
    D = H = W = 4
    N = D * H * W
    d_head = int(attn_ratio * key_dim)
    assert d_head == dim // num_heads
    cph = dim // num_heads
    dout = 2 * key_dim + d_head
    eps = 1e-5
    scale = key_dim ** (-0.5)

    key = jax.random.PRNGKey(0)
    ks = jax.random.split(key, 10)

    def bn_params(k, c):
        k1, k2, k3, k4 = jax.random.split(k, 4)
        gamma = 1.0 + 0.1 * jax.random.normal(k1, (c,), jnp.float32)
        beta = 0.1 * jax.random.normal(k2, (c,), jnp.float32)
        mean = 0.1 * jax.random.normal(k3, (c,), jnp.float32)
        var = 0.5 + jax.random.uniform(k4, (c,), jnp.float32)
        return gamma, beta, mean, var

    # Raw conv weights (Conv3d bias=False everywhere).
    w_qkv_raw = 0.2 * jax.random.normal(ks[0], (num_heads, dout, cph), jnp.float32)
    w_dw_raw = 0.2 * jax.random.normal(ks[1], (num_heads, key_dim, 3, 3, 3), jnp.float32)
    w_proj_raw = 0.2 * jax.random.normal(ks[2], (dim, d_head * num_heads), jnp.float32)

    # Fold BN (inference mode) into conv weights.
    wq, bq = [], []
    for i in range(num_heads):
        g, b_, m, v_ = bn_params(jax.random.fold_in(ks[3], i), dout)
        s = g / jnp.sqrt(v_ + eps)
        wq.append(w_qkv_raw[i] * s[:, None])
        bq.append(b_ - m * s)
    w_qkv = jnp.stack(wq)                       # [nh, dout, cph]
    b_qkv = jnp.stack(bq)[:, :, None]           # [nh, dout, 1]

    wd, bd = [], []
    for i in range(num_heads):
        g, b_, m, v_ = bn_params(jax.random.fold_in(ks[4], i), key_dim)
        s = g / jnp.sqrt(v_ + eps)
        wd.append(w_dw_raw[i] * s[:, None, None, None])
        bd.append(b_ - m * s)
    w_dw = jnp.stack(wd)                        # [nh, kd, 3, 3, 3]
    b_dw = jnp.stack(bd)[:, :, None]            # [nh, kd, 1]

    g, b_, m, v_ = bn_params(ks[5], dim)
    s = g / jnp.sqrt(v_ + eps)
    w_proj = w_proj_raw * s[:, None]            # [dim, d*nh]
    b_proj = (b_ - m * s)[:, None]              # [dim, 1]

    table_rows = (2 * window_size[0] - 1) * (2 * window_size[1] - 1) * (2 * window_size[2] - 1)
    rel_table = 0.02 * jax.random.normal(ks[6], (table_rows, num_heads), jnp.float32)
    rel_bias = jnp.asarray(build_rel_bias(np.asarray(rel_table), window_size, N))

    params = dict(window_size=window_size, key_dim=key_dim, num_heads=num_heads,
                  d_head=d_head, scale=scale,
                  w_qkv=w_qkv, b_qkv=b_qkv, w_dw=w_dw, b_dw=b_dw,
                  rel_bias=rel_bias, w_proj=w_proj, b_proj=b_proj)

    x = jax.random.normal(ks[7], (B, dim, D, H, W), jnp.float32)

    out = jax.block_until_ready(cascade_attention_block_forward(x, params))
    assert out.shape == (B, dim, D, H, W)

    ref = jax.block_until_ready(reference_forward(x, params))
    max_err = float(jnp.max(jnp.abs(out - ref)))
    # Kernel uses bf16 MXU operands (f32 accumulation) + approx reciprocal,
    # reference is pure f32 -> tolerance loosened accordingly (review note).
    assert max_err < 3e-2, f"mismatch vs reference: {max_err}"

    print("KERNEL_OK")
</pallas_src>

<mosaic_0001>
module attributes {stable_mosaic.version = 11 : i64} {
  func.func @kernel(%arg0: i32, %arg1: memref<16x128xbf16, #tpu.memory_space<vmem>>, %arg2: memref<2x24x8xbf16, #tpu.memory_space<vmem>>, %arg3: memref<2x24x1xf32, #tpu.memory_space<vmem>>, %arg4: memref<2x8x27xf32, #tpu.memory_space<vmem>>, %arg5: memref<2x8x1xf32, #tpu.memory_space<vmem>>, %arg6: memref<27x128xf32, #tpu.memory_space<vmem>>, %arg7: memref<2x128x128xbf16, #tpu.memory_space<vmem>>, %arg8: memref<16x16xbf16, #tpu.memory_space<vmem>>, %arg9: memref<16x1xf32, #tpu.memory_space<vmem>>, %arg10: memref<16x128xf32, #tpu.memory_space<vmem>>) attributes {dimension_semantics = [#tpu.dimension_semantics<arbitrary>], iteration_bounds = array<i64: 1>, scalar_prefetch = 0 : i64, scratch_operands = 0 : i64, tpu.core_type = #tpu.core_type<tc>, window_params = [{pipeline_mode = #tpu.pipeline_mode<synchronous>, transform_indices = @transform_0, window_bounds = array<i64: 16, 128>}, {pipeline_mode = #tpu.pipeline_mode<synchronous>, transform_indices = @transform_1, window_bounds = array<i64: 2, 24, 8>}, {pipeline_mode = #tpu.pipeline_mode<synchronous>, transform_indices = @transform_2, window_bounds = array<i64: 2, 24, 1>}, {pipeline_mode = #tpu.pipeline_mode<synchronous>, transform_indices = @transform_3, window_bounds = array<i64: 2, 8, 27>}, {pipeline_mode = #tpu.pipeline_mode<synchronous>, transform_indices = @transform_4, window_bounds = array<i64: 2, 8, 1>}, {pipeline_mode = #tpu.pipeline_mode<synchronous>, transform_indices = @transform_5, window_bounds = array<i64: 27, 128>}, {pipeline_mode = #tpu.pipeline_mode<synchronous>, transform_indices = @transform_6, window_bounds = array<i64: 2, 128, 128>}, {pipeline_mode = #tpu.pipeline_mode<synchronous>, transform_indices = @transform_7, window_bounds = array<i64: 16, 16>}, {pipeline_mode = #tpu.pipeline_mode<synchronous>, transform_indices = @transform_8, window_bounds = array<i64: 16, 1>}, {pipeline_mode = #tpu.pipeline_mode<synchronous>, transform_indices = @transform_9, window_bounds = array<i64: 16, 128>}]} {
    %cst = arith.constant 0.000000e+00 : f32
    %0 = vector.broadcast %cst : f32 to vector<16x128xf32>
    %c0 = arith.constant 0 : index
    %c0_0 = arith.constant 0 : index
    %1 = vector.load %arg1[%c0, %c0_0] : memref<16x128xbf16, #tpu.memory_space<vmem>>, vector<8x128xbf16>
    %2 = arith.extf %1 : vector<8x128xbf16> to vector<8x128xf32>
    %c0_1 = arith.constant 0 : index
    %c0_2 = arith.constant 0 : index
    %c0_3 = arith.constant 0 : index
    %3 = vector.load %arg2[%c0_1, %c0_2, %c0_3] : memref<2x24x8xbf16, #tpu.memory_space<vmem>>, vector<1x24x8xbf16>
    %4 = vector.shape_cast %3 : vector<1x24x8xbf16> to vector<24x8xbf16>
    %5 = arith.truncf %2 : vector<8x128xf32> to vector<8x128xbf16>
    %cst_4 = arith.constant dense<0.000000e+00> : vector<24x128xf32>
    %6 = tpu.matmul %4, %5, %cst_4 {dimension_numbers = #tpu.dot_dimension_numbers<[1], [0], [0], [1], [0, 0, 1, 1], [], []>} : vector<24x8xbf16>, vector<8x128xbf16>, vector<24x128xf32> -> vector<24x128xf32>
    %c0_5 = arith.constant 0 : index
    %c0_6 = arith.constant 0 : index
    %c0_7 = arith.constant 0 : index
    %7 = vector.load %arg3[%c0_5, %c0_6, %c0_7] : memref<2x24x1xf32, #tpu.memory_space<vmem>>, vector<1x24x1xf32>
    %8 = vector.shape_cast %7 : vector<1x24x1xf32> to vector<24x1xf32>
    %9 = vector.broadcast %8 : vector<24x1xf32> to vector<24x128xf32>
    %10 = arith.addf %6, %9 : vector<24x128xf32>
    %11 = vector.extract_strided_slice %10 {offsets = [0, 0], sizes = [8, 128], strides = [1, 1]} : vector<24x128xf32> to vector<8x128xf32>
    %12 = vector.extract_strided_slice %10 {offsets = [8, 0], sizes = [8, 128], strides = [1, 1]} : vector<24x128xf32> to vector<8x128xf32>
    %13 = vector.extract_strided_slice %10 {offsets = [16, 0], sizes = [8, 128], strides = [1, 1]} : vector<24x128xf32> to vector<8x128xf32>
    %c0_8 = arith.constant 0 : index
    %c0_9 = arith.constant 0 : index
    %c0_10 = arith.constant 0 : index
    %14 = vector.load %arg4[%c0_8, %c0_9, %c0_10] : memref<2x8x27xf32, #tpu.memory_space<vmem>>, vector<1x8x27xf32>
    %15 = vector.shape_cast %14 : vector<1x8x27xf32> to vector<8x27xf32>
    %cst_11 = arith.constant 0.000000e+00 : f32
    %16 = vector.broadcast %cst_11 : f32 to vector<8x128xf32>
    %cst_12 = arith.constant 0.000000e+00 : f32
    %17 = vector.broadcast %cst_12 : f32 to vector<8x21xf32>
    %18 = vector.extract_strided_slice %11 {offsets = [0, 0], sizes = [8, 107], strides = [1, 1]} : vector<8x128xf32> to vector<8x107xf32>
    %19 = tpu.concatenate %17, %18 in 1 : vector<8x21xf32>, vector<8x107xf32> -> vector<8x128xf32>
    %20 = vector.extract_strided_slice %15 {offsets = [0, 0], sizes = [8, 1], strides = [1, 1]} : vector<8x27xf32> to vector<8x1xf32>
    %c0_13 = arith.constant 0 : index
    %c0_14 = arith.constant 0 : index
    %21 = vector.load %arg6[%c0_13, %c0_14] : memref<27x128xf32, #tpu.memory_space<vmem>>, vector<1x128xf32>
    %22 = vector.broadcast %21 : vector<1x128xf32> to vector<8x128xf32>
    %23 = arith.mulf %22, %19 : vector<8x128xf32>
    %24 = vector.broadcast %20 : vector<8x1xf32> to vector<8x128xf32>
    %25 = arith.mulf %24, %23 : vector<8x128xf32>
    %26 = arith.addf %16, %25 : vector<8x128xf32>
    %cst_15 = arith.constant 0.000000e+00 : f32
    %27 = vector.broadcast %cst_15 : f32 to vector<8x20xf32>
    %28 = vector.extract_strided_slice %11 {offsets = [0, 0], sizes = [8, 108], strides = [1, 1]} : vector<8x128xf32> to vector<8x108xf32>
    %29 = tpu.concatenate %27, %28 in 1 : vector<8x20xf32>, vector<8x108xf32> -> vector<8x128xf32>
    %30 = vector.extract_strided_slice %15 {offsets = [0, 1], sizes = [8, 1], strides = [1, 1]} : vector<8x27xf32> to vector<8x1xf32>
    %c1 = arith.constant 1 : index
    %c0_16 = arith.constant 0 : index
    %31 = vector.load %arg6[%c1, %c0_16] : memref<27x128xf32, #tpu.memory_space<vmem>>, vector<1x128xf32>
    %32 = vector.broadcast %31 : vector<1x128xf32> to vector<8x128xf32>
    %33 = arith.mulf %32, %29 : vector<8x128xf32>
    %34 = vector.broadcast %30 : vector<8x1xf32> to vector<8x128xf32>
    %35 = arith.mulf %34, %33 : vector<8x128xf32>
    %36 = arith.addf %26, %35 : vector<8x128xf32>
    %cst_17 = arith.constant 0.000000e+00 : f32
    %37 = vector.broadcast %cst_17 : f32 to vector<8x19xf32>
    %38 = vector.extract_strided_slice %11 {offsets = [0, 0], sizes = [8, 109], strides = [1, 1]} : vector<8x128xf32> to vector<8x109xf32>
    %39 = tpu.concatenate %37, %38 in 1 : vector<8x19xf32>, vector<8x109xf32> -> vector<8x128xf32>
    %40 = vector.extract_strided_slice %15 {offsets = [0, 2], sizes = [8, 1], strides = [1, 1]} : vector<8x27xf32> to vector<8x1xf32>
    %c2 = arith.constant 2 : index
    %c0_18 = arith.constant 0 : index
    %41 = vector.load %arg6[%c2, %c0_18] : memref<27x128xf32, #tpu.memory_space<vmem>>, vector<1x128xf32>
    %42 = vector.broadcast %41 : vector<1x128xf32> to vector<8x128xf32>
    %43 = arith.mulf %42, %39 : vector<8x128xf32>
    %44 = vector.broadcast %40 : vector<8x1xf32> to vector<8x128xf32>
    %45 = arith.mulf %44, %43 : vector<8x128xf32>
    %46 = arith.addf %36, %45 : vector<8x128xf32>
    %cst_19 = arith.constant 0.000000e+00 : f32
    %47 = vector.broadcast %cst_19 : f32 to vector<8x17xf32>
    %48 = vector.extract_strided_slice %11 {offsets = [0, 0], sizes = [8, 111], strides = [1, 1]} : vector<8x128xf32> to vector<8x111xf32>
    %49 = tpu.concatenate %47, %48 in 1 : vector<8x17xf32>, vector<8x111xf32> -> vector<8x128xf32>
    %50 = vector.extract_strided_slice %15 {offsets = [0, 3], sizes = [8, 1], strides = [1, 1]} : vector<8x27xf32> to vector<8x1xf32>
    %c3 = arith.constant 3 : index
    %c0_20 = arith.constant 0 : index
    %51 = vector.load %arg6[%c3, %c0_20] : memref<27x128xf32, #tpu.memory_space<vmem>>, vector<1x128xf32>
    %52 = vector.broadcast %51 : vector<1x128xf32> to vector<8x128xf32>
    %53 = arith.mulf %52, %49 : vector<8x128xf32>
    %54 = vector.broadcast %50 : vector<8x1xf32> to vector<8x128xf32>
    %55 = arith.mulf %54, %53 : vector<8x128xf32>
    %56 = arith.addf %46, %55 : vector<8x128xf32>
    %cst_21 = arith.constant 0.000000e+00 : f32
    %57 = vector.broadcast %cst_21 : f32 to vector<8x16xf32>
    %58 = vector.extract_strided_slice %11 {offsets = [0, 0], sizes = [8, 112], strides = [1, 1]} : vector<8x128xf32> to vector<8x112xf32>
    %59 = tpu.concatenate %57, %58 in 1 : vector<8x16xf32>, vector<8x112xf32> -> vector<8x128xf32>
    %60 = vector.extract_strided_slice %15 {offsets = [0, 4], sizes = [8, 1], strides = [1, 1]} : vector<8x27xf32> to vector<8x1xf32>
    %c4 = arith.constant 4 : index
    %c0_22 = arith.constant 0 : index
    %61 = vector.load %arg6[%c4, %c0_22] : memref<27x128xf32, #tpu.memory_space<vmem>>, vector<1x128xf32>
    %62 = vector.broadcast %61 : vector<1x128xf32> to vector<8x128xf32>
    %63 = arith.mulf %62, %59 : vector<8x128xf32>
    %64 = vector.broadcast %60 : vector<8x1xf32> to vector<8x128xf32>
    %65 = arith.mulf %64, %63 : vector<8x128xf32>
    %66 = arith.addf %56, %65 : vector<8x128xf32>
    %cst_23 = arith.constant 0.000000e+00 : f32
    %67 = vector.broadcast %cst_23 : f32 to vector<8x15xf32>
    %68 = vector.extract_strided_slice %11 {offsets = [0, 0], sizes = [8, 113], strides = [1, 1]} : vector<8x128xf32> to vector<8x113xf32>
    %69 = tpu.concatenate %67, %68 in 1 : vector<8x15xf32>, vector<8x113xf32> -> vector<8x128xf32>
    %70 = vector.extract_strided_slice %15 {offsets = [0, 5], sizes = [8, 1], strides = [1, 1]} : vector<8x27xf32> to vector<8x1xf32>
    %c5 = arith.constant 5 : index
    %c0_24 = arith.constant 0 : index
    %71 = vector.load %arg6[%c5, %c0_24] : memref<27x128xf32, #tpu.memory_space<vmem>>, vector<1x128xf32>
    %72 = vector.broadcast %71 : vector<1x128xf32> to vector<8x128xf32>
    %73 = arith.mulf %72, %69 : vector<8x128xf32>
    %74 = vector.broadcast %70 : vector<8x1xf32> to vector<8x128xf32>
    %75 = arith.mulf %74, %73 : vector<8x128xf32>
    %76 = arith.addf %66, %75 : vector<8x128xf32>
    %cst_25 = arith.constant 0.000000e+00 : f32
    %77 = vector.broadcast %cst_25 : f32 to vector<8x13xf32>
    %78 = vector.extract_strided_slice %11 {offsets = [0, 0], sizes = [8, 115], strides = [1, 1]} : vector<8x128xf32> to vector<8x115xf32>
    %79 = tpu.concatenate %77, %78 in 1 : vector<8x13xf32>, vector<8x115xf32> -> vector<8x128xf32>
    %80 = vector.extract_strided_slice %15 {offsets = [0, 6], sizes = [8, 1], strides = [1, 1]} : vector<8x27xf32> to vector<8x1xf32>
    %c6 = arith.constant 6 : index
    %c0_26 = arith.constant 0 : index
    %81 = vector.load %arg6[%c6, %c0_26] : memref<27x128xf32, #tpu.memory_space<vmem>>, vector<1x128xf32>
    %82 = vector.broadcast %81 : vector<1x128xf32> to vector<8x128xf32>
    %83 = arith.mulf %82, %79 : vector<8x128xf32>
    %84 = vector.broadcast %80 : vector<8x1xf32> to vector<8x128xf32>
    %85 = arith.mulf %84, %83 : vector<8x128xf32>
    %86 = arith.addf %76, %85 : vector<8x128xf32>
    %cst_27 = arith.constant 0.000000e+00 : f32
    %87 = vector.broadcast %cst_27 : f32 to vector<8x12xf32>
    %88 = vector.extract_strided_slice %11 {offsets = [0, 0], sizes = [8, 116], strides = [1, 1]} : vector<8x128xf32> to vector<8x116xf32>
    %89 = tpu.concatenate %87, %88 in 1 : vector<8x12xf32>, vector<8x116xf32> -> vector<8x128xf32>
    %90 = vector.extract_strided_slice %15 {offsets = [0, 7], sizes = [8, 1], strides = [1, 1]} : vector<8x27xf32> to vector<8x1xf32>
    %c7 = arith.constant 7 : index
    %c0_28 = arith.constant 0 : index
    %91 = vector.load %arg6[%c7, %c0_28] : memref<27x128xf32, #tpu.memory_space<vmem>>, vector<1x128xf32>
    %92 = vector.broadcast %91 : vector<1x128xf32> to vector<8x128xf32>
    %93 = arith.mulf %92, %89 : vector<8x128xf32>
    %94 = vector.broadcast %90 : vector<8x1xf32> to vector<8x128xf32>
    %95 = arith.mulf %94, %93 : vector<8x128xf32>
    %96 = arith.addf %86, %95 : vector<8x128xf32>
    %cst_29 = arith.constant 0.000000e+00 : f32
    %97 = vector.broadcast %cst_29 : f32 to vector<8x11xf32>
    %98 = vector.extract_strided_slice %11 {offsets = [0, 0], sizes = [8, 117], strides = [1, 1]} : vector<8x128xf32> to vector<8x117xf32>
    %99 = tpu.concatenate %97, %98 in 1 : vector<8x11xf32>, vector<8x117xf32> -> vector<8x128xf32>
    %100 = vector.extract_strided_slice %15 {offsets = [0, 8], sizes = [8, 1], strides = [1, 1]} : vector<8x27xf32> to vector<8x1xf32>
    %c8 = arith.constant 8 : index
    %c0_30 = arith.constant 0 : index
    %101 = vector.load %arg6[%c8, %c0_30] : memref<27x128xf32, #tpu.memory_space<vmem>>, vector<1x128xf32>
    %102 = vector.broadcast %101 : vector<1x128xf32> to vector<8x128xf32>
    %103 = arith.mulf %102, %99 : vector<8x128xf32>
    %104 = vector.broadcast %100 : vector<8x1xf32> to vector<8x128xf32>
    %105 = arith.mulf %104, %103 : vector<8x128xf32>
    %106 = arith.addf %96, %105 : vector<8x128xf32>
    %cst_31 = arith.constant 0.000000e+00 : f32
    %107 = vector.broadcast %cst_31 : f32 to vector<8x5xf32>
    %108 = vector.extract_strided_slice %11 {offsets = [0, 0], sizes = [8, 123], strides = [1, 1]} : vector<8x128xf32> to vector<8x123xf32>
    %109 = tpu.concatenate %107, %108 in 1 : vector<8x5xf32>, vector<8x123xf32> -> vector<8x128xf32>
    %110 = vector.extract_strided_slice %15 {offsets = [0, 9], sizes = [8, 1], strides = [1, 1]} : vector<8x27xf32> to vector<8x1xf32>
    %c9 = arith.constant 9 : index
    %c0_32 = arith.constant 0 : index
    %111 = vector.load %arg6[%c9, %c0_32] : memref<27x128xf32, #tpu.memory_space<vmem>>, vector<1x128xf32>
    %112 = vector.broadcast %111 : vector<1x128xf32> to vector<8x128xf32>
    %113 = arith.mulf %112, %109 : vector<8x128xf32>
    %114 = vector.broadcast %110 : vector<8x1xf32> to vector<8x128xf32>
    %115 = arith.mulf %114, %113 : vector<8x128xf32>
    %116 = arith.addf %106, %115 : vector<8x128xf32>
    %cst_33 = arith.constant 0.000000e+00 : f32
    %117 = vector.broadcast %cst_33 : f32 to vector<8x4xf32>
    %118 = vector.extract_strided_slice %11 {offsets = [0, 0], sizes = [8, 124], strides = [1, 1]} : vector<8x128xf32> to vector<8x124xf32>
    %119 = tpu.concatenate %117, %118 in 1 : vector<8x4xf32>, vector<8x124xf32> -> vector<8x128xf32>
    %120 = vector.extract_strided_slice %15 {offsets = [0, 10], sizes = [8, 1], strides = [1, 1]} : vector<8x27xf32> to vector<8x1xf32>
    %c10 = arith.constant 10 : index
    %c0_34 = arith.constant 0 : index
    %121 = vector.load %arg6[%c10, %c0_34] : memref<27x128xf32, #tpu.memory_space<vmem>>, vector<1x128xf32>
    %122 = vector.broadcast %121 : vector<1x128xf32> to vector<8x128xf32>
    %123 = arith.mulf %122, %119 : vector<8x128xf32>
    %124 = vector.broadcast %120 : vector<8x1xf32> to vector<8x128xf32>
    %125 = arith.mulf %124, %123 : vector<8x128xf32>
    %126 = arith.addf %116, %125 : vector<8x128xf32>
    %cst_35 = arith.constant 0.000000e+00 : f32
    %127 = vector.broadcast %cst_35 : f32 to vector<8x3xf32>
    %128 = vector.extract_strided_slice %11 {offsets = [0, 0], sizes = [8, 125], strides = [1, 1]} : vector<8x128xf32> to vector<8x125xf32>
    %129 = tpu.concatenate %127, %128 in 1 : vector<8x3xf32>, vector<8x125xf32> -> vector<8x128xf32>
    %130 = vector.extract_strided_slice %15 {offsets = [0, 11], sizes = [8, 1], strides = [1, 1]} : vector<8x27xf32> to vector<8x1xf32>
    %c11 = arith.constant 11 : index
    %c0_36 = arith.constant 0 : index
    %131 = vector.load %arg6[%c11, %c0_36] : memref<27x128xf32, #tpu.memory_space<vmem>>, vector<1x128xf32>
    %132 = vector.broadcast %131 : vector<1x128xf32> to vector<8x128xf32>
    %133 = arith.mulf %132, %129 : vector<8x128xf32>
    %134 = vector.broadcast %130 : vector<8x1xf32> to vector<8x128xf32>
    %135 = arith.mulf %134, %133 : vector<8x128xf32>
    %136 = arith.addf %126, %135 : vector<8x128xf32>
    %cst_37 = arith.constant 0.000000e+00 : f32
    %137 = vector.broadcast %cst_37 : f32 to vector<8x1xf32>
    %138 = vector.extract_strided_slice %11 {offsets = [0, 0], sizes = [8, 127], strides = [1, 1]} : vector<8x128xf32> to vector<8x127xf32>
    %139 = tpu.concatenate %137, %138 in 1 : vector<8x1xf32>, vector<8x127xf32> -> vector<8x128xf32>
    %140 = vector.extract_strided_slice %15 {offsets = [0, 12], sizes = [8, 1], strides = [1, 1]} : vector<8x27xf32> to vector<8x1xf32>
    %c12 = arith.constant 12 : index
    %c0_38 = arith.constant 0 : index
    %141 = vector.load %arg6[%c12, %c0_38] : memref<27x128xf32, #tpu.memory_space<vmem>>, vector<1x128xf32>
    %142 = vector.broadcast %141 : vector<1x128xf32> to vector<8x128xf32>
    %143 = arith.mulf %142, %139 : vector<8x128xf32>
    %144 = vector.broadcast %140 : vector<8x1xf32> to vector<8x128xf32>
    %145 = arith.mulf %144, %143 : vector<8x128xf32>
    %146 = arith.addf %136, %145 : vector<8x128xf32>
    %147 = vector.extract_strided_slice %15 {offsets = [0, 13], sizes = [8, 1], strides = [1, 1]} : vector<8x27xf32> to vector<8x1xf32>
    %c13 = arith.constant 13 : index
    %c0_39 = arith.constant 0 : index
    %148 = vector.load %arg6[%c13, %c0_39] : memref<27x128xf32, #tpu.memory_space<vmem>>, vector<1x128xf32>
    %149 = vector.broadcast %148 : vector<1x128xf32> to vector<8x128xf32>
    %150 = arith.mulf %149, %11 : vector<8x128xf32>
    %151 = vector.broadcast %147 : vector<8x1xf32> to vector<8x128xf32>
    %152 = arith.mulf %151, %150 : vector<8x128xf32>
    %153 = arith.addf %146, %152 : vector<8x128xf32>
    %cst_40 = arith.constant 0.000000e+00 : f32
    %154 = vector.broadcast %cst_40 : f32 to vector<8x1xf32>
    %155 = vector.extract_strided_slice %11 {offsets = [0, 1], sizes = [8, 127], strides = [1, 1]} : vector<8x128xf32> to vector<8x127xf32>
    %156 = tpu.concatenate %155, %154 in 1 : vector<8x127xf32>, vector<8x1xf32> -> vector<8x128xf32>
    %157 = vector.extract_strided_slice %15 {offsets = [0, 14], sizes = [8, 1], strides = [1, 1]} : vector<8x27xf32> to vector<8x1xf32>
    %c14 = arith.constant 14 : index
    %c0_41 = arith.constant 0 : index
    %158 = vector.load %arg6[%c14, %c0_41] : memref<27x128xf32, #tpu.memory_space<vmem>>, vector<1x128xf32>
    %159 = vector.broadcast %158 : vector<1x128xf32> to vector<8x128xf32>
    %160 = arith.mulf %159, %156 : vector<8x128xf32>
    %161 = vector.broadcast %157 : vector<8x1xf32> to vector<8x128xf32>
    %162 = arith.mulf %161, %160 : vector<8x128xf32>
    %163 = arith.addf %153, %162 : vector<8x128xf32>
    %cst_42 = arith.constant 0.000000e+00 : f32
    %164 = vector.broadcast %cst_42 : f32 to vector<8x3xf32>
    %165 = vector.extract_strided_slice %11 {offsets = [0, 3], sizes = [8, 125], strides = [1, 1]} : vector<8x128xf32> to vector<8x125xf32>
    %166 = tpu.concatenate %165, %164 in 1 : vector<8x125xf32>, vector<8x3xf32> -> vector<8x128xf32>
    %167 = vector.extract_strided_slice %15 {offsets = [0, 15], sizes = [8, 1], strides = [1, 1]} : vector<8x27xf32> to vector<8x1xf32>
    %c15 = arith.constant 15 : index
    %c0_43 = arith.constant 0 : index
    %168 = vector.load %arg6[%c15, %c0_43] : memref<27x128xf32, #tpu.memory_space<vmem>>, vector<1x128xf32>
    %169 = vector.broadcast %168 : vector<1x128xf32> to vector<8x128xf32>
    %170 = arith.mulf %169, %166 : vector<8x128xf32>
    %171 = vector.broadcast %167 : vector<8x1xf32> to vector<8x128xf32>
    %172 = arith.mulf %171, %170 : vector<8x128xf32>
    %173 = arith.addf %163, %172 : vector<8x128xf32>
    %cst_44 = arith.constant 0.000000e+00 : f32
    %174 = vector.broadcast %cst_44 : f32 to vector<8x4xf32>
    %175 = vector.extract_strided_slice %11 {offsets = [0, 4], sizes = [8, 124], strides = [1, 1]} : vector<8x128xf32> to vector<8x124xf32>
    %176 = tpu.concatenate %175, %174 in 1 : vector<8x124xf32>, vector<8x4xf32> -> vector<8x128xf32>
    %177 = vector.extract_strided_slice %15 {offsets = [0, 16], sizes = [8, 1], strides = [1, 1]} : vector<8x27xf32> to vector<8x1xf32>
    %c16 = arith.constant 16 : index
    %c0_45 = arith.constant 0 : index
    %178 = vector.load %arg6[%c16, %c0_45] : memref<27x128xf32, #tpu.memory_space<vmem>>, vector<1x128xf32>
    %179 = vector.broadcast %178 : vector<1x128xf32> to vector<8x128xf32>
    %180 = arith.mulf %179, %176 : vector<8x128xf32>
    %181 = vector.broadcast %177 : vector<8x1xf32> to vector<8x128xf32>
    %182 = arith.mulf %181, %180 : vector<8x128xf32>
    %183 = arith.addf %173, %182 : vector<8x128xf32>
    %cst_46 = arith.constant 0.000000e+00 : f32
    %184 = vector.broadcast %cst_46 : f32 to vector<8x5xf32>
    %185 = vector.extract_strided_slice %11 {offsets = [0, 5], sizes = [8, 123], strides = [1, 1]} : vector<8x128xf32> to vector<8x123xf32>
    %186 = tpu.concatenate %185, %184 in 1 : vector<8x123xf32>, vector<8x5xf32> -> vector<8x128xf32>
    %187 = vector.extract_strided_slice %15 {offsets = [0, 17], sizes = [8, 1], strides = [1, 1]} : vector<8x27xf32> to vector<8x1xf32>
    %c17 = arith.constant 17 : index
    %c0_47 = arith.constant 0 : index
    %188 = vector.load %arg6[%c17, %c0_47] : memref<27x128xf32, #tpu.memory_space<vmem>>, vector<1x128xf32>
    %189 = vector.broadcast %188 : vector<1x128xf32> to vector<8x128xf32>
    %190 = arith.mulf %189, %186 : vector<8x128xf32>
    %191 = vector.broadcast %187 : vector<8x1xf32> to vector<8x128xf32>
    %192 = arith.mulf %191, %190 : vector<8x128xf32>
    %193 = arith.addf %183, %192 : vector<8x128xf32>
    %cst_48 = arith.constant 0.000000e+00 : f32
    %194 = vector.broadcast %cst_48 : f32 to vector<8x11xf32>
    %195 = vector.extract_strided_slice %11 {offsets = [0, 11], sizes = [8, 117], strides = [1, 1]} : vector<8x128xf32> to vector<8x117xf32>
    %196 = tpu.concatenate %195, %194 in 1 : vector<8x117xf32>, vector<8x11xf32> -> vector<8x128xf32>
    %197 = vector.extract_strided_slice %15 {offsets = [0, 18], sizes = [8, 1], strides = [1, 1]} : vector<8x27xf32> to vector<8x1xf32>
    %c18 = arith.constant 18 : index
    %c0_49 = arith.constant 0 : index
    %198 = vector.load %arg6[%c18, %c0_49] : memref<27x128xf32, #tpu.memory_space<vmem>>, vector<1x128xf32>
    %199 = vector.broadcast %198 : vector<1x128xf32> to vector<8x128xf32>
    %200 = arith.mulf %199, %196 : vector<8x128xf32>
    %201 = vector.broadcast %197 : vector<8x1xf32> to vector<8x128xf32>
    %202 = arith.mulf %201, %200 : vector<8x128xf32>
    %203 = arith.addf %193, %202 : vector<8x128xf32>
    %cst_50 = arith.constant 0.000000e+00 : f32
    %204 = vector.broadcast %cst_50 : f32 to vector<8x12xf32>
    %205 = vector.extract_strided_slice %11 {offsets = [0, 12], sizes = [8, 116], strides = [1, 1]} : vector<8x128xf32> to vector<8x116xf32>
    %206 = tpu.concatenate %205, %204 in 1 : vector<8x116xf32>, vector<8x12xf32> -> vector<8x128xf32>
    %207 = vector.extract_strided_slice %15 {offsets = [0, 19], sizes = [8, 1], strides = [1, 1]} : vector<8x27xf32> to vector<8x1xf32>
    %c19 = arith.constant 19 : index
    %c0_51 = arith.constant 0 : index
    %208 = vector.load %arg6[%c19, %c0_51] : memref<27x128xf32, #tpu.memory_space<vmem>>, vector<1x128xf32>
    %209 = vector.broadcast %208 : vector<1x128xf32> to vector<8x128xf32>
    %210 = arith.mulf %209, %206 : vector<8x128xf32>
    %211 = vector.broadcast %207 : vector<8x1xf32> to vector<8x128xf32>
    %212 = arith.mulf %211, %210 : vector<8x128xf32>
    %213 = arith.addf %203, %212 : vector<8x128xf32>
    %cst_52 = arith.constant 0.000000e+00 : f32
    %214 = vector.broadcast %cst_52 : f32 to vector<8x13xf32>
    %215 = vector.extract_strided_slice %11 {offsets = [0, 13], sizes = [8, 115], strides = [1, 1]} : vector<8x128xf32> to vector<8x115xf32>
    %216 = tpu.concatenate %215, %214 in 1 : vector<8x115xf32>, vector<8x13xf32> -> vector<8x128xf32>
    %217 = vector.extract_strided_slice %15 {offsets = [0, 20], sizes = [8, 1], strides = [1, 1]} : vector<8x27xf32> to vector<8x1xf32>
    %c20 = arith.constant 20 : index
    %c0_53 = arith.constant 0 : index
    %218 = vector.load %arg6[%c20, %c0_53] : memref<27x128xf32, #tpu.memory_space<vmem>>, vector<1x128xf32>
    %219 = vector.broadcast %218 : vector<1x128xf32> to vector<8x128xf32>
    %220 = arith.mulf %219, %216 : vector<8x128xf32>
    %221 = vector.broadcast %217 : vector<8x1xf32> to vector<8x128xf32>
    %222 = arith.mulf %221, %220 : vector<8x128xf32>
    %223 = arith.addf %213, %222 : vector<8x128xf32>
    %cst_54 = arith.constant 0.000000e+00 : f32
    %224 = vector.broadcast %cst_54 : f32 to vector<8x15xf32>
    %225 = vector.extract_strided_slice %11 {offsets = [0, 15], sizes = [8, 113], strides = [1, 1]} : vector<8x128xf32> to vector<8x113xf32>
    %226 = tpu.concatenate %225, %224 in 1 : vector<8x113xf32>, vector<8x15xf32> -> vector<8x128xf32>
    %227 = vector.extract_strided_slice %15 {offsets = [0, 21], sizes = [8, 1], strides = [1, 1]} : vector<8x27xf32> to vector<8x1xf32>
    %c21 = arith.constant 21 : index
    %c0_55 = arith.constant 0 : index
    %228 = vector.load %arg6[%c21, %c0_55] : memref<27x128xf32, #tpu.memory_space<vmem>>, vector<1x128xf32>
    %229 = vector.broadcast %228 : vector<1x128xf32> to vector<8x128xf32>
    %230 = arith.mulf %229, %226 : vector<8x128xf32>
    %231 = vector.broadcast %227 : vector<8x1xf32> to vector<8x128xf32>
    %232 = arith.mulf %231, %230 : vector<8x128xf32>
    %233 = arith.addf %223, %232 : vector<8x128xf32>
    %cst_56 = arith.constant 0.000000e+00 : f32
    %234 = vector.broadcast %cst_56 : f32 to vector<8x16xf32>
    %235 = vector.extract_strided_slice %11 {offsets = [0, 16], sizes = [8, 112], strides = [1, 1]} : vector<8x128xf32> to vector<8x112xf32>
    %236 = tpu.concatenate %235, %234 in 1 : vector<8x112xf32>, vector<8x16xf32> -> vector<8x128xf32>
    %237 = vector.extract_strided_slice %15 {offsets = [0, 22], sizes = [8, 1], strides = [1, 1]} : vector<8x27xf32> to vector<8x1xf32>
    %c22 = arith.constant 22 : index
    %c0_57 = arith.constant 0 : index
    %238 = vector.load %arg6[%c22, %c0_57] : memref<27x128xf32, #tpu.memory_space<vmem>>, vector<1x128xf32>
    %239 = vector.broadcast %238 : vector<1x128xf32> to vector<8x128xf32>
    %240 = arith.mulf %239, %236 : vector<8x128xf32>
    %241 = vector.broadcast %237 : vector<8x1xf32> to vector<8x128xf32>
    %242 = arith.mulf %241, %240 : vector<8x128xf32>
    %243 = arith.addf %233, %242 : vector<8x128xf32>
    %cst_58 = arith.constant 0.000000e+00 : f32
    %244 = vector.broadcast %cst_58 : f32 to vector<8x17xf32>
    %245 = vector.extract_strided_slice %11 {offsets = [0, 17], sizes = [8, 111], strides = [1, 1]} : vector<8x128xf32> to vector<8x111xf32>
    %246 = tpu.concatenate %245, %244 in 1 : vector<8x111xf32>, vector<8x17xf32> -> vector<8x128xf32>
    %247 = vector.extract_strided_slice %15 {offsets = [0, 23], sizes = [8, 1], strides = [1, 1]} : vector<8x27xf32> to vector<8x1xf32>
    %c23 = arith.constant 23 : index
    %c0_59 = arith.constant 0 : index
    %248 = vector.load %arg6[%c23, %c0_59] : memref<27x128xf32, #tpu.memory_space<vmem>>, vector<1x128xf32>
    %249 = vector.broadcast %248 : vector<1x128xf32> to vector<8x128xf32>
    %250 = arith.mulf %249, %246 : vector<8x128xf32>
    %251 = vector.broadcast %247 : vector<8x1xf32> to vector<8x128xf32>
    %252 = arith.mulf %251, %250 : vector<8x128xf32>
    %253 = arith.addf %243, %252 : vector<8x128xf32>
    %cst_60 = arith.constant 0.000000e+00 : f32
    %254 = vector.broadcast %cst_60 : f32 to vector<8x19xf32>
    %255 = vector.extract_strided_slice %11 {offsets = [0, 19], sizes = [8, 109], strides = [1, 1]} : vector<8x128xf32> to vector<8x109xf32>
    %256 = tpu.concatenate %255, %254 in 1 : vector<8x109xf32>, vector<8x19xf32> -> vector<8x128xf32>
    %257 = vector.extract_strided_slice %15 {offsets = [0, 24], sizes = [8, 1], strides = [1, 1]} : vector<8x27xf32> to vector<8x1xf32>
    %c24 = arith.constant 24 : index
    %c0_61 = arith.constant 0 : index
    %258 = vector.load %arg6[%c24, %c0_61] : memref<27x128xf32, #tpu.memory_space<vmem>>, vector<1x128xf32>
    %259 = vector.broadcast %258 : vector<1x128xf32> to vector<8x128xf32>
    %260 = arith.mulf %259, %256 : vector<8x128xf32>
    %261 = vector.broadcast %257 : vector<8x1xf32> to vector<8x128xf32>
    %262 = arith.mulf %261, %260 : vector<8x128xf32>
    %263 = arith.addf %253, %262 : vector<8x128xf32>
    %cst_62 = arith.constant 0.000000e+00 : f32
    %264 = vector.broadcast %cst_62 : f32 to vector<8x20xf32>
    %265 = vector.extract_strided_slice %11 {offsets = [0, 20], sizes = [8, 108], strides = [1, 1]} : vector<8x128xf32> to vector<8x108xf32>
    %266 = tpu.concatenate %265, %264 in 1 : vector<8x108xf32>, vector<8x20xf32> -> vector<8x128xf32>
    %267 = vector.extract_strided_slice %15 {offsets = [0, 25], sizes = [8, 1], strides = [1, 1]} : vector<8x27xf32> to vector<8x1xf32>
    %c25 = arith.constant 25 : index
    %c0_63 = arith.constant 0 : index
    %268 = vector.load %arg6[%c25, %c0_63] : memref<27x128xf32, #tpu.memory_space<vmem>>, vector<1x128xf32>
    %269 = vector.broadcast %268 : vector<1x128xf32> to vector<8x128xf32>
    %270 = arith.mulf %269, %266 : vector<8x128xf32>
    %271 = vector.broadcast %267 : vector<8x1xf32> to vector<8x128xf32>
    %272 = arith.mulf %271, %270 : vector<8x128xf32>
    %273 = arith.addf %263, %272 : vector<8x128xf32>
    %cst_64 = arith.constant 0.000000e+00 : f32
    %274 = vector.broadcast %cst_64 : f32 to vector<8x21xf32>
    %275 = vector.extract_strided_slice %11 {offsets = [0, 21], sizes = [8, 107], strides = [1, 1]} : vector<8x128xf32> to vector<8x107xf32>
    %276 = tpu.concatenate %275, %274 in 1 : vector<8x107xf32>, vector<8x21xf32> -> vector<8x128xf32>
    %277 = vector.extract_strided_slice %15 {offsets = [0, 26], sizes = [8, 1], strides = [1, 1]} : vector<8x27xf32> to vector<8x1xf32>
    %c26 = arith.constant 26 : index
    %c0_65 = arith.constant 0 : index
    %278 = vector.load %arg6[%c26, %c0_65] : memref<27x128xf32, #tpu.memory_space<vmem>>, vector<1x128xf32>
    %279 = vector.broadcast %278 : vector<1x128xf32> to vector<8x128xf32>
    %280 = arith.mulf %279, %276 : vector<8x128xf32>
    %281 = vector.broadcast %277 : vector<8x1xf32> to vector<8x128xf32>
    %282 = arith.mulf %281, %280 : vector<8x128xf32>
    %283 = arith.addf %273, %282 : vector<8x128xf32>
    %c0_66 = arith.constant 0 : index
    %c0_67 = arith.constant 0 : index
    %c0_68 = arith.constant 0 : index
    %284 = vector.load %arg5[%c0_66, %c0_67, %c0_68] : memref<2x8x1xf32, #tpu.memory_space<vmem>>, vector<1x8x1xf32>
    %285 = vector.shape_cast %284 : vector<1x8x1xf32> to vector<8x1xf32>
    %286 = vector.broadcast %285 : vector<8x1xf32> to vector<8x128xf32>
    %287 = arith.addf %283, %286 : vector<8x128xf32>
    %288 = arith.truncf %287 : vector<8x128xf32> to vector<8x128xbf16>
    %289 = arith.truncf %12 : vector<8x128xf32> to vector<8x128xbf16>
    %cst_69 = arith.constant dense<0.000000e+00> : vector<128x128xf32>
    %290 = tpu.matmul %288, %289, %cst_69 {dimension_numbers = #tpu.dot_dimension_numbers<[0], [0], [1], [1], [0, 1, 1, 1], [], []>} : vector<8x128xbf16>, vector<8x128xbf16>, vector<128x128xf32> -> vector<128x128xf32>
    %cst_70 = arith.constant 0.353553385 : f32
    %291 = vector.broadcast %cst_70 : f32 to vector<128x128xf32>
    %292 = arith.mulf %290, %291 : vector<128x128xf32>
    %c0_71 = arith.constant 0 : index
    %c0_72 = arith.constant 0 : index
    %c0_73 = arith.constant 0 : index
    %293 = vector.load %arg7[%c0_71, %c0_72, %c0_73] : memref<2x128x128xbf16, #tpu.memory_space<vmem>>, vector<1x128x128xbf16>
    %294 = vector.shape_cast %293 : vector<1x128x128xbf16> to vector<128x128xbf16>
    %295 = arith.extf %294 : vector<128x128xbf16> to vector<128x128xf32>
    %296 = arith.addf %292, %295 : vector<128x128xf32>
    %cst_74 = arith.constant dense<0xFF800000> : vector<128xf32>
    %297 = vector.multi_reduction <maximumf>, %296, %cst_74 [1] : vector<128x128xf32> to vector<128xf32>
    %298 = vector.shape_cast %297 : vector<128xf32> to vector<128x1xf32>
    %299 = vector.broadcast %298 : vector<128x1xf32> to vector<128x128xf32>
    %300 = arith.subf %296, %299 : vector<128x128xf32>
    %301 = math.exp %300 : vector<128x128xf32>
    %cst_75 = arith.constant dense<0.000000e+00> : vector<128xf32>
    %302 = vector.multi_reduction <add>, %301, %cst_75 [1] : vector<128x128xf32> to vector<128xf32>
    %303 = vector.shape_cast %302 : vector<128xf32> to vector<128x1xf32>
    %304 = tpu.reciprocal %303 {approx = true} : vector<128x1xf32> -> vector<128x1xf32>
    %305 = vector.broadcast %304 : vector<128x1xf32> to vector<128x128xf32>
    %306 = arith.mulf %301, %305 : vector<128x128xf32>
    %307 = arith.truncf %13 : vector<8x128xf32> to vector<8x128xbf16>
    %308 = arith.truncf %306 : vector<128x128xf32> to vector<128x128xbf16>
    %cst_76 = arith.constant dense<0.000000e+00> : vector<8x128xf32>
    %309 = tpu.matmul %307, %308, %cst_76 {dimension_numbers = #tpu.dot_dimension_numbers<[1], [1], [0], [0], [0, 0, 1, 0], [], []>} : vector<8x128xbf16>, vector<128x128xbf16>, vector<8x128xf32> -> vector<8x128xf32>
    %c0_77 = arith.constant 0 : index
    %c0_78 = arith.constant 0 : index
    %310 = vector.load %arg8[%c0_77, %c0_78] : memref<16x16xbf16, #tpu.memory_space<vmem>>, vector<16x8xbf16>
    %cst_79 = arith.constant 0.000000e+00 : f32
    %311 = vector.broadcast %cst_79 : f32 to vector<8x128xf32>
    %312 = arith.maximumf %309, %311 : vector<8x128xf32>
    %313 = arith.truncf %312 : vector<8x128xf32> to vector<8x128xbf16>
    %cst_80 = arith.constant dense<0.000000e+00> : vector<16x128xf32>
    %314 = tpu.matmul %310, %313, %cst_80 {dimension_numbers = #tpu.dot_dimension_numbers<[1], [0], [0], [1], [0, 0, 1, 1], [], []>} : vector<16x8xbf16>, vector<8x128xbf16>, vector<16x128xf32> -> vector<16x128xf32>
    %315 = arith.addf %0, %314 : vector<16x128xf32>
    %c8_81 = arith.constant 8 : index
    %c0_82 = arith.constant 0 : index
    %316 = vector.load %arg1[%c8_81, %c0_82] : memref<16x128xbf16, #tpu.memory_space<vmem>>, vector<8x128xbf16>
    %317 = arith.extf %316 : vector<8x128xbf16> to vector<8x128xf32>
    %318 = arith.addf %309, %317 : vector<8x128xf32>
    %c1_83 = arith.constant 1 : index
    %c0_84 = arith.constant 0 : index
    %c0_85 = arith.constant 0 : index
    %319 = vector.load %arg2[%c1_83, %c0_84, %c0_85] : memref<2x24x8xbf16, #tpu.memory_space<vmem>>, vector<1x24x8xbf16>
    %320 = vector.shape_cast %319 : vector<1x24x8xbf16> to vector<24x8xbf16>
    %321 = arith.truncf %318 : vector<8x128xf32> to vector<8x128xbf16>
    %cst_86 = arith.constant dense<0.000000e+00> : vector<24x128xf32>
    %322 = tpu.matmul %320, %321, %cst_86 {dimension_numbers = #tpu.dot_dimension_numbers<[1], [0], [0], [1], [0, 0, 1, 1], [], []>} : vector<24x8xbf16>, vector<8x128xbf16>, vector<24x128xf32> -> vector<24x128xf32>
    %c1_87 = arith.constant 1 : index
    %c0_88 = arith.constant 0 : index
    %c0_89 = arith.constant 0 : index
    %323 = vector.load %arg3[%c1_87, %c0_88, %c0_89] : memref<2x24x1xf32, #tpu.memory_space<vmem>>, vector<1x24x1xf32>
    %324 = vector.shape_cast %323 : vector<1x24x1xf32> to vector<24x1xf32>
    %325 = vector.broadcast %324 : vector<24x1xf32> to vector<24x128xf32>
    %326 = arith.addf %322, %325 : vector<24x128xf32>
    %327 = vector.extract_strided_slice %326 {offsets = [0, 0], sizes = [8, 128], strides = [1, 1]} : vector<24x128xf32> to vector<8x128xf32>
    %328 = vector.extract_strided_slice %326 {offsets = [8, 0], sizes = [8, 128], strides = [1, 1]} : vector<24x128xf32> to vector<8x128xf32>
    %329 = vector.extract_strided_slice %326 {offsets = [16, 0], sizes = [8, 128], strides = [1, 1]} : vector<24x128xf32> to vector<8x128xf32>
    %c1_90 = arith.constant 1 : index
    %c0_91 = arith.constant 0 : index
    %c0_92 = arith.constant 0 : index
    %330 = vector.load %arg4[%c1_90, %c0_91, %c0_92] : memref<2x8x27xf32, #tpu.memory_space<vmem>>, vector<1x8x27xf32>
    %331 = vector.shape_cast %330 : vector<1x8x27xf32> to vector<8x27xf32>
    %cst_93 = arith.constant 0.000000e+00 : f32
    %332 = vector.broadcast %cst_93 : f32 to vector<8x128xf32>
    %cst_94 = arith.constant 0.000000e+00 : f32
    %333 = vector.broadcast %cst_94 : f32 to vector<8x21xf32>
    %334 = vector.extract_strided_slice %327 {offsets = [0, 0], sizes = [8, 107], strides = [1, 1]} : vector<8x128xf32> to vector<8x107xf32>
    %335 = tpu.concatenate %333, %334 in 1 : vector<8x21xf32>, vector<8x107xf32> -> vector<8x128xf32>
    %336 = vector.extract_strided_slice %331 {offsets = [0, 0], sizes = [8, 1], strides = [1, 1]} : vector<8x27xf32> to vector<8x1xf32>
    %c0_95 = arith.constant 0 : index
    %c0_96 = arith.constant 0 : index
    %337 = vector.load %arg6[%c0_95, %c0_96] : memref<27x128xf32, #tpu.memory_space<vmem>>, vector<1x128xf32>
    %338 = vector.broadcast %337 : vector<1x128xf32> to vector<8x128xf32>
    %339 = arith.mulf %338, %335 : vector<8x128xf32>
    %340 = vector.broadcast %336 : vector<8x1xf32> to vector<8x128xf32>
    %341 = arith.mulf %340, %339 : vector<8x128xf32>
    %342 = arith.addf %332, %341 : vector<8x128xf32>
    %cst_97 = arith.constant 0.000000e+00 : f32
    %343 = vector.broadcast %cst_97 : f32 to vector<8x20xf32>
    %344 = vector.extract_strided_slice %327 {offsets = [0, 0], sizes = [8, 108], strides = [1, 1]} : vector<8x128xf32> to vector<8x108xf32>
    %345 = tpu.concatenate %343, %344 in 1 : vector<8x20xf32>, vector<8x108xf32> -> vector<8x128xf32>
    %346 = vector.extract_strided_slice %331 {offsets = [0, 1], sizes = [8, 1], strides = [1, 1]} : vector<8x27xf32> to vector<8x1xf32>
    %c1_98 = arith.constant 1 : index
    %c0_99 = arith.constant 0 : index
    %347 = vector.load %arg6[%c1_98, %c0_99] : memref<27x128xf32, #tpu.memory_space<vmem>>, vector<1x128xf32>
    %348 = vector.broadcast %347 : vector<1x128xf32> to vector<8x128xf32>
    %349 = arith.mulf %348, %345 : vector<8x128xf32>
    %350 = vector.broadcast %346 : vector<8x1xf32> to vector<8x128xf32>
    %351 = arith.mulf %350, %349 : vector<8x128xf32>
    %352 = arith.addf %342, %351 : vector<8x128xf32>
    %cst_100 = arith.constant 0.000000e+00 : f32
    %353 = vector.broadcast %cst_100 : f32 to vector<8x19xf32>
    %354 = vector.extract_strided_slice %327 {offsets = [0, 0], sizes = [8, 109], strides = [1, 1]} : vector<8x128xf32> to vector<8x109xf32>
    %355 = tpu.concatenate %353, %354 in 1 : vector<8x19xf32>, vector<8x109xf32> -> vector<8x128xf32>
    %356 = vector.extract_strided_slice %331 {offsets = [0, 2], sizes = [8, 1], strides = [1, 1]} : vector<8x27xf32> to vector<8x1xf32>
    %c2_101 = arith.constant 2 : index
    %c0_102 = arith.constant 0 : index
    %357 = vector.load %arg6[%c2_101, %c0_102] : memref<27x128xf32, #tpu.memory_space<vmem>>, vector<1x128xf32>
    %358 = vector.broadcast %357 : vector<1x128xf32> to vector<8x128xf32>
    %359 = arith.mulf %358, %355 : vector<8x128xf32>
    %360 = vector.broadcast %356 : vector<8x1xf32> to vector<8x128xf32>
    %361 = arith.mulf %360, %359 : vector<8x128xf32>
    %362 = arith.addf %352, %361 : vector<8x128xf32>
    %cst_103 = arith.constant 0.000000e+00 : f32
    %363 = vector.broadcast %cst_103 : f32 to vector<8x17xf32>
    %364 = vector.extract_strided_slice %327 {offsets = [0, 0], sizes = [8, 111], strides = [1, 1]} : vector<8x128xf32> to vector<8x111xf32>
    %365 = tpu.concatenate %363, %364 in 1 : vector<8x17xf32>, vector<8x111xf32> -> vector<8x128xf32>
    %366 = vector.extract_strided_slice %331 {offsets = [0, 3], sizes = [8, 1], strides = [1, 1]} : vector<8x27xf32> to vector<8x1xf32>
    %c3_104 = arith.constant 3 : index
    %c0_105 = arith.constant 0 : index
    %367 = vector.load %arg6[%c3_104, %c0_105] : memref<27x128xf32, #tpu.memory_space<vmem>>, vector<1x128xf32>
    %368 = vector.broadcast %367 : vector<1x128xf32> to vector<8x128xf32>
    %369 = arith.mulf %368, %365 : vector<8x128xf32>
    %370 = vector.broadcast %366 : vector<8x1xf32> to vector<8x128xf32>
    %371 = arith.mulf %370, %369 : vector<8x128xf32>
    %372 = arith.addf %362, %371 : vector<8x128xf32>
    %cst_106 = arith.constant 0.000000e+00 : f32
    %373 = vector.broadcast %cst_106 : f32 to vector<8x16xf32>
    %374 = vector.extract_strided_slice %327 {offsets = [0, 0], sizes = [8, 112], strides = [1, 1]} : vector<8x128xf32> to vector<8x112xf32>
    %375 = tpu.concatenate %373, %374 in 1 : vector<8x16xf32>, vector<8x112xf32> -> vector<8x128xf32>
    %376 = vector.extract_strided_slice %331 {offsets = [0, 4], sizes = [8, 1], strides = [1, 1]} : vector<8x27xf32> to vector<8x1xf32>
    %c4_107 = arith.constant 4 : index
    %c0_108 = arith.constant 0 : index
    %377 = vector.load %arg6[%c4_107, %c0_108] : memref<27x128xf32, #tpu.memory_space<vmem>>, vector<1x128xf32>
    %378 = vector.broadcast %377 : vector<1x128xf32> to vector<8x128xf32>
    %379 = arith.mulf %378, %375 : vector<8x128xf32>
    %380 = vector.broadcast %376 : vector<8x1xf32> to vector<8x128xf32>
    %381 = arith.mulf %380, %379 : vector<8x128xf32>
    %382 = arith.addf %372, %381 : vector<8x128xf32>
    %cst_109 = arith.constant 0.000000e+00 : f32
    %383 = vector.broadcast %cst_109 : f32 to vector<8x15xf32>
    %384 = vector.extract_strided_slice %327 {offsets = [0, 0], sizes = [8, 113], strides = [1, 1]} : vector<8x128xf32> to vector<8x113xf32>
    %385 = tpu.concatenate %383, %384 in 1 : vector<8x15xf32>, vector<8x113xf32> -> vector<8x128xf32>
    %386 = vector.extract_strided_slice %331 {offsets = [0, 5], sizes = [8, 1], strides = [1, 1]} : vector<8x27xf32> to vector<8x1xf32>
    %c5_110 = arith.constant 5 : index
    %c0_111 = arith.constant 0 : index
    %387 = vector.load %arg6[%c5_110, %c0_111] : memref<27x128xf32, #tpu.memory_space<vmem>>, vector<1x128xf32>
    %388 = vector.broadcast %387 : vector<1x128xf32> to vector<8x128xf32>
    %389 = arith.mulf %388, %385 : vector<8x128xf32>
    %390 = vector.broadcast %386 : vector<8x1xf32> to vector<8x128xf32>
    %391 = arith.mulf %390, %389 : vector<8x128xf32>
    %392 = arith.addf %382, %391 : vector<8x128xf32>
    %cst_112 = arith.constant 0.000000e+00 : f32
    %393 = vector.broadcast %cst_112 : f32 to vector<8x13xf32>
    %394 = vector.extract_strided_slice %327 {offsets = [0, 0], sizes = [8, 115], strides = [1, 1]} : vector<8x128xf32> to vector<8x115xf32>
    %395 = tpu.concatenate %393, %394 in 1 : vector<8x13xf32>, vector<8x115xf32> -> vector<8x128xf32>
    %396 = vector.extract_strided_slice %331 {offsets = [0, 6], sizes = [8, 1], strides = [1, 1]} : vector<8x27xf32> to vector<8x1xf32>
    %c6_113 = arith.constant 6 : index
    %c0_114 = arith.constant 0 : index
    %397 = vector.load %arg6[%c6_113, %c0_114] : memref<27x128xf32, #tpu.memory_space<vmem>>, vector<1x128xf32>
    %398 = vector.broadcast %397 : vector<1x128xf32> to vector<8x128xf32>
    %399 = arith.mulf %398, %395 : vector<8x128xf32>
    %400 = vector.broadcast %396 : vector<8x1xf32> to vector<8x128xf32>
    %401 = arith.mulf %400, %399 : vector<8x128xf32>
    %402 = arith.addf %392, %401 : vector<8x128xf32>
    %cst_115 = arith.constant 0.000000e+00 : f32
    %403 = vector.broadcast %cst_115 : f32 to vector<8x12xf32>
    %404 = vector.extract_strided_slice %327 {offsets = [0, 0], sizes = [8, 116], strides = [1, 1]} : vector<8x128xf32> to vector<8x116xf32>
    %405 = tpu.concatenate %403, %404 in 1 : vector<8x12xf32>, vector<8x116xf32> -> vector<8x128xf32>
    %406 = vector.extract_strided_slice %331 {offsets = [0, 7], sizes = [8, 1], strides = [1, 1]} : vector<8x27xf32> to vector<8x1xf32>
    %c7_116 = arith.constant 7 : index
    %c0_117 = arith.constant 0 : index
    %407 = vector.load %arg6[%c7_116, %c0_117] : memref<27x128xf32, #tpu.memory_space<vmem>>, vector<1x128xf32>
    %408 = vector.broadcast %407 : vector<1x128xf32> to vector<8x128xf32>
    %409 = arith.mulf %408, %405 : vector<8x128xf32>
    %410 = vector.broadcast %406 : vector<8x1xf32> to vector<8x128xf32>
    %411 = arith.mulf %410, %409 : vector<8x128xf32>
    %412 = arith.addf %402, %411 : vector<8x128xf32>
    %cst_118 = arith.constant 0.000000e+00 : f32
    %413 = vector.broadcast %cst_118 : f32 to vector<8x11xf32>
    %414 = vector.extract_strided_slice %327 {offsets = [0, 0], sizes = [8, 117], strides = [1, 1]} : vector<8x128xf32> to vector<8x117xf32>
    %415 = tpu.concatenate %413, %414 in 1 : vector<8x11xf32>, vector<8x117xf32> -> vector<8x128xf32>
    %416 = vector.extract_strided_slice %331 {offsets = [0, 8], sizes = [8, 1], strides = [1, 1]} : vector<8x27xf32> to vector<8x1xf32>
    %c8_119 = arith.constant 8 : index
    %c0_120 = arith.constant 0 : index
    %417 = vector.load %arg6[%c8_119, %c0_120] : memref<27x128xf32, #tpu.memory_space<vmem>>, vector<1x128xf32>
    %418 = vector.broadcast %417 : vector<1x128xf32> to vector<8x128xf32>
    %419 = arith.mulf %418, %415 : vector<8x128xf32>
    %420 = vector.broadcast %416 : vector<8x1xf32> to vector<8x128xf32>
    %421 = arith.mulf %420, %419 : vector<8x128xf32>
    %422 = arith.addf %412, %421 : vector<8x128xf32>
    %cst_121 = arith.constant 0.000000e+00 : f32
    %423 = vector.broadcast %cst_121 : f32 to vector<8x5xf32>
    %424 = vector.extract_strided_slice %327 {offsets = [0, 0], sizes = [8, 123], strides = [1, 1]} : vector<8x128xf32> to vector<8x123xf32>
    %425 = tpu.concatenate %423, %424 in 1 : vector<8x5xf32>, vector<8x123xf32> -> vector<8x128xf32>
    %426 = vector.extract_strided_slice %331 {offsets = [0, 9], sizes = [8, 1], strides = [1, 1]} : vector<8x27xf32> to vector<8x1xf32>
    %c9_122 = arith.constant 9 : index
    %c0_123 = arith.constant 0 : index
    %427 = vector.load %arg6[%c9_122, %c0_123] : memref<27x128xf32, #tpu.memory_space<vmem>>, vector<1x128xf32>
    %428 = vector.broadcast %427 : vector<1x128xf32> to vector<8x128xf32>
    %429 = arith.mulf %428, %425 : vector<8x128xf32>
    %430 = vector.broadcast %426 : vector<8x1xf32> to vector<8x128xf32>
    %431 = arith.mulf %430, %429 : vector<8x128xf32>
    %432 = arith.addf %422, %431 : vector<8x128xf32>
    %cst_124 = arith.constant 0.000000e+00 : f32
    %433 = vector.broadcast %cst_124 : f32 to vector<8x4xf32>
    %434 = vector.extract_strided_slice %327 {offsets = [0, 0], sizes = [8, 124], strides = [1, 1]} : vector<8x128xf32> to vector<8x124xf32>
    %435 = tpu.concatenate %433, %434 in 1 : vector<8x4xf32>, vector<8x124xf32> -> vector<8x128xf32>
    %436 = vector.extract_strided_slice %331 {offsets = [0, 10], sizes = [8, 1], strides = [1, 1]} : vector<8x27xf32> to vector<8x1xf32>
    %c10_125 = arith.constant 10 : index
    %c0_126 = arith.constant 0 : index
    %437 = vector.load %arg6[%c10_125, %c0_126] : memref<27x128xf32, #tpu.memory_space<vmem>>, vector<1x128xf32>
    %438 = vector.broadcast %437 : vector<1x128xf32> to vector<8x128xf32>
    %439 = arith.mulf %438, %435 : vector<8x128xf32>
    %440 = vector.broadcast %436 : vector<8x1xf32> to vector<8x128xf32>
    %441 = arith.mulf %440, %439 : vector<8x128xf32>
    %442 = arith.addf %432, %441 : vector<8x128xf32>
    %cst_127 = arith.constant 0.000000e+00 : f32
    %443 = vector.broadcast %cst_127 : f32 to vector<8x3xf32>
    %444 = vector.extract_strided_slice %327 {offsets = [0, 0], sizes = [8, 125], strides = [1, 1]} : vector<8x128xf32> to vector<8x125xf32>
    %445 = tpu.concatenate %443, %444 in 1 : vector<8x3xf32>, vector<8x125xf32> -> vector<8x128xf32>
    %446 = vector.extract_strided_slice %331 {offsets = [0, 11], sizes = [8, 1], strides = [1, 1]} : vector<8x27xf32> to vector<8x1xf32>
    %c11_128 = arith.constant 11 : index
    %c0_129 = arith.constant 0 : index
    %447 = vector.load %arg6[%c11_128, %c0_129] : memref<27x128xf32, #tpu.memory_space<vmem>>, vector<1x128xf32>
    %448 = vector.broadcast %447 : vector<1x128xf32> to vector<8x128xf32>
    %449 = arith.mulf %448, %445 : vector<8x128xf32>
    %450 = vector.broadcast %446 : vector<8x1xf32> to vector<8x128xf32>
    %451 = arith.mulf %450, %449 : vector<8x128xf32>
    %452 = arith.addf %442, %451 : vector<8x128xf32>
    %cst_130 = arith.constant 0.000000e+00 : f32
    %453 = vector.broadcast %cst_130 : f32 to vector<8x1xf32>
    %454 = vector.extract_strided_slice %327 {offsets = [0, 0], sizes = [8, 127], strides = [1, 1]} : vector<8x128xf32> to vector<8x127xf32>
    %455 = tpu.concatenate %453, %454 in 1 : vector<8x1xf32>, vector<8x127xf32> -> vector<8x128xf32>
    %456 = vector.extract_strided_slice %331 {offsets = [0, 12], sizes = [8, 1], strides = [1, 1]} : vector<8x27xf32> to vector<8x1xf32>
    %c12_131 = arith.constant 12 : index
    %c0_132 = arith.constant 0 : index
    %457 = vector.load %arg6[%c12_131, %c0_132] : memref<27x128xf32, #tpu.memory_space<vmem>>, vector<1x128xf32>
    %458 = vector.broadcast %457 : vector<1x128xf32> to vector<8x128xf32>
    %459 = arith.mulf %458, %455 : vector<8x128xf32>
    %460 = vector.broadcast %456 : vector<8x1xf32> to vector<8x128xf32>
    %461 = arith.mulf %460, %459 : vector<8x128xf32>
    %462 = arith.addf %452, %461 : vector<8x128xf32>
    %463 = vector.extract_strided_slice %331 {offsets = [0, 13], sizes = [8, 1], strides = [1, 1]} : vector<8x27xf32> to vector<8x1xf32>
    %c13_133 = arith.constant 13 : index
    %c0_134 = arith.constant 0 : index
    %464 = vector.load %arg6[%c13_133, %c0_134] : memref<27x128xf32, #tpu.memory_space<vmem>>, vector<1x128xf32>
    %465 = vector.broadcast %464 : vector<1x128xf32> to vector<8x128xf32>
    %466 = arith.mulf %465, %327 : vector<8x128xf32>
    %467 = vector.broadcast %463 : vector<8x1xf32> to vector<8x128xf32>
    %468 = arith.mulf %467, %466 : vector<8x128xf32>
    %469 = arith.addf %462, %468 : vector<8x128xf32>
    %cst_135 = arith.constant 0.000000e+00 : f32
    %470 = vector.broadcast %cst_135 : f32 to vector<8x1xf32>
    %471 = vector.extract_strided_slice %327 {offsets = [0, 1], sizes = [8, 127], strides = [1, 1]} : vector<8x128xf32> to vector<8x127xf32>
    %472 = tpu.concatenate %471, %470 in 1 : vector<8x127xf32>, vector<8x1xf32> -> vector<8x128xf32>
    %473 = vector.extract_strided_slice %331 {offsets = [0, 14], sizes = [8, 1], strides = [1, 1]} : vector<8x27xf32> to vector<8x1xf32>
    %c14_136 = arith.constant 14 : index
    %c0_137 = arith.constant 0 : index
    %474 = vector.load %arg6[%c14_136, %c0_137] : memref<27x128xf32, #tpu.memory_space<vmem>>, vector<1x128xf32>
    %475 = vector.broadcast %474 : vector<1x128xf32> to vector<8x128xf32>
    %476 = arith.mulf %475, %472 : vector<8x128xf32>
    %477 = vector.broadcast %473 : vector<8x1xf32> to vector<8x128xf32>
    %478 = arith.mulf %477, %476 : vector<8x128xf32>
    %479 = arith.addf %469, %478 : vector<8x128xf32>
    %cst_138 = arith.constant 0.000000e+00 : f32
    %480 = vector.broadcast %cst_138 : f32 to vector<8x3xf32>
    %481 = vector.extract_strided_slice %327 {offsets = [0, 3], sizes = [8, 125], strides = [1, 1]} : vector<8x128xf32> to vector<8x125xf32>
    %482 = tpu.concatenate %481, %480 in 1 : vector<8x125xf32>, vector<8x3xf32> -> vector<8x128xf32>
    %483 = vector.extract_strided_slice %331 {offsets = [0, 15], sizes = [8, 1], strides = [1, 1]} : vector<8x27xf32> to vector<8x1xf32>
    %c15_139 = arith.constant 15 : index
    %c0_140 = arith.constant 0 : index
    %484 = vector.load %arg6[%c15_139, %c0_140] : memref<27x128xf32, #tpu.memory_space<vmem>>, vector<1x128xf32>
    %485 = vector.broadcast %484 : vector<1x128xf32> to vector<8x128xf32>
    %486 = arith.mulf %485, %482 : vector<8x128xf32>
    %487 = vector.broadcast %483 : vector<8x1xf32> to vector<8x128xf32>
    %488 = arith.mulf %487, %486 : vector<8x128xf32>
    %489 = arith.addf %479, %488 : vector<8x128xf32>
    %cst_141 = arith.constant 0.000000e+00 : f32
    %490 = vector.broadcast %cst_141 : f32 to vector<8x4xf32>
    %491 = vector.extract_strided_slice %327 {offsets = [0, 4], sizes = [8, 124], strides = [1, 1]} : vector<8x128xf32> to vector<8x124xf32>
    %492 = tpu.concatenate %491, %490 in 1 : vector<8x124xf32>, vector<8x4xf32> -> vector<8x128xf32>
    %493 = vector.extract_strided_slice %331 {offsets = [0, 16], sizes = [8, 1], strides = [1, 1]} : vector<8x27xf32> to vector<8x1xf32>
    %c16_142 = arith.constant 16 : index
    %c0_143 = arith.constant 0 : index
    %494 = vector.load %arg6[%c16_142, %c0_143] : memref<27x128xf32, #tpu.memory_space<vmem>>, vector<1x128xf32>
    %495 = vector.broadcast %494 : vector<1x128xf32> to vector<8x128xf32>
    %496 = arith.mulf %495, %492 : vector<8x128xf32>
    %497 = vector.broadcast %493 : vector<8x1xf32> to vector<8x128xf32>
    %498 = arith.mulf %497, %496 : vector<8x128xf32>
    %499 = arith.addf %489, %498 : vector<8x128xf32>
    %cst_144 = arith.constant 0.000000e+00 : f32
    %500 = vector.broadcast %cst_144 : f32 to vector<8x5xf32>
    %501 = vector.extract_strided_slice %327 {offsets = [0, 5], sizes = [8, 123], strides = [1, 1]} : vector<8x128xf32> to vector<8x123xf32>
    %502 = tpu.concatenate %501, %500 in 1 : vector<8x123xf32>, vector<8x5xf32> -> vector<8x128xf32>
    %503 = vector.extract_strided_slice %331 {offsets = [0, 17], sizes = [8, 1], strides = [1, 1]} : vector<8x27xf32> to vector<8x1xf32>
    %c17_145 = arith.constant 17 : index
    %c0_146 = arith.constant 0 : index
    %504 = vector.load %arg6[%c17_145, %c0_146] : memref<27x128xf32, #tpu.memory_space<vmem>>, vector<1x128xf32>
    %505 = vector.broadcast %504 : vector<1x128xf32> to vector<8x128xf32>
    %506 = arith.mulf %505, %502 : vector<8x128xf32>
    %507 = vector.broadcast %503 : vector<8x1xf32> to vector<8x128xf32>
    %508 = arith.mulf %507, %506 : vector<8x128xf32>
    %509 = arith.addf %499, %508 : vector<8x128xf32>
    %cst_147 = arith.constant 0.000000e+00 : f32
    %510 = vector.broadcast %cst_147 : f32 to vector<8x11xf32>
    %511 = vector.extract_strided_slice %327 {offsets = [0, 11], sizes = [8, 117], strides = [1, 1]} : vector<8x128xf32> to vector<8x117xf32>
    %512 = tpu.concatenate %511, %510 in 1 : vector<8x117xf32>, vector<8x11xf32> -> vector<8x128xf32>
    %513 = vector.extract_strided_slice %331 {offsets = [0, 18], sizes = [8, 1], strides = [1, 1]} : vector<8x27xf32> to vector<8x1xf32>
    %c18_148 = arith.constant 18 : index
    %c0_149 = arith.constant 0 : index
    %514 = vector.load %arg6[%c18_148, %c0_149] : memref<27x128xf32, #tpu.memory_space<vmem>>, vector<1x128xf32>
    %515 = vector.broadcast %514 : vector<1x128xf32> to vector<8x128xf32>
    %516 = arith.mulf %515, %512 : vector<8x128xf32>
    %517 = vector.broadcast %513 : vector<8x1xf32> to vector<8x128xf32>
    %518 = arith.mulf %517, %516 : vector<8x128xf32>
    %519 = arith.addf %509, %518 : vector<8x128xf32>
    %cst_150 = arith.constant 0.000000e+00 : f32
    %520 = vector.broadcast %cst_150 : f32 to vector<8x12xf32>
    %521 = vector.extract_strided_slice %327 {offsets = [0, 12], sizes = [8, 116], strides = [1, 1]} : vector<8x128xf32> to vector<8x116xf32>
    %522 = tpu.concatenate %521, %520 in 1 : vector<8x116xf32>, vector<8x12xf32> -> vector<8x128xf32>
    %523 = vector.extract_strided_slice %331 {offsets = [0, 19], sizes = [8, 1], strides = [1, 1]} : vector<8x27xf32> to vector<8x1xf32>
    %c19_151 = arith.constant 19 : index
    %c0_152 = arith.constant 0 : index
    %524 = vector.load %arg6[%c19_151, %c0_152] : memref<27x128xf32, #tpu.memory_space<vmem>>, vector<1x128xf32>
    %525 = vector.broadcast %524 : vector<1x128xf32> to vector<8x128xf32>
    %526 = arith.mulf %525, %522 : vector<8x128xf32>
    %527 = vector.broadcast %523 : vector<8x1xf32> to vector<8x128xf32>
    %528 = arith.mulf %527, %526 : vector<8x128xf32>
    %529 = arith.addf %519, %528 : vector<8x128xf32>
    %cst_153 = arith.constant 0.000000e+00 : f32
    %530 = vector.broadcast %cst_153 : f32 to vector<8x13xf32>
    %531 = vector.extract_strided_slice %327 {offsets = [0, 13], sizes = [8, 115], strides = [1, 1]} : vector<8x128xf32> to vector<8x115xf32>
    %532 = tpu.concatenate %531, %530 in 1 : vector<8x115xf32>, vector<8x13xf32> -> vector<8x128xf32>
    %533 = vector.extract_strided_slice %331 {offsets = [0, 20], sizes = [8, 1], strides = [1, 1]} : vector<8x27xf32> to vector<8x1xf32>
    %c20_154 = arith.constant 20 : index
    %c0_155 = arith.constant 0 : index
    %534 = vector.load %arg6[%c20_154, %c0_155] : memref<27x128xf32, #tpu.memory_space<vmem>>, vector<1x128xf32>
    %535 = vector.broadcast %534 : vector<1x128xf32> to vector<8x128xf32>
    %536 = arith.mulf %535, %532 : vector<8x128xf32>
    %537 = vector.broadcast %533 : vector<8x1xf32> to vector<8x128xf32>
    %538 = arith.mulf %537, %536 : vector<8x128xf32>
    %539 = arith.addf %529, %538 : vector<8x128xf32>
    %cst_156 = arith.constant 0.000000e+00 : f32
    %540 = vector.broadcast %cst_156 : f32 to vector<8x15xf32>
    %541 = vector.extract_strided_slice %327 {offsets = [0, 15], sizes = [8, 113], strides = [1, 1]} : vector<8x128xf32> to vector<8x113xf32>
    %542 = tpu.concatenate %541, %540 in 1 : vector<8x113xf32>, vector<8x15xf32> -> vector<8x128xf32>
    %543 = vector.extract_strided_slice %331 {offsets = [0, 21], sizes = [8, 1], strides = [1, 1]} : vector<8x27xf32> to vector<8x1xf32>
    %c21_157 = arith.constant 21 : index
    %c0_158 = arith.constant 0 : index
    %544 = vector.load %arg6[%c21_157, %c0_158] : memref<27x128xf32, #tpu.memory_space<vmem>>, vector<1x128xf32>
    %545 = vector.broadcast %544 : vector<1x128xf32> to vector<8x128xf32>
    %546 = arith.mulf %545, %542 : vector<8x128xf32>
    %547 = vector.broadcast %543 : vector<8x1xf32> to vector<8x128xf32>
    %548 = arith.mulf %547, %546 : vector<8x128xf32>
    %549 = arith.addf %539, %548 : vector<8x128xf32>
    %cst_159 = arith.constant 0.000000e+00 : f32
    %550 = vector.broadcast %cst_159 : f32 to vector<8x16xf32>
    %551 = vector.extract_strided_slice %327 {offsets = [0, 16], sizes = [8, 112], strides = [1, 1]} : vector<8x128xf32> to vector<8x112xf32>
    %552 = tpu.concatenate %551, %550 in 1 : vector<8x112xf32>, vector<8x16xf32> -> vector<8x128xf32>
    %553 = vector.extract_strided_slice %331 {offsets = [0, 22], sizes = [8, 1], strides = [1, 1]} : vector<8x27xf32> to vector<8x1xf32>
    %c22_160 = arith.constant 22 : index
    %c0_161 = arith.constant 0 : index
    %554 = vector.load %arg6[%c22_160, %c0_161] : memref<27x128xf32, #tpu.memory_space<vmem>>, vector<1x128xf32>
    %555 = vector.broadcast %554 : vector<1x128xf32> to vector<8x128xf32>
    %556 = arith.mulf %555, %552 : vector<8x128xf32>
    %557 = vector.broadcast %553 : vector<8x1xf32> to vector<8x128xf32>
    %558 = arith.mulf %557, %556 : vector<8x128xf32>
    %559 = arith.addf %549, %558 : vector<8x128xf32>
    %cst_162 = arith.constant 0.000000e+00 : f32
    %560 = vector.broadcast %cst_162 : f32 to vector<8x17xf32>
    %561 = vector.extract_strided_slice %327 {offsets = [0, 17], sizes = [8, 111], strides = [1, 1]} : vector<8x128xf32> to vector<8x111xf32>
    %562 = tpu.concatenate %561, %560 in 1 : vector<8x111xf32>, vector<8x17xf32> -> vector<8x128xf32>
    %563 = vector.extract_strided_slice %331 {offsets = [0, 23], sizes = [8, 1], strides = [1, 1]} : vector<8x27xf32> to vector<8x1xf32>
    %c23_163 = arith.constant 23 : index
    %c0_164 = arith.constant 0 : index
    %564 = vector.load %arg6[%c23_163, %c0_164] : memref<27x128xf32, #tpu.memory_space<vmem>>, vector<1x128xf32>
    %565 = vector.broadcast %564 : vector<1x128xf32> to vector<8x128xf32>
    %566 = arith.mulf %565, %562 : vector<8x128xf32>
    %567 = vector.broadcast %563 : vector<8x1xf32> to vector<8x128xf32>
    %568 = arith.mulf %567, %566 : vector<8x128xf32>
    %569 = arith.addf %559, %568 : vector<8x128xf32>
    %cst_165 = arith.constant 0.000000e+00 : f32
    %570 = vector.broadcast %cst_165 : f32 to vector<8x19xf32>
    %571 = vector.extract_strided_slice %327 {offsets = [0, 19], sizes = [8, 109], strides = [1, 1]} : vector<8x128xf32> to vector<8x109xf32>
    %572 = tpu.concatenate %571, %570 in 1 : vector<8x109xf32>, vector<8x19xf32> -> vector<8x128xf32>
    %573 = vector.extract_strided_slice %331 {offsets = [0, 24], sizes = [8, 1], strides = [1, 1]} : vector<8x27xf32> to vector<8x1xf32>
    %c24_166 = arith.constant 24 : index
    %c0_167 = arith.constant 0 : index
    %574 = vector.load %arg6[%c24_166, %c0_167] : memref<27x128xf32, #tpu.memory_space<vmem>>, vector<1x128xf32>
    %575 = vector.broadcast %574 : vector<1x128xf32> to vector<8x128xf32>
    %576 = arith.mulf %575, %572 : vector<8x128xf32>
    %577 = vector.broadcast %573 : vector<8x1xf32> to vector<8x128xf32>
    %578 = arith.mulf %577, %576 : vector<8x128xf32>
    %579 = arith.addf %569, %578 : vector<8x128xf32>
    %cst_168 = arith.constant 0.000000e+00 : f32
    %580 = vector.broadcast %cst_168 : f32 to vector<8x20xf32>
    %581 = vector.extract_strided_slice %327 {offsets = [0, 20], sizes = [8, 108], strides = [1, 1]} : vector<8x128xf32> to vector<8x108xf32>
    %582 = tpu.concatenate %581, %580 in 1 : vector<8x108xf32>, vector<8x20xf32> -> vector<8x128xf32>
    %583 = vector.extract_strided_slice %331 {offsets = [0, 25], sizes = [8, 1], strides = [1, 1]} : vector<8x27xf32> to vector<8x1xf32>
    %c25_169 = arith.constant 25 : index
    %c0_170 = arith.constant 0 : index
    %584 = vector.load %arg6[%c25_169, %c0_170] : memref<27x128xf32, #tpu.memory_space<vmem>>, vector<1x128xf32>
    %585 = vector.broadcast %584 : vector<1x128xf32> to vector<8x128xf32>
    %586 = arith.mulf %585, %582 : vector<8x128xf32>
    %587 = vector.broadcast %583 : vector<8x1xf32> to vector<8x128xf32>
    %588 = arith.mulf %587, %586 : vector<8x128xf32>
    %589 = arith.addf %579, %588 : vector<8x128xf32>
    %cst_171 = arith.constant 0.000000e+00 : f32
    %590 = vector.broadcast %cst_171 : f32 to vector<8x21xf32>
    %591 = vector.extract_strided_slice %327 {offsets = [0, 21], sizes = [8, 107], strides = [1, 1]} : vector<8x128xf32> to vector<8x107xf32>
    %592 = tpu.concatenate %591, %590 in 1 : vector<8x107xf32>, vector<8x21xf32> -> vector<8x128xf32>
    %593 = vector.extract_strided_slice %331 {offsets = [0, 26], sizes = [8, 1], strides = [1, 1]} : vector<8x27xf32> to vector<8x1xf32>
    %c26_172 = arith.constant 26 : index
    %c0_173 = arith.constant 0 : index
    %594 = vector.load %arg6[%c26_172, %c0_173] : memref<27x128xf32, #tpu.memory_space<vmem>>, vector<1x128xf32>
    %595 = vector.broadcast %594 : vector<1x128xf32> to vector<8x128xf32>
    %596 = arith.mulf %595, %592 : vector<8x128xf32>
    %597 = vector.broadcast %593 : vector<8x1xf32> to vector<8x128xf32>
    %598 = arith.mulf %597, %596 : vector<8x128xf32>
    %599 = arith.addf %589, %598 : vector<8x128xf32>
    %c1_174 = arith.constant 1 : index
    %c0_175 = arith.constant 0 : index
    %c0_176 = arith.constant 0 : index
    %600 = vector.load %arg5[%c1_174, %c0_175, %c0_176] : memref<2x8x1xf32, #tpu.memory_space<vmem>>, vector<1x8x1xf32>
    %601 = vector.shape_cast %600 : vector<1x8x1xf32> to vector<8x1xf32>
    %602 = vector.broadcast %601 : vector<8x1xf32> to vector<8x128xf32>
    %603 = arith.addf %599, %602 : vector<8x128xf32>
    %604 = arith.truncf %603 : vector<8x128xf32> to vector<8x128xbf16>
    %605 = arith.truncf %328 : vector<8x128xf32> to vector<8x128xbf16>
    %cst_177 = arith.constant dense<0.000000e+00> : vector<128x128xf32>
    %606 = tpu.matmul %604, %605, %cst_177 {dimension_numbers = #tpu.dot_dimension_numbers<[0], [0], [1], [1], [0, 1, 1, 1], [], []>} : vector<8x128xbf16>, vector<8x128xbf16>, vector<128x128xf32> -> vector<128x128xf32>
    %cst_178 = arith.constant 0.353553385 : f32
    %607 = vector.broadcast %cst_178 : f32 to vector<128x128xf32>
    %608 = arith.mulf %606, %607 : vector<128x128xf32>
    %c1_179 = arith.constant 1 : index
    %c0_180 = arith.constant 0 : index
    %c0_181 = arith.constant 0 : index
    %609 = vector.load %arg7[%c1_179, %c0_180, %c0_181] : memref<2x128x128xbf16, #tpu.memory_space<vmem>>, vector<1x128x128xbf16>
    %610 = vector.shape_cast %609 : vector<1x128x128xbf16> to vector<128x128xbf16>
    %611 = arith.extf %610 : vector<128x128xbf16> to vector<128x128xf32>
    %612 = arith.addf %608, %611 : vector<128x128xf32>
    %cst_182 = arith.constant dense<0xFF800000> : vector<128xf32>
    %613 = vector.multi_reduction <maximumf>, %612, %cst_182 [1] : vector<128x128xf32> to vector<128xf32>
    %614 = vector.shape_cast %613 : vector<128xf32> to vector<128x1xf32>
    %615 = vector.broadcast %614 : vector<128x1xf32> to vector<128x128xf32>
    %616 = arith.subf %612, %615 : vector<128x128xf32>
    %617 = math.exp %616 : vector<128x128xf32>
    %cst_183 = arith.constant dense<0.000000e+00> : vector<128xf32>
    %618 = vector.multi_reduction <add>, %617, %cst_183 [1] : vector<128x128xf32> to vector<128xf32>
    %619 = vector.shape_cast %618 : vector<128xf32> to vector<128x1xf32>
    %620 = tpu.reciprocal %619 {approx = true} : vector<128x1xf32> -> vector<128x1xf32>
    %621 = vector.broadcast %620 : vector<128x1xf32> to vector<128x128xf32>
    %622 = arith.mulf %617, %621 : vector<128x128xf32>
    %623 = arith.truncf %329 : vector<8x128xf32> to vector<8x128xbf16>
    %624 = arith.truncf %622 : vector<128x128xf32> to vector<128x128xbf16>
    %cst_184 = arith.constant dense<0.000000e+00> : vector<8x128xf32>
    %625 = tpu.matmul %623, %624, %cst_184 {dimension_numbers = #tpu.dot_dimension_numbers<[1], [1], [0], [0], [0, 0, 1, 0], [], []>} : vector<8x128xbf16>, vector<128x128xbf16>, vector<8x128xf32> -> vector<8x128xf32>
    %c0_185 = arith.constant 0 : index
    %c8_186 = arith.constant 8 : index
    %626 = vector.load %arg8[%c0_185, %c8_186] : memref<16x16xbf16, #tpu.memory_space<vmem>>, vector<16x8xbf16>
    %cst_187 = arith.constant 0.000000e+00 : f32
    %627 = vector.broadcast %cst_187 : f32 to vector<8x128xf32>
    %628 = arith.maximumf %625, %627 : vector<8x128xf32>
    %629 = arith.truncf %628 : vector<8x128xf32> to vector<8x128xbf16>
    %cst_188 = arith.constant dense<0.000000e+00> : vector<16x128xf32>
    %630 = tpu.matmul %626, %629, %cst_188 {dimension_numbers = #tpu.dot_dimension_numbers<[1], [0], [0], [1], [0, 0, 1, 1], [], []>} : vector<16x8xbf16>, vector<8x128xbf16>, vector<16x128xf32> -> vector<16x128xf32>
    %631 = arith.addf %315, %630 : vector<16x128xf32>
    %c0_189 = arith.constant 0 : index
    %c0_190 = arith.constant 0 : index
    %632 = vector.load %arg9[%c0_189, %c0_190] : memref<16x1xf32, #tpu.memory_space<vmem>>, vector<16x1xf32>
    %633 = vector.broadcast %632 : vector<16x1xf32> to vector<16x128xf32>
    %634 = arith.addf %631, %633 : vector<16x128xf32>
    %c0_191 = arith.constant 0 : index
    %c0_192 = arith.constant 0 : index
    %635 = vector.load %arg10[%c0_191, %c0_192] : memref<16x128xf32, #tpu.memory_space<vmem>>, vector<16x128xf32>
    tpu.vector_store %arg10[%c0_191, %c0_192], %634 {strides = array<i32>} : memref<16x128xf32, #tpu.memory_space<vmem>>, vector<16x128xf32>,
    return
  }
  func.func @transform_0(%arg0: i32) -> (i32, i32) {
    %c0_i32 = arith.constant 0 : i32
    %c0_i32_0 = arith.constant 0 : i32
    %c0_i32_1 = arith.constant 0 : i32
    return %c0_i32, %c0_i32_0 : i32, i32
  }
  func.func @transform_1(%arg0: i32) -> (i32, i32, i32) {
    %c0_i32 = arith.constant 0 : i32
    %c0_i32_0 = arith.constant 0 : i32
    %c0_i32_1 = arith.constant 0 : i32
    %c0_i32_2 = arith.constant 0 : i32
    return %c0_i32, %c0_i32_0, %c0_i32_1 : i32, i32, i32
  }
  func.func @transform_2(%arg0: i32) -> (i32, i32, i32) {
    %c0_i32 = arith.constant 0 : i32
    %c0_i32_0 = arith.constant 0 : i32
    %c0_i32_1 = arith.constant 0 : i32
    %c0_i32_2 = arith.constant 0 : i32
    return %c0_i32, %c0_i32_0, %c0_i32_1 : i32, i32, i32
  }
  func.func @transform_3(%arg0: i32) -> (i32, i32, i32) {
    %c0_i32 = arith.constant 0 : i32
    %c0_i32_0 = arith.constant 0 : i32
    %c0_i32_1 = arith.constant 0 : i32
    %c0_i32_2 = arith.constant 0 : i32
    return %c0_i32, %c0_i32_0, %c0_i32_1 : i32, i32, i32
  }
  func.func @transform_4(%arg0: i32) -> (i32, i32, i32) {
    %c0_i32 = arith.constant 0 : i32
    %c0_i32_0 = arith.constant 0 : i32
    %c0_i32_1 = arith.constant 0 : i32
    %c0_i32_2 = arith.constant 0 : i32
    return %c0_i32, %c0_i32_0, %c0_i32_1 : i32, i32, i32
  }
  func.func @transform_5(%arg0: i32) -> (i32, i32) {
    %c0_i32 = arith.constant 0 : i32
    %c0_i32_0 = arith.constant 0 : i32
    %c0_i32_1 = arith.constant 0 : i32
    return %c0_i32, %c0_i32_0 : i32, i32
  }
  func.func @transform_6(%arg0: i32) -> (i32, i32, i32) {
    %c0_i32 = arith.constant 0 : i32
    %c0_i32_0 = arith.constant 0 : i32
    %c0_i32_1 = arith.constant 0 : i32
    %c0_i32_2 = arith.constant 0 : i32
    return %c0_i32, %c0_i32_0, %c0_i32_1 : i32, i32, i32
  }
  func.func @transform_7(%arg0: i32) -> (i32, i32) {
    %c0_i32 = arith.constant 0 : i32
    %c0_i32_0 = arith.constant 0 : i32
    %c0_i32_1 = arith.constant 0 : i32
    return %c0_i32, %c0_i32_0 : i32, i32
  }
  func.func @transform_8(%arg0: i32) -> (i32, i32) {
    %c0_i32 = arith.constant 0 : i32
    %c0_i32_0 = arith.constant 0 : i32
    %c0_i32_1 = arith.constant 0 : i32
    return %c0_i32, %c0_i32_0 : i32, i32
  }
  func.func @transform_9(%arg0: i32) -> (i32, i32) {
    %c0_i32 = arith.constant 0 : i32
    %c0_i32_0 = arith.constant 0 : i32
    %c0_i32_1 = arith.constant 0 : i32
    return %c0_i32, %c0_i32_0 : i32, i32
  }
}

</mosaic_0001>

<bundles_post_ra>
// kernel: tpu_custom_call.1
= control target key start
LH: loop header
LB: loop body
LE: loop exit
PB: predicated region body
PF: predicated region fallthrough
CT: control target
= control target key end

     0   :  { %14 = vsyncpa [#allocation3], 0  ;;  %s3671_s0 = inlined_call_operand.vmem [shape: bf16[16,128], index: 0, kind: input, shape index: {}]   ;;  %s3672_s1 = inlined_call_operand.vmem [shape: bf16[2,24,8], index: 1, kind: input, shape index: {}]   ;;  %s3673_s2 = inlined_call_operand.vmem [shape: f32[2,24,1], index: 2, kind: input, shape index: {}]   ;;  %s3674_s3 = inlined_call_operand.hbm [shape: f32[2,8,27], index: 3, kind: input, shape index: {}]   ;;  %s3675_s4 = inlined_call_operand.vmem [shape: f32[2,8,1], index: 4, kind: input, shape index: {}]   ;;  %s3676_s5 = inlined_call_operand.hbm [shape: f32[27,128], index: 5, kind: input, shape index: {}]   ;;  %s3677_s6 = inlined_call_operand.vmem [shape: bf16[2,128,128], index: 6, kind: input, shape index: {}]   ;;  %s3678_s7 = inlined_call_operand.hbm [shape: bf16[16,16], index: 7, kind: input, shape index: {}]   ;;  %s3679_s8 = inlined_call_operand.vmem [shape: f32[16,1], index: 8, kind: input, shape index: {}]   ;;  %s3680_s9 = inlined_call_operand.hbm [shape: f32[16,128], index: 9, kind: output, shape index: {}]  }
   0x1   :  { %15 = vsyncpa [#allocation6], 0 }
   0x2   :  { %16 = vsyncpa [#allocation4], 0  ;;  %s2645_s30 = smov [#allocation5]   ;;  %s2646_s11 = smov [#allocation2]  }
   0x3   :  { %s42_s10 = sshll.u32 %s2645_s30, 4  ;;  %s28_s12 = sshll.u32 %s2646_s11, 4  ;;  %s43_s10 = int_to_ptr.vmem [resolvable:$true] %s42_s10  ;;  %s2758_s12 = int_to_ptr.vmem [resolvable:$true] %s28_s12 }
   0x4   :  { %s2551_s15 = scalar_lea.hbm %s3676_s5, 512 }
   0x5   :  { %p2552_p0 = scmp.ne.s32.totalorder %s3676_s5, %s2551_s15  ;;  %p2555_p1 = scmp.lt.u32.totalorder %s2551_s15, %s3676_s5 }
   0x7   :  { %p2557_p2 = pnand %p2555_p1, %p2552_p0 }
   0x9   :  { %2560 = shalt.err (!%p2557_p2)
}
   0xa   :  { %s2561_s20 = scalar_lea.vmem %s43_s10, 512  ;;  %p2566_p4 = scmp.lt.s32.totalorder %s43_s10, %s43_s10 }
   0xb   :  { %p2562_p3 = scmp.ne.s32.totalorder %s43_s10, %s2561_s20  ;;  %p2567_p5 = scmp.lt.s32.totalorder %s2561_s20, %s2561_s20 }
   0xd   :  { %p2568_p6 = por %p2567_p5, %p2566_p4 }
   0xf   :  { %p2569_p7 = pnand %p2568_p6, %p2562_p3 }
  0x11   :  { %2572 = shalt.err (!%p2569_p7)
}
  0x12   :  { %s3681_s21 = smov 128   ;;  %s3682_s22 = smov 8  }
  0x13   :  { %48 = dma.hbm_to_vmem [thread:$0]  %s3676_s5, 512, %s43_s10, [#allocation6], %s3681_s21, %s3681_s21, %s3682_s22  }
  0x14   :  { %s2573_s27 = scalar_lea.hbm %s3674_s3, 256 }
  0x15   :  { %p2574_p8 = scmp.ne.s32.totalorder %s3674_s3, %s2573_s27  ;;  %p2577_p9 = scmp.lt.u32.totalorder %s2573_s27, %s3674_s3 }
  0x17   :  { %p2579_p10 = pnand %p2577_p9, %p2574_p8 }
  0x19   :  { %2582 = shalt.err (!%p2579_p10)
}
  0x1a   :  { %s2583_s13 = scalar_lea.vmem %s2758_s12, 256  ;;  %p2588_p12 = scmp.lt.s32.totalorder %s2758_s12, %s2758_s12 }
  0x1b   :  { %p2584_p11 = scmp.ne.s32.totalorder %s2758_s12, %s2583_s13  ;;  %p2589_p13 = scmp.lt.s32.totalorder %s2583_s13, %s2583_s13 }
  0x1d   :  { %p2590_p0 = por %p2589_p13, %p2588_p12 }
  0x1f   :  { %p2591_p1 = pnand %p2590_p0, %p2584_p11 }
  0x21   :  { %2594 = shalt.err (!%p2591_p1)
}
  0x22   :  { %34 = dma.hbm_to_vmem [thread:$0]  %s3674_s3, 256, %s2758_s12, [#allocation3], %s3681_s21, %s3681_s21, %s3682_s22  }
  0x23   :  { %s2649_s14 = smov [#allocation7]   ;;  %s2595_s18 = scalar_lea.hbm %s3678_s7, 128 }
  0x24   :  { %s56_s15 = sshll.u32 %s2649_s14, 4  ;;  %p2596_p2 = scmp.ne.s32.totalorder %s3678_s7, %s2595_s18  ;;  %s57_s15 = int_to_ptr.vmem [resolvable:$true] %s56_s15 }
  0x25   :  { %p2599_p3 = scmp.lt.u32.totalorder %s2595_s18, %s3678_s7 }
  0x27   :  { %p2601_p4 = pnand %p2599_p3, %p2596_p2 }
  0x29   :  { %2604 = shalt.err (!%p2601_p4)
}
  0x2a   :  { %s2605_s25 = scalar_lea.vmem %s57_s15, 128  ;;  %p2610_p6 = scmp.lt.s32.totalorder %s57_s15, %s57_s15 }
  0x2b   :  { %p2606_p5 = scmp.ne.s32.totalorder %s57_s15, %s2605_s25  ;;  %p2611_p7 = scmp.lt.s32.totalorder %s2605_s25, %s2605_s25 }
  0x2d   :  { %p2612_p8 = por %p2611_p7, %p2610_p6 }
  0x2f   :  { %p2613_p9 = pnand %p2612_p8, %p2606_p5 }
  0x31   :  { %2616 = shalt.err (!%p2613_p9)
}
  0x32   :  { %s2650_s3 = smov 64   ;;  %s2651_s12 = smov 4  }
  0x33   :  { %62 = dma.hbm_to_vmem [thread:$0]  %s3678_s7, 128, %s57_s15, [#allocation6], %s2650_s3, %s2650_s3, %s2651_s12  }
  0x34   :  { %2639 = dma.done.wait [#allocation3], 256  }
  0x35   :  { %2640 = vsyncadd [#allocation3], 4294967040 }
  0x36   :  { %2641 = dma.done.wait [#allocation6], 640  }
  0x37   :  { %2642 = vsyncadd [#allocation6], 4294966656  ;;  %v2652_v0 = vmov 1   ;;  %v2653_v1 = vmov 0   ;;  %vm112_vm0 = vcmask 1043456   ;;  %vm105_vm1 = vcmask 64512  }
  0x38   :  { %2335 = vset.pattern.permute.xlu1 %v2652_v0  ;;  %2334 = vset.pattern.permute.xlu0 %v2653_v1  ;;  %v75_v2 = vld [vmem:[%s3671_s0] sm:$0xf]  ;;  %v2392_v5 = vld [vmem:[%s3672_s1 + $0x8] ss:$0 sps:$4 sm:$0xff]   ;;  %v2654_v8 = vmov 2   ;;  %v2655_v9 = vmov 4  }
  0x39   :  { %2267 = vmatprep.subr.msk.bf16.mxu1 %vm112_vm0, %v75_v2  ;;  %v114_v3 = vsel %vm112_vm0, %v75_v2, 0  ;;  %v2391_v4 = vld [vmem:[%s3672_s1] sm:$0xff]   ;;  %v2656_v10 = vmov 5   ;;  %v2657_v11 = vmov 3   ;;  %v2658_v12 = vmov 6   ;;  %s2670_s14 = smov 20  }
  0x3a   :  { %2168 = vmatpush3.bf16.msra.mxu1 %v114_v3  ;;  %v2821_v6 = vld [vmem:[#allocation2] sm:$0xff]  ;;  %2169 = vmatprep.mubr.msk.bf16.mxu1 %vm105_vm1, %v2391_v4  ;;  %v2659_v13 = vmov 7   ;;  %v2660_v14 = vmov 15   ;;  %v2661_v15 = vmov 8   ;;  %v2662_v16 = vmov 9   ;;  %s2671_s15 = smov 21  }
  0x3b   :  { %v79_v7 = vld [vmem:[%s3673_s2] sm:$0xff]  ;;  %196 = vperm.xlu1 %2335, %v2821_v6   ;;  %v2663_v17 = vmov 10   ;;  %v2664_v18 = vmov 11   ;;  %v2665_v19 = vmov 12   ;;  %v2666_v20 = vmov 13   ;;  %s2672_s16 = smov 19  }
  0x3c   :  { %84 = vperm.xlu0 %2334, %v79_v7   ;;  %v2667_v21 = vmov 14   ;;  %v2668_v22 = vmov 16   ;;  %v3696_v23 = vmov 17   ;;  %s2673_s17 = smov 17   ;;  %s2674_s18 = smov 16   ;;  %v3695_v30 = vmov 18  }
  0x3d   :  { %2170 = vmatmul.mubr.msk.bf16.vlgmr.msra.gmra.mrb[0].mxu1 %vm105_vm1, %v2392_v5  ;;  %s2676_s19 = smov 15   ;;  %s2677_s20 = smov 13   ;;  %v3694_v31 = vmov 19   ;;  %v3693_v32 = vmov 20   ;;  %v3692_v33 = vmov 21   ;;  %v3691_v34 = vmov 22  }
  0x3e   :  { %s2679_s23 = smov 12   ;;  %s2681_s24 = smov 11   ;;  %v3690_v35 = vmov 23   ;;  %v3689_v37 = vmov 24   ;;  %v3688_v39 = vmov 25   ;;  %v3687_v41 = vmov 26  }
  0x3f   :  { %2336 = vset.pattern.permute.xlu1 %v2654_v8  ;;  %s2683_s25 = smov 5   ;;  %s2684_s3 = smov 127   ;;  %v80_v43 = vld [vmem:[%s3673_s2 + $0x8] sm:$0xff]  ;;  %v621_v48 = vld [vmem:[%s3675_s4] sm:$0xff]  ;;  %vm187_vm2 = vcmask 162816   ;;  %vm169_vm3 = vcmask 171008  }
  0x40   :  { %213 = vperm.xlu1 %2336, %v2821_v6   ;;  %2337 = vset.pattern.permute.xlu0 %v2657_v11  ;;  %s2686_s26 = smov 3   ;;  %s2688_s27 = smov 1   ;;  %vm204_vm4 = vcmask 154624   ;;  %v1970_v5 = vld [vmem:[#allocation5 + $0x1] ss:$0 sm:$0xff]  ;;  %vm221_vm5 = vcmask 138240  }
  0x41   :  { %230 = vperm.xlu0 %2337, %v2821_v6   ;;  %s2689_s28 = smov 125   ;;  %s2691_s29 = smov 124   ;;  %v1969_v7 = vld [vmem:[#allocation5] ss:$0 sm:$0xff]  ;;  %vm238_vm6 = vcmask 130048   ;;  %vm255_vm7 = vcmask 121856  }
  0x42   :  { %s2693_s7 = smov 123   ;;  %s2695_s30 = smov 117   ;;  %vm272_vm8 = vcmask 105472   ;;  %vm289_vm9 = vcmask 97280   ;;  %vm306_vm10 = vcmask 89088   ;;  %vm323_vm11 = vcmask 39936  }
  0x43   :  { %s3684_s11 = smov 107   ;;  %s3683_s13 = smov 116   ;;  %vm3700_vm12 = vcmask 31744   ;;  %vm3698_vm13 = vcmask 23552   ;;  %vm3697_vm14 = vcmask 7168   ;;  %vm3699_vm15 = vcmask 1039360  }
  0x44   :  { %2338 = vset.pattern.permute.xlu1 %v2655_v9  ;;  %s3712_s21 = smov 115   ;;  %s3685_s22 = smov 113  }
  0x45   :  { %247 = vperm.xlu1 %2338, %v2821_v6   ;;  %2349 = vset.pattern.permute.xlu0 %v2660_v14  ;;  %s3710_s5 = smov 109   ;;  %s3709_s10 = smov 108  }
  0x46   :  { %429 = vperm.xlu0 %2349, %v2821_v6  }
  0x49   :  { %2339 = vset.pattern.permute.xlu1 %v2656_v10 }
  0x4a   :  { %264 = vperm.xlu1 %2339, %v2821_v6   ;;  %2350 = vset.pattern.permute.xlu0 %v2653_v1 }
  0x4b   :  { %179 = vperm.xlu0 %2350, %v2821_v6  }
  0x4e   :  { %2340 = vset.pattern.permute.xlu1 %v2658_v12 }
  0x4f   :  { %281 = vperm.xlu1 %2340, %v2821_v6  }
  0x53   :  { %2341 = vset.pattern.permute.xlu1 %v2659_v13 }
  0x54   :  { %298 = vperm.xlu1 %2341, %v2821_v6  }
  0x58   :  { %2342 = vset.pattern.permute.xlu1 %v2661_v15 }
  0x59   :  { %315 = vperm.xlu1 %2342, %v2821_v6  }
  0x5d   :  { %2343 = vset.pattern.permute.xlu1 %v2662_v16 }
  0x5e   :  { %332 = vperm.xlu1 %2343, %v2821_v6  }
  0x62   :  { %2344 = vset.pattern.permute.xlu1 %v2663_v17 }
  0x63   :  { %349 = vperm.xlu1 %2344, %v2821_v6  }
  0x67   :  { %2345 = vset.pattern.permute.xlu1 %v2664_v18 }
  0x68   :  { %366 = vperm.xlu1 %2345, %v2821_v6  }
  0x6c   :  { %2346 = vset.pattern.permute.xlu1 %v2665_v19 }
  0x6d   :  { %383 = vperm.xlu1 %2346, %v2821_v6  }
  0x71   :  { %2347 = vset.pattern.permute.xlu1 %v2666_v20 }
  0x72   :  { %395 = vperm.xlu1 %2347, %v2821_v6  }
  0x76   :  { %2348 = vset.pattern.permute.xlu1 %v2667_v21 }
  0x77   :  { %412 = vperm.xlu1 %2348, %v2821_v6  }
  0x7b   :  { %2351 = vset.pattern.permute.xlu1 %v2668_v22 }
  0x7c   :  { %446 = vperm.xlu1 %2351, %v2821_v6  }
  0x80   :  { %2352 = vset.pattern.permute.xlu1 %v3696_v23  ;;  %v1976_v23 = vld [vmem:[#allocation5 + $0x7] ss:$0 sm:$0xff] }
  0xba   :  { %v2909_v36 = vpop.permute.xlu1 %196 }
  0xbb   :  { %v85_v24 = vpop.permute.xlu0 %84 }
  0xbf   :  { %v2917_v38 = vpop.permute.xlu1 %213 }
  0xc0   :  { %v231_v50 = vpop.permute.xlu0 %230 }
  0xc4   :  { %v2923_v40 = vpop.permute.xlu1 %247 }
  0xc5   :  { %v2966_v52 = vpop.permute.xlu0 %429 }
  0xc9   :  { %v2933_v42 = vpop.permute.xlu1 %264 }
  0xca   :  { %v180_v54 = vpop.permute.xlu0 %179 }
  0xce   :  { %v2941_v44 = vpop.permute.xlu1 %281 }
  0xd3   :  { %v2947_v45 = vpop.permute.xlu1 %298 }
  0xd8   :  { %v2951_v46 = vpop.permute.xlu1 %315 }
  0xdd   :  { %v2957_v47 = vpop.permute.xlu1 %332 }
  0xe2   :  { %v2962_v49 = vpop.permute.xlu1 %349 }
  0xe7   :  { %v2964_v51 = vpop.permute.xlu1 %366 }
  0xec   :  { %v2968_v53 = vpop.permute.xlu1 %383 }
  0xf1   :  { %v2970_v55 = vpop.permute.xlu1 %395 }
  0xf6   :  { %v2972_v56 = vpop.permute.xlu1 %412 }
  0xfb   :  { %v2974_v59 = vpop.permute.xlu1 %446 }
 0x110   :  { %v2862_v25 = vpop.f32.mrb[0].mxu1 }
 0x111   :  { %v150_v26 = vpop.f32.mrb[1].mxu1 }
 0x112   :  { %v2864_v27 = vadd.f32 %v150_v26, %v85_v24  ;;  %v2172_v28 = vpop.f32.mrb[2].mxu1 }
 0x113   :  { %v2866_v29 = vpop.f32.mrb[3].mxu1  ;;  %v1971_v28 = vld [vmem:[#allocation5 + $0x2] ss:$0 sm:$0xff] }
 0x114   :  { %184 = vrot.lane.b32.xlu1 %v2864_v27, %s2670_s14  ;;  %166 = vrot.lane.b32.xlu0 %v2864_v27, %s2671_s15 }
 0x118   :  { %201 = vrot.lane.b32.xlu1 %v2864_v27, %s2672_s16  ;;  %218 = vrot.lane.b32.xlu0 %v2864_v27, %s2673_s17 }
 0x11c   :  { %463 = vperm.xlu1 %2352, %v2821_v6   ;;  %235 = vrot.lane.b32.xlu0 %v2864_v27, %s2674_s18 }
 0x120   :  { %2353 = vset.pattern.permute.xlu1 %v3695_v30  ;;  %252 = vrot.lane.b32.xlu0 %v2864_v27, %s2676_s19 }
 0x121   :  { %480 = vperm.xlu1 %2353, %v2821_v6  }
 0x124   :  { %269 = vrot.lane.b32.xlu0 %v2864_v27, %s2677_s20 }
 0x125   :  { %2354 = vset.pattern.permute.xlu1 %v3694_v31 }
 0x126   :  { %497 = vperm.xlu1 %2354, %v2821_v6  }
 0x128   :  { %286 = vrot.lane.b32.xlu0 %v2864_v27, %s2679_s23 }
 0x12a   :  { %2355 = vset.pattern.permute.xlu1 %v3693_v32  ;;  %v1972_v32 = vld [vmem:[#allocation5 + $0x3] ss:$0 sm:$0xff] }
 0x12b   :  { %514 = vperm.xlu1 %2355, %v2821_v6  }
 0x12c   :  { %303 = vrot.lane.b32.xlu0 %v2864_v27, %s2681_s24 }
 0x12f   :  { %2356 = vset.pattern.permute.xlu1 %v3692_v33 }
 0x130   :  { %531 = vperm.xlu1 %2356, %v2821_v6   ;;  %320 = vrot.lane.b32.xlu0 %v2864_v27, %s2683_s25 }
 0x134   :  { %400 = vrot.lane.b32.xlu1 %v2864_v27, %s2684_s3  ;;  %337 = vrot.lane.b32.xlu0 %v2864_v27, %s2651_s12 }
 0x135   :  { %2357 = vset.pattern.permute.xlu1 %v3691_v34 }
 0x138   :  { %548 = vperm.xlu1 %2357, %v2821_v6   ;;  %354 = vrot.lane.b32.xlu0 %v2864_v27, %s2686_s26 }
 0x13c   :  { %2358 = vset.pattern.permute.xlu1 %v3690_v35  ;;  %371 = vrot.lane.b32.xlu0 %v2864_v27, %s2688_s27 }
 0x13d   :  { %565 = vperm.xlu1 %2358, %v2821_v6  }
 0x140   :  { %417 = vrot.lane.b32.xlu0 %v2864_v27, %s2689_s28 }
 0x141   :  { %2359 = vset.pattern.permute.xlu1 %v3689_v37 }
 0x142   :  { %582 = vperm.xlu1 %2359, %v2821_v6  }
 0x144   :  { %434 = vrot.lane.b32.xlu0 %v2864_v27, %s2691_s29 }
 0x146   :  { %2360 = vset.pattern.permute.xlu1 %v3688_v39 }
 0x147   :  { %599 = vperm.xlu1 %2360, %v2821_v6  }
 0x148   :  { %451 = vrot.lane.b32.xlu0 %v2864_v27, %s2693_s7 }
 0x14b   :  { %2361 = vset.pattern.permute.xlu1 %v3687_v41 }
 0x14c   :  { %616 = vperm.xlu1 %2361, %v2821_v6   ;;  %468 = vrot.lane.b32.xlu0 %v2864_v27, %s2695_s30 }
 0x150   :  { %604 = vrot.lane.b32.xlu1 %v2864_v27, %s3684_s11  ;;  %485 = vrot.lane.b32.xlu0 %v2864_v27, %s3683_s13  ;;  %s3686_s13 = smov 112   ;;  %s3711_s11 = smov 111  }
 0x151   :  { %2362 = vset.pattern.permute.xlu1 %v2653_v1 }
 0x154   :  { %89 = vperm.xlu1 %2362, %v80_v43   ;;  %502 = vrot.lane.b32.xlu0 %v2864_v27, %s3712_s21 }
 0x158   :  { %519 = vrot.lane.b32.xlu0 %v2864_v27, %s3685_s22 }
 0x15c   :  { %536 = vrot.lane.b32.xlu0 %v2864_v27, %s3686_s13 }
 0x160   :  { %553 = vrot.lane.b32.xlu0 %v2864_v27, %s3711_s11 }
 0x164   :  { %570 = vrot.lane.b32.xlu0 %v2864_v27, %s3710_s5 }
 0x168   :  { %587 = vrot.lane.b32.xlu0 %v2864_v27, %s3709_s10 }
 0x16c   :  { %624 = vperm.xlu0 %2350, %v621_v48  }
 0x186   :  { %v167_v57 = vpop.permute.xlu0 %166  ;;  %v185_v61 = vpop.permute.xlu1 %184 }
 0x187   :  { %v188_v6 = vsel %vm187_vm2, 0.0, %v185_v61  ;;  %v170_v24 = vsel %vm169_vm3, 0.0, %v167_v57 }
 0x188   :  { %v194_v48 = vmul.f32 %v1970_v5, %v188_v6  ;;  %v176_v41 = vmul.f32 %v1969_v7, %v170_v24  ;;  %v1973_v5 = vld [vmem:[#allocation5 + $0x4] ss:$0 sm:$0xff] }
 0x18a   :  { %v219_v58 = vpop.permute.xlu0 %218  ;;  %v202_v2 = vpop.permute.xlu1 %201  ;;  %v199_v34 = vmul.f32 %v2909_v36, %v194_v48  ;;  %v182_v33 = vmul.f32 %v180_v54, %v176_v41  ;;  %v1975_v48 = vld [vmem:[#allocation5 + $0x6] ss:$0 sm:$0xff] }
 0x18b   :  { %v205_v43 = vsel %vm204_vm4, 0.0, %v202_v2  ;;  %v222_v61 = vsel %vm221_vm5, 0.0, %v219_v58 }
 0x18c   :  { %v211_v37 = vmul.f32 %v1971_v28, %v205_v43  ;;  %v200_v7 = vadd.f32 %v199_v34, %v182_v33  ;;  %v228_v24 = vmul.f32 %v1972_v32, %v222_v61  ;;  %v1974_v28 = vld [vmem:[#allocation5 + $0x5] ss:$0 sm:$0xff]  ;;  %v1977_v61 = vld [vmem:[#allocation5 + $0x8] ss:$0 sm:$0xff] }
 0x18e   :  { %v236_v60 = vpop.permute.xlu0 %235  ;;  %v216_v57 = vmul.f32 %v2917_v38, %v211_v37  ;;  %v233_v38 = vmul.f32 %v231_v50, %v228_v24  ;;  %v1978_v50 = vld [vmem:[#allocation5 + $0x9] ss:$0 sm:$0xff] }
 0x18f   :  { %v239_v6 = vsel %vm238_vm6, 0.0, %v236_v60 }
 0x190   :  { %v217_v41 = vadd.f32 %v216_v57, %v200_v7  ;;  %v245_v54 = vmul.f32 %v1973_v5, %v239_v6 }
 0x192   :  { %v253_v62 = vpop.permute.xlu0 %252  ;;  %v234_v32 = vadd.f32 %v233_v38, %v217_v41  ;;  %v250_v34 = vmul.f32 %v2923_v40, %v245_v54 }
 0x193   :  { %v256_v36 = vsel %vm255_vm7, 0.0, %v253_v62 }
 0x194   :  { %v262_v30 = vmul.f32 %v1974_v28, %v256_v36  ;;  %v251_v24 = vadd.f32 %v250_v34, %v234_v32  ;;  %v1979_v36 = vld [vmem:[#allocation5 + $0xa] ss:$0 sm:$0xff] }
 0x196   :  { %v270_v63 = vpop.permute.xlu0 %269  ;;  %v267_v6 = vmul.f32 %v2933_v42, %v262_v30 }
 0x197   :  { %v273_v37 = vsel %vm272_vm8, 0.0, %v270_v63 }
 0x198   :  { %v279_v60 = vmul.f32 %v1975_v48, %v273_v37 }
 0x19a   :  { %v287_v3 = vpop.permute.xlu0 %286 }
 0x19b   :  { %v2976_v4 = vpop.permute.xlu1 %463  ;;  %v290_v33 = vsel %vm289_vm9, 0.0, %v287_v3  ;;  %v284_v3 = vmul.f32 %v2941_v44, %v279_v60 }
 0x19c   :  { %v296_v63 = vmul.f32 %v1976_v23, %v290_v33  ;;  %v1980_v23 = vld [vmem:[#allocation5 + $0xb] ss:$0 sm:$0xff]  ;;  %v1981_v33 = vld [vmem:[#allocation5 + $0xc] ss:$0 sm:$0xff] }
 0x19e   :  { %v304_v26 = vpop.permute.xlu0 %303  ;;  %v301_v48 = vmul.f32 %v2947_v45, %v296_v63 }
 0x19f   :  { %v307_v57 = vsel %vm306_vm10, 0.0, %v304_v26  ;;  %v268_v26 = vadd.f32 %v267_v6, %v251_v24 }
 0x1a0   :  { %v2981_v39 = vpop.permute.xlu1 %480  ;;  %v313_v28 = vmul.f32 %v1977_v61, %v307_v57 }
 0x1a1   :  { %v285_v42 = vadd.f32 %v284_v3, %v268_v26 }
 0x1a2   :  { %v321_v35 = vpop.permute.xlu0 %320 }
 0x1a3   :  { %v324_v7 = vsel %vm323_vm11, 0.0, %v321_v35  ;;  %v318_v35 = vmul.f32 %v2951_v46, %v313_v28  ;;  %v1983_v28 = vld [vmem:[#allocation5 + $0xe] ss:$0 sm:$0xff] }
 0x1a4   :  { %v330_v37 = vmul.f32 %v1978_v50, %v324_v7  ;;  %v1982_v7 = vld [vmem:[#allocation5 + $0xd] ss:$0 sm:$0xff] }
 0x1a5   :  { %v2985_v31 = vpop.permute.xlu1 %497 }
 0x1a6   :  { %v338_v2 = vpop.permute.xlu0 %337  ;;  %v335_v60 = vmul.f32 %v2957_v47, %v330_v37 }
 0x1a7   :  { %v341_v41 = vsel %vm3700_vm12, 0.0, %v338_v2  ;;  %v302_v2 = vadd.f32 %v301_v48, %v285_v42  ;;  %vm3704_vm12 = vcmask 957440  }
 0x1a8   :  { %v347_v38 = vmul.f32 %v1979_v36, %v341_v41  ;;  %v393_v36 = vmul.f32 %v1982_v7, %v2864_v27  ;;  %v1985_v27 = vld [vmem:[#allocation5 + $0x10] ss:$0 sm:$0xff]  ;;  %v1988_v7 = vld [vmem:[#allocation5 + $0x13] ss:$0 sm:$0xff] }
 0x1a9   :  { %v319_v45 = vadd.f32 %v318_v35, %v302_v2 }
 0x1aa   :  { %v355_v43 = vpop.permute.xlu0 %354  ;;  %v2990_v58 = vpop.permute.xlu1 %514  ;;  %v352_v57 = vmul.f32 %v2962_v49, %v347_v38  ;;  %v398_v37 = vmul.f32 %v2970_v55, %v393_v36  ;;  %v1986_v55 = vld [vmem:[#allocation5 + $0x11] ss:$0 sm:$0xff] }
 0x1ab   :  { %v358_v30 = vsel %vm3698_vm13, 0.0, %v355_v43  ;;  %v336_v43 = vadd.f32 %v335_v60, %v319_v45  ;;  %vm3702_vm13 = vcmask 1014784  }
 0x1ac   :  { %v364_v61 = vmul.f32 %v1980_v23, %v358_v30  ;;  %v1984_v23 = vld [vmem:[#allocation5 + $0xf] ss:$0 sm:$0xff] }
 0x1ad   :  { %v353_v24 = vadd.f32 %v352_v57, %v336_v43 }
 0x1ae   :  { %v372_v62 = vpop.permute.xlu0 %371  ;;  %v369_v50 = vmul.f32 %v2964_v51, %v364_v61 }
 0x1af   :  { %v2996_v5 = vpop.permute.xlu1 %531  ;;  %v375_v32 = vsel %vm3697_vm14, 0.0, %v372_v62  ;;  %vm3701_vm14 = vcmask 1022976  }
 0x1b0   :  { %v381_v6 = vmul.f32 %v1981_v33, %v375_v32  ;;  %v370_v41 = vadd.f32 %v369_v50, %v353_v24 }
 0x1b2   :  { %v418_v40 = vpop.permute.xlu0 %417  ;;  %v386_v62 = vmul.f32 %v2968_v53, %v381_v6 }
 0x1b3   :  { %v401_v54 = vpop.permute.xlu1 %400  ;;  %v421_v30 = vsel %vm3701_vm14, %v418_v40, 0.0  ;;  %vm3705_vm14 = vcmask 949248  }
 0x1b4   :  { %v404_v47 = vsel %vm3699_vm15, %v401_v54, 0.0  ;;  %v387_v26 = vadd.f32 %v386_v62, %v370_v41  ;;  %v427_v33 = vmul.f32 %v1984_v23, %v421_v30  ;;  %vm3703_vm15 = vcmask 1006592   ;;  %v1991_v30 = vld [vmem:[#allocation5 + $0x16] ss:$0 sm:$0xff] }
 0x1b5   :  { %v410_v48 = vmul.f32 %v1983_v28, %v404_v47 }
 0x1b6   :  { %v435_v44 = vpop.permute.xlu0 %434  ;;  %v399_v53 = vadd.f32 %v398_v37, %v387_v26  ;;  %v432_v40 = vmul.f32 %v2966_v52, %v427_v33  ;;  %v1990_v26 = vld [vmem:[#allocation5 + $0x15] ss:$0 sm:$0xff]  ;;  %v1992_v33 = vld [vmem:[#allocation5 + $0x17] ss:$0 sm:$0xff] }
 0x1b7   :  { %v3006_v34 = vpop.permute.xlu1 %548  ;;  %v415_v42 = vmul.f32 %v2972_v56, %v410_v48  ;;  %v438_v38 = vsel %vm3702_vm13, %v435_v44, 0.0  ;;  %v1987_v56 = vld [vmem:[#allocation5 + $0x12] ss:$0 sm:$0xff]  ;;  %vm3706_vm13 = vcmask 941056  }
 0x1b8   :  { %v444_v2 = vmul.f32 %v1985_v27, %v438_v38 }
 0x1b9   :  { %v416_v32 = vadd.f32 %v415_v42, %v399_v53 }
 0x1ba   :  { %v452_v63 = vpop.permute.xlu0 %451  ;;  %v449_v44 = vmul.f32 %v2974_v59, %v444_v2 }
 0x1bb   :  { %v455_v61 = vsel %vm3703_vm15, %v452_v63, 0.0  ;;  %v433_v6 = vadd.f32 %v432_v40, %v416_v32  ;;  %vm3707_vm15 = vcmask 924672   ;;  %v1989_v63 = vld [vmem:[#allocation5 + $0x14] ss:$0 sm:$0xff] }
 0x1bc   :  { %v3011_v46 = vpop.permute.xlu1 %565  ;;  %v461_v43 = vmul.f32 %v1986_v55, %v455_v61  ;;  %v1993_v55 = vld [vmem:[#allocation5 + $0x18] ss:$0 sm:$0xff] }
 0x1bd   :  { %v450_v52 = vadd.f32 %v449_v44, %v433_v6  ;;  %v1994_v6 = vld [vmem:[#allocation5 + $0x19] ss:$0 sm:$0xff] }
 0x1be   :  { %v469_v3 = vpop.permute.xlu0 %468  ;;  %v466_v36 = vmul.f32 %v2976_v4, %v461_v43 }
 0x1bf   :  { %v472_v57 = vsel %vm3704_vm12, %v469_v3, 0.0  ;;  %vm539_vm12 = vcmask 916480  }
 0x1c0   :  { %v478_v28 = vmul.f32 %v1987_v56, %v472_v57  ;;  %v467_v42 = vadd.f32 %v466_v36, %v450_v52  ;;  %v1995_v52 = vld [vmem:[#allocation5 + $0x1a] ss:$0 sm:$0xff] }
 0x1c1   :  { %v3016_v49 = vpop.permute.xlu1 %582 }
 0x1c2   :  { %v486_v51 = vpop.permute.xlu0 %485  ;;  %v483_v37 = vmul.f32 %v2981_v39, %v478_v28 }
 0x1c3   :  { %v489_v24 = vsel %vm3705_vm14, %v486_v51, 0.0  ;;  %vm3708_vm14 = vcmask 908288  }
 0x1c4   :  { %v495_v41 = vmul.f32 %v1988_v7, %v489_v24  ;;  %v484_v2 = vadd.f32 %v483_v37, %v467_v42 }
 0x1c6   :  { %v503_v35 = vpop.permute.xlu0 %502  ;;  %v3021_v54 = vpop.permute.xlu1 %599  ;;  %v500_v4 = vmul.f32 %v2985_v31, %v495_v41 }
 0x1c7   :  { %v506_v47 = vsel %vm3706_vm13, %v503_v35, 0.0  ;;  %vm573_vm13 = vcmask 891904  }
 0x1c8   :  { %v512_v23 = vmul.f32 %v1989_v63, %v506_v47  ;;  %v501_v31 = vadd.f32 %v500_v4, %v484_v2  ;;  %v2106_v4 = vld [vmem:[%s3677_s6 + $0x8] sm:$0xff]  }
 0x1ca   :  { %v520_v60 = vpop.permute.xlu0 %519  ;;  %v517_v39 = vmul.f32 %v2990_v58, %v512_v23 }
 0x1cb   :  { %v3025_v45 = vpop.permute.xlu1 %616  ;;  %v523_v59 = vsel %vm3707_vm15, %v520_v60, 0.0  ;;  %vm590_vm15 = vcmask 883712  }
 0x1cc   :  { %v529_v35 = vmul.f32 %v1990_v26, %v523_v59  ;;  %v518_v43 = vadd.f32 %v517_v39, %v501_v31 }
 0x1ce   :  { %v537_v50 = vpop.permute.xlu0 %536  ;;  %v534_v40 = vmul.f32 %v2996_v5, %v529_v35  ;;  %v2043_v35 = vld [vmem:[%s3677_s6] sm:$0xff]  }
 0x1cf   :  { %v605_v62 = vpop.permute.xlu1 %604  ;;  %v540_v53 = vsel %vm539_vm12, %v537_v50, 0.0 }
 0x1d0   :  { %v546_v60 = vmul.f32 %v1991_v30, %v540_v53  ;;  %v535_v7 = vadd.f32 %v534_v40, %v518_v43  ;;  %v2045_v40 = vunpack.c.h.bf16 %v2043_v35  ;;  %v2049_v43 = vunpack.c.h.bf16 %v2106_v4 }
 0x1d2   :  { %v554_v3 = vpop.permute.xlu0 %553  ;;  %v551_v58 = vmul.f32 %v3006_v34, %v546_v60 }
 0x1d3   :  { %v90_v48 = vpop.permute.xlu1 %89  ;;  %v557_v32 = vsel %vm3708_vm14, %v554_v3, 0.0  ;;  %vm3713_vm14 = vcmask 875520  }
 0x1d4   :  { %v154_v51 = vadd.f32 %v2866_v29, %v90_v48  ;;  %v563_v56 = vmul.f32 %v1992_v33, %v557_v32  ;;  %v552_v63 = vadd.f32 %v551_v58, %v535_v7  ;;  %v608_v5 = vsel %vm3713_vm14, %v605_v62, 0.0 }
 0x1d5   :  { %v614_v3 = vmul.f32 %v1995_v52, %v608_v5  ;;  %v2044_v33 = vunpack.c.l.bf16 %v2043_v35  ;;  %vm2705_vm14 = vmmov 0  }
 0x1d6   :  { %v571_v27 = vpop.permute.xlu0 %570  ;;  %v629_v38 = vpack.c.bf16 %v154_v51, %v154_v51  ;;  %v568_v24 = vmul.f32 %v3011_v46, %v563_v56  ;;  %v2107_v56 = vld [vmem:[%s3677_s6 + $0x10] sm:$0xff]  }
 0x1d7   :  { %v574_v61 = vsel %vm573_vm13, %v571_v27, 0.0  ;;  %v619_v34 = vmul.f32 %v3025_v45, %v614_v3  ;;  %v2048_v27 = vunpack.c.l.bf16 %v2106_v4  ;;  %v2053_v5 = vunpack.c.h.bf16 %v2107_v56  ;;  %v2108_v3 = vld [vmem:[%s3677_s6 + $0x18] sm:$0xff]  }
 0x1d8   :  { %2268 = vmatprep.subr.msk.bf16.mxu0 %vm112_vm0, %v629_v38  ;;  %v671_v29 = vsel %vm112_vm0, %v629_v38, 0  ;;  %v580_v50 = vmul.f32 %v1993_v55, %v574_v61  ;;  %v569_v36 = vadd.f32 %v568_v24, %v552_v63  ;;  %v2052_v24 = vunpack.c.l.bf16 %v2107_v56  ;;  %v2110_v56 = vld [vmem:[%s3677_s6 + $0x28] sm:$0xff]  }
 0x1d9   :  { %2174 = vmatpush3.bf16.msra.mxu0 %v671_v29 }
 0x1da   :  { %v588_v57 = vpop.permute.xlu0 %587  ;;  %v585_v47 = vmul.f32 %v3016_v49, %v580_v50 }
 0x1db   :  { %v591_v44 = vsel %vm590_vm15, %v588_v57, 0.0 }
 0x1dc   :  { %v597_v28 = vmul.f32 %v1994_v6, %v591_v44  ;;  %v586_v26 = vadd.f32 %v585_v47, %v569_v36 }
 0x1de   :  { %v602_v41 = vmul.f32 %v3021_v54, %v597_v28 }
 0x1e0   :  { %v603_v59 = vadd.f32 %v602_v41, %v586_v26 }
 0x1e2   :  { %v620_v48 = vadd.f32 %v619_v34, %v603_v59 }
 0x1eb   :  { %v625_v37 = vpop.permute.xlu0 %624 }
 0x1ec   :  { %v627_v23 = vadd.f32 %v625_v37, %v620_v48  ;;  %v2056_v37 = vunpack.c.l.bf16 %v2108_v3 }
 0x1ee   :  { %v628_v51 = vpack.c.bf16 %v627_v23, %v627_v23  ;;  %v2111_v23 = vld [vmem:[%s3677_s6 + $0x30] sm:$0xff]  }
 0x1ef   :  { %v2069_v4 = vunpack.c.h.bf16 %v2111_v23 }
 0x1f0   :  { %630 = vxpose.xlu1.c.b16.start.end [1/1] (short) %v628_v51, 128  ;;  %v2109_v51 = vld [vmem:[%s3677_s6 + $0x20] sm:$0xff]  }
 0x1f1   :  { %v2060_v35 = vunpack.c.l.bf16 %v2109_v51 }
 0x256   :  { %v638_v46 = vpop.trf.xlu1 }
 0x257   :  { %2175 = vmatprep.mubr.msk.bf16.mxu0 %vm105_vm1, %v638_v46 }
 0x25a   :  { %v639_v49 = vpop.trf.xlu1 }
 0x25b   :  { %2176 = vmatmul.mubr.msk.bf16.vlgmr.msra.gmra.mrb[0].mxu0 %vm105_vm1, %v639_v49 }
 0x25e   :  { %v640_v62 = vpop.trf.xlu1 }
 0x25f   :  { %2179 = vmatprep.mubr.msk.bf16.mxu0 %vm105_vm1, %v640_v62 }
 0x262   :  { %v641_v54 = vpop.trf.xlu1 }
 0x263   :  { %2180 = vmatmul.mubr.msk.bf16.gmra.mrb[4].mxu0 %vm105_vm1, %v641_v54  ;;  %v2057_v54 = vunpack.c.h.bf16 %v2108_v3 }
 0x266   :  { %v642_v30 = vpop.trf.xlu1 }
 0x267   :  { %2183 = vmatprep.mubr.msk.bf16.mxu0 %vm105_vm1, %v642_v30 }
 0x26a   :  { %v643_v45 = vpop.trf.xlu1 }
 0x26b   :  { %2184 = vmatmul.mubr.msk.bf16.gmra.mrb[8].mxu0 %vm105_vm1, %v643_v45  ;;  %v2112_v45 = vld [vmem:[%s3677_s6 + $0x38] sm:$0xff]  }
 0x26e   :  { %v644_v53 = vpop.trf.xlu1 }
 0x26f   :  { %2187 = vmatprep.mubr.msk.bf16.mxu0 %vm105_vm1, %v644_v53 }
 0x272   :  { %v645_v42 = vpop.trf.xlu1 }
 0x273   :  { %2188 = vmatmul.mubr.msk.bf16.gmra.mrb[12].mxu0 %vm105_vm1, %v645_v42 }
 0x32e   :  { %v2177_v38 = vpop.f32.mrb[0].mxu0 }
 0x32f   :  { %v772_v32 = vmul.f32 0.35355338, %v2177_v38  ;;  %v707_v2 = vpop.f32.mrb[1].mxu0 }
 0x330   :  { %v770_v39 = vmul.f32 0.35355338, %v707_v2  ;;  %v2178_v60 = vpop.f32.mrb[2].mxu0  ;;  %v2073_v2 = vunpack.c.h.bf16 %v2112_v45 }
 0x331   :  { %v710_v29 = vpop.f32.mrb[3].mxu0  ;;  %v3065_v55 = vadd.f32 %v2048_v27, %v772_v32  ;;  %v773_v57 = vmul.f32 0.35355338, %v2178_v60 }
 0x332   :  { %v771_v61 = vmul.f32 0.35355338, %v710_v29  ;;  %v3067_v31 = vadd.f32 %v2044_v33, %v770_v39 }
 0x333   :  { %838 = vmax.xlane.f32.xlu1 %v3065_v55  ;;  %v3077_v63 = vadd.f32 %v2049_v43, %v773_v57  ;;  %v2064_v43 = vunpack.c.l.bf16 %v2110_v56 }
 0x334   :  { %834 = vmax.xlane.f32.xlu0 %v3067_v31  ;;  %v3074_v6 = vadd.f32 %v2045_v40, %v771_v61  ;;  %v2061_v61 = vunpack.c.h.bf16 %v2109_v51 }
 0x336   :  { %v2181_v44 = vpop.f32.mrb[4].mxu0 }
 0x337   :  { %v723_v58 = vpop.f32.mrb[5].mxu0  ;;  %v776_v48 = vmul.f32 0.35355338, %v2181_v44 }
 0x338   :  { %836 = vmax.xlane.f32.xlu0 %v3074_v6  ;;  %v774_v50 = vmul.f32 0.35355338, %v723_v58  ;;  %v2182_v7 = vpop.f32.mrb[6].mxu0 }
 0x339   :  { %v726_v28 = vpop.f32.mrb[7].mxu0  ;;  %v777_v46 = vmul.f32 0.35355338, %v2182_v7  ;;  %v3095_v62 = vadd.f32 %v2056_v37, %v776_v48  ;;  %v2065_v7 = vunpack.c.h.bf16 %v2110_v56 }
 0x33a   :  { %v775_v47 = vmul.f32 0.35355338, %v726_v28  ;;  %v3080_v52 = vadd.f32 %v2052_v24, %v774_v50  ;;  %v2068_v28 = vunpack.c.l.bf16 %v2111_v23 }
 0x33b   :  { %v3101_v32 = vadd.f32 %v2057_v54, %v777_v46 }
 0x33c   :  { %840 = vmax.xlane.f32.xlu0 %v3077_v63  ;;  %v3086_v26 = vadd.f32 %v2053_v5, %v775_v47 }
 0x33e   :  { %v2185_v36 = vpop.f32.mrb[8].mxu0 }
 0x33f   :  { %v739_v41 = vpop.f32.mrb[9].mxu0  ;;  %v780_v44 = vmul.f32 0.35355338, %v2185_v36  ;;  %v2072_v36 = vunpack.c.l.bf16 %v2112_v45 }
 0x340   :  { %842 = vmax.xlane.f32.xlu0 %v3080_v52  ;;  %v2186_v59 = vpop.f32.mrb[10].mxu0  ;;  %v778_v53 = vmul.f32 0.35355338, %v739_v41 }
 0x341   :  { %v742_v34 = vpop.f32.mrb[11].mxu0  ;;  %v781_v58 = vmul.f32 0.35355338, %v2186_v59  ;;  %v3119_v50 = vadd.f32 %v2064_v43, %v780_v44 }
 0x342   :  { %v779_v39 = vmul.f32 0.35355338, %v742_v34  ;;  %v3106_v29 = vadd.f32 %v2060_v35, %v778_v53 }
 0x343   :  { %v3122_v47 = vadd.f32 %v2065_v7, %v781_v58 }
 0x344   :  { %844 = vmax.xlane.f32.xlu0 %v3086_v26  ;;  %v3115_v57 = vadd.f32 %v2061_v61, %v779_v39 }
 0x346   :  { %v2189_v49 = vpop.f32.mrb[12].mxu0 }
 0x347   :  { %v755_v30 = vpop.f32.mrb[13].mxu0  ;;  %v784_v5 = vmul.f32 0.35355338, %v2189_v49 }
 0x348   :  { %846 = vmax.xlane.f32.xlu0 %v3095_v62  ;;  %v2190_v42 = vpop.f32.mrb[14].mxu0  ;;  %v782_v24 = vmul.f32 0.35355338, %v755_v30 }
 0x349   :  { %v758_v27 = vpop.f32.mrb[15].mxu0  ;;  %v785_v38 = vmul.f32 0.35355338, %v2190_v42  ;;  %v3128_v3 = vadd.f32 %v2072_v36, %v784_v5 }
 0x34a   :  { %v783_v33 = vmul.f32 0.35355338, %v758_v27  ;;  %v3125_v41 = vadd.f32 %v2068_v28, %v782_v24 }
 0x34b   :  { %v3109_v40 = vadd.f32 %v2073_v2, %v785_v38 }
 0x34c   :  { %848 = vmax.xlane.f32.xlu0 %v3101_v32  ;;  %v3104_v60 = vadd.f32 %v2069_v4, %v783_v33 }
 0x34e   :  { %860 = vmax.xlane.f32.xlu1 %v3104_v60 }
 0x350   :  { %850 = vmax.xlane.f32.xlu0 %v3106_v29 }
 0x352   :  { %864 = vmax.xlane.f32.xlu1 %v3109_v40 }
 0x354   :  { %852 = vmax.xlane.f32.xlu0 %v3115_v57 }
 0x358   :  { %854 = vmax.xlane.f32.xlu0 %v3119_v50 }
 0x35c   :  { %856 = vmax.xlane.f32.xlu0 %v3122_v47 }
 0x360   :  { %858 = vmax.xlane.f32.xlu0 %v3125_v41 }
 0x364   :  { %862 = vmax.xlane.f32.xlu0 %v3128_v3 }
 0x3c0   :  { %v839_v59 = vpop.xlane.xlu1 %838 }
 0x3c1   :  { %v868_v34 = vsub.f32 %v3065_v55, %v839_v59  ;;  %v835_v48 = vpop.xlane.xlu0 %834 }
 0x3c2   :  { %v866_v37 = vsub.f32 %v3067_v31, %v835_v48 }
 0x3c3   :  { %v886_v51 = vmul.f32 1.442695, %v868_v34 }
 0x3c4   :  { %v882_v23 = vmul.f32 1.442695, %v866_v37 }
 0x3c5   :  { %v837_v46 = vpop.xlane.xlu0 %836 }
 0x3c6   :  { %2396 = vpow2.f32 %v882_v23  ;;  %v867_v49 = vsub.f32 %v3074_v6, %v837_v46 }
 0x3c7   :  { %2398 = vpow2.f32 %v886_v51 }
 0x3c8   :  { %v884_v54 = vmul.f32 1.442695, %v867_v49 }
 0x3c9   :  { %v841_v30 = vpop.xlane.xlu0 %840 }
 0x3ca   :  { %2400 = vpow2.f32 %v884_v54  ;;  %v869_v45 = vsub.f32 %v3077_v63, %v841_v30 }
 0x3cc   :  { %v888_v53 = vmul.f32 1.442695, %v869_v45 }
 0x3cd   :  { %v843_v42 = vpop.xlane.xlu0 %842 }
 0x3ce   :  { %2402 = vpow2.f32 %v888_v53  ;;  %v870_v55 = vsub.f32 %v3080_v52, %v843_v42  ;;  %v2704_v42 = vmov 0.0  }
 0x3cf   :  { %2191 = vmatprep.subr.bf16.mxu0 %v2704_v42  ;;  %2207 = vmatprep.mubr.msk.bf16.mxu0 %vm2705_vm14, %v2704_v42 }
 0x3d0   :  { %v3136_v4 = vpop.eup %2396  ;;  %v890_v31 = vmul.f32 1.442695, %v870_v55 }
 0x3d1   :  { %v845_v35 = vpop.xlane.xlu0 %844  ;;  %914 = vadd.xlane.f32.xlu0 %v3136_v4  ;;  %v3140_v27 = vpop.eup %2398 }
 0x3d2   :  { %2404 = vpow2.f32 %v890_v31  ;;  %v871_v6 = vsub.f32 %v3086_v26, %v845_v35 }
 0x3d4   :  { %v3142_v38 = vpop.eup %2400  ;;  %v892_v33 = vmul.f32 1.442695, %v871_v6 }
 0x3d5   :  { %v847_v63 = vpop.xlane.xlu0 %846  ;;  %916 = vadd.xlane.f32.xlu1 %v3142_v38  ;;  %918 = vadd.xlane.f32.xlu0 %v3140_v27 }
 0x3d6   :  { %2406 = vpow2.f32 %v892_v33  ;;  %v872_v52 = vsub.f32 %v3095_v62, %v847_v63 }
 0x3d8   :  { %v3147_v2 = vpop.eup %2402  ;;  %v894_v39 = vmul.f32 1.442695, %v872_v52  ;;  %v2007_v52 = vld [vmem:[%s3673_s2 + $0x18] sm:$0xff] }
 0x3d9   :  { %v849_v61 = vpop.xlane.xlu0 %848  ;;  %920 = vadd.xlane.f32.xlu1 %v3147_v2 }
 0x3da   :  { %2408 = vpow2.f32 %v894_v39  ;;  %v873_v26 = vsub.f32 %v3101_v32, %v849_v61  ;;  %v3199_v39 = vld [vmem:[#allocation2 + $0x8] sm:$0xff]  ;;  %v81_v61 = vld [vmem:[%s3673_s2 + $0x10] sm:$0xff] }
 0x3db   :  { %v861_v32 = vpop.xlane.xlu1 %860 }
 0x3dc   :  { %v3151_v56 = vpop.eup %2404  ;;  %v896_v44 = vmul.f32 1.442695, %v873_v26  ;;  %v879_v37 = vsub.f32 %v3104_v60, %v861_v32 }
 0x3dd   :  { %v851_v43 = vpop.xlane.xlu0 %850  ;;  %922 = vadd.xlane.f32.xlu0 %v3151_v56 }
 0x3de   :  { %2410 = vpow2.f32 %v896_v44  ;;  %v874_v58 = vsub.f32 %v3106_v29, %v851_v43  ;;  %v908_v54 = vmul.f32 1.442695, %v879_v37 }
 0x3df   :  { %v865_v51 = vpop.xlane.xlu1 %864 }
 0x3e0   :  { %v3155_v7 = vpop.eup %2406  ;;  %v898_v62 = vmul.f32 1.442695, %v874_v58  ;;  %v881_v30 = vsub.f32 %v3109_v40, %v865_v51 }
 0x3e1   :  { %v853_v24 = vpop.xlane.xlu0 %852  ;;  %924 = vadd.xlane.f32.xlu1 %v3155_v7 }
 0x3e2   :  { %2412 = vpow2.f32 %v898_v62  ;;  %v875_v28 = vsub.f32 %v3115_v57, %v853_v24 }
 0x3e4   :  { %v3159_v5 = vpop.eup %2408  ;;  %v900_v36 = vmul.f32 1.442695, %v875_v28 }
 0x3e5   :  { %v855_v59 = vpop.xlane.xlu0 %854  ;;  %926 = vadd.xlane.f32.xlu0 %v3159_v5 }
 0x3e6   :  { %2414 = vpow2.f32 %v900_v36  ;;  %v876_v34 = vsub.f32 %v3119_v50, %v855_v59 }
 0x3e8   :  { %v3163_v29 = vpop.eup %2410  ;;  %v902_v48 = vmul.f32 1.442695, %v876_v34 }
 0x3e9   :  { %v857_v23 = vpop.xlane.xlu0 %856  ;;  %928 = vadd.xlane.f32.xlu1 %v3163_v29 }
 0x3ea   :  { %2416 = vpow2.f32 %v902_v48  ;;  %v877_v57 = vsub.f32 %v3122_v47, %v857_v23  ;;  %v912_v47 = vmul.f32 1.442695, %v881_v30 }
 0x3ec   :  { %v3168_v46 = vpop.eup %2412  ;;  %v904_v49 = vmul.f32 1.442695, %v877_v57 }
 0x3ed   :  { %v859_v45 = vpop.xlane.xlu0 %858  ;;  %930 = vadd.xlane.f32.xlu0 %v3168_v46 }
 0x3ee   :  { %2418 = vpow2.f32 %v904_v49  ;;  %v878_v50 = vsub.f32 %v3125_v41, %v859_v45 }
 0x3ef   :  { %2420 = vpow2.f32 %v908_v54 }
 0x3f0   :  { %v3173_v60 = vpop.eup %2414  ;;  %v906_v53 = vmul.f32 1.442695, %v878_v50 }
 0x3f1   :  { %v863_v55 = vpop.xlane.xlu0 %862  ;;  %932 = vadd.xlane.f32.xlu1 %v3173_v60 }
 0x3f2   :  { %2422 = vpow2.f32 %v906_v53  ;;  %v880_v40 = vsub.f32 %v3128_v3, %v863_v55 }
 0x3f3   :  { %2424 = vpow2.f32 %v912_v47 }
 0x3f4   :  { %v3178_v31 = vpop.eup %2416  ;;  %v910_v35 = vmul.f32 1.442695, %v880_v40 }
 0x3f5   :  { %934 = vadd.xlane.f32.xlu0 %v3178_v31 }
 0x3f6   :  { %2426 = vpow2.f32 %v910_v35 }
 0x3f8   :  { %v3181_v41 = vpop.eup %2418 }
 0x3f9   :  { %936 = vadd.xlane.f32.xlu1 %v3181_v41  ;;  %v3184_v6 = vpop.eup %2420 }
 0x3fc   :  { %v3186_v33 = vpop.eup %2422 }
 0x3fd   :  { %938 = vadd.xlane.f32.xlu0 %v3186_v33  ;;  %940 = vadd.xlane.f32.xlu1 %v3184_v6  ;;  %v3190_v3 = vpop.eup %2424 }
 0x400   :  { %v3192_v63 = vpop.eup %2426 }
 0x401   :  { %942 = vadd.xlane.f32.xlu0 %v3192_v63  ;;  %944 = vadd.xlane.f32.xlu1 %v3190_v3 }
 0x412   :  { %1045 = vperm.xlu1 %2362, %v2007_v52  }
 0x416   :  { %1133 = vperm.xlu1 %2362, %v3199_v39  }
 0x417   :  { %94 = vperm.xlu0 %2350, %v81_v61  }
 0x41a   :  { %2364 = vset.pattern.permute.xlu1 %v2654_v8 }
 0x41b   :  { %1155 = vperm.xlu1 %2364, %v3199_v39   ;;  %2363 = vset.pattern.permute.xlu0 %v2652_v0 }
 0x41c   :  { %1144 = vperm.xlu0 %2363, %v3199_v39  }
 0x41f   :  { %2365 = vset.pattern.permute.xlu1 %v2657_v11 }
 0x420   :  { %1166 = vperm.xlu1 %2365, %v3199_v39   ;;  %2377 = vset.pattern.permute.xlu0 %v2660_v14 }
 0x421   :  { %1294 = vperm.xlu0 %2377, %v3199_v39  }
 0x424   :  { %2366 = vset.pattern.permute.xlu1 %v2655_v9 }
 0x425   :  { %1177 = vperm.xlu1 %2366, %v3199_v39   ;;  %2389 = vset.pattern.permute.xlu0 %v2653_v1 }
 0x429   :  { %2367 = vset.pattern.permute.xlu1 %v2656_v10 }
 0x42a   :  { %1188 = vperm.xlu1 %2367, %v3199_v39  }
 0x42e   :  { %2368 = vset.pattern.permute.xlu1 %v2658_v12 }
 0x42f   :  { %1199 = vperm.xlu1 %2368, %v3199_v39  }
 0x433   :  { %2369 = vset.pattern.permute.xlu1 %v2659_v13 }
 0x434   :  { %1210 = vperm.xlu1 %2369, %v3199_v39  }
 0x438   :  { %2370 = vset.pattern.permute.xlu1 %v2661_v15 }
 0x439   :  { %1221 = vperm.xlu1 %2370, %v3199_v39  }
 0x43d   :  { %2371 = vset.pattern.permute.xlu1 %v2662_v16 }
 0x43e   :  { %1232 = vperm.xlu1 %2371, %v3199_v39  }
 0x442   :  { %2372 = vset.pattern.permute.xlu1 %v2663_v17 }
 0x443   :  { %1243 = vperm.xlu1 %2372, %v3199_v39  }
 0x447   :  { %2373 = vset.pattern.permute.xlu1 %v2664_v18 }
 0x448   :  { %1254 = vperm.xlu1 %2373, %v3199_v39  }
 0x44c   :  { %2374 = vset.pattern.permute.xlu1 %v2665_v19 }
 0x44d   :  { %1265 = vperm.xlu1 %2374, %v3199_v39  }
 0x451   :  { %2375 = vset.pattern.permute.xlu1 %v2666_v20 }
 0x452   :  { %1272 = vperm.xlu1 %2375, %v3199_v39  }
 0x456   :  { %2376 = vset.pattern.permute.xlu1 %v2667_v21 }
 0x457   :  { %1283 = vperm.xlu1 %2376, %v3199_v39  }
 0x45b   :  { %2378 = vset.pattern.permute.xlu1 %v2668_v22 }
 0x45e   :  { %v915_v0 = vpop.xlane.xlu0 %914 }
 0x45f   :  { %2428 = vrcp.f32 %v915_v0 }
 0x462   :  { %v917_v8 = vpop.xlane.xlu1 %916  ;;  %v919_v10 = vpop.xlane.xlu0 %918 }
 0x463   :  { %2430 = vrcp.f32 %v917_v8 }
 0x466   :  { %v921_v9 = vpop.xlane.xlu1 %920 }
 0x467   :  { %2432 = vrcp.f32 %v921_v9 }
 0x468   :  { %2434 = vrcp.f32 %v919_v10 }
 0x469   :  { %v2429_v11 = vpop.eup %2428 }
 0x46a   :  { %v923_v14 = vpop.xlane.xlu0 %922  ;;  %v962_v15 = vmul.f32 %v2429_v11, %v3136_v4 }
 0x46d   :  { %v2431_v12 = vpop.eup %2430 }
 0x46e   :  { %v925_v13 = vpop.xlane.xlu1 %924  ;;  %v963_v16 = vmul.f32 %v2431_v12, %v3142_v38 }
 0x46f   :  { %2436 = vrcp.f32 %v925_v13 }
 0x470   :  { %v979_v17 = vpack.c.bf16 %v963_v16, %v962_v15  ;;  %2438 = vrcp.f32 %v923_v14  ;;  %v2394_v15 = vld [vmem:[%s3672_s1 + $0x14] ss:$0 sps:$4 sm:$0xff]  }
 0x471   :  { %v2433_v18 = vpop.eup %2432 }
 0x472   :  { %2192 = vmatpush3.bf16.xpose.msra.mxu0 %v979_v17  ;;  %v2435_v19 = vpop.eup %2434  ;;  %v965_v20 = vmul.f32 %v2433_v18, %v3147_v2  ;;  %v927_v22 = vpop.xlane.xlu0 %926 }
 0x473   :  { %2193 = vmatprep.subr.bf16.mxu0 %v2704_v42  ;;  %v964_v26 = vmul.f32 %v2435_v19, %v3140_v27 }
 0x475   :  { %v980_v44 = vpack.c.bf16 %v965_v20, %v964_v26  ;;  %v3715_v26 = vmov 18  }
 0x476   :  { %v929_v21 = vpop.xlane.xlu1 %928 }
 0x477   :  { %2440 = vrcp.f32 %v929_v21 }
 0x478   :  { %2442 = vrcp.f32 %v927_v22  ;;  %v3714_v22 = vmov 17  }
 0x479   :  { %v2437_v43 = vpop.eup %2436 }
 0x47a   :  { %2194 = vmatpush3.bf16.xpose.msra.mxu0 %v980_v44  ;;  %v2439_v4 = vpop.eup %2438  ;;  %v967_v38 = vmul.f32 %v2437_v43, %v3155_v7  ;;  %v931_v62 = vpop.xlane.xlu0 %930  ;;  %v3716_v44 = vmov 19   ;;  %v3717_v43 = vmov 20  }
 0x47b   :  { %2195 = vmatprep.subr.bf16.mxu0 %v2704_v42  ;;  %v966_v24 = vmul.f32 %v2439_v4, %v3151_v56  ;;  %v3718_v4 = vmov 21  }
 0x47d   :  { %v981_v2 = vpack.c.bf16 %v967_v38, %v966_v24  ;;  %v3719_v38 = vmov 22   ;;  %v3721_v24 = vmov 24  }
 0x47e   :  { %v933_v58 = vpop.xlane.xlu1 %932 }
 0x47f   :  { %2444 = vrcp.f32 %v933_v58  ;;  %v3720_v58 = vmov 23  }
 0x480   :  { %2446 = vrcp.f32 %v931_v62 }
 0x481   :  { %v2441_v28 = vpop.eup %2440 }
 0x482   :  { %2196 = vmatpush3.bf16.xpose.msra.mxu0 %v981_v2  ;;  %v2443_v27 = vpop.eup %2442  ;;  %v969_v32 = vmul.f32 %v2441_v28, %v3163_v29  ;;  %v935_v59 = vpop.xlane.xlu0 %934  ;;  %v3722_v28 = vmov 25  }
 0x483   :  { %2197 = vmatprep.subr.bf16.mxu0 %v2704_v42  ;;  %v968_v34 = vmul.f32 %v2443_v27, %v3159_v5 }
 0x485   :  { %v982_v7 = vpack.c.bf16 %v969_v32, %v968_v34  ;;  %v3723_v32 = vmov 26  }
 0x486   :  { %v937_v36 = vpop.xlane.xlu1 %936 }
 0x487   :  { %2448 = vrcp.f32 %v937_v36 }
 0x488   :  { %2450 = vrcp.f32 %v935_v59  ;;  %v2008_v59 = vld [vmem:[%s3673_s2 + $0x20] sm:$0xff] }
 0x489   :  { %v2445_v48 = vpop.eup %2444 }
 0x48a   :  { %2198 = vmatpush3.bf16.xpose.msra.mxu0 %v982_v7  ;;  %v2447_v56 = vpop.eup %2446  ;;  %v939_v37 = vpop.xlane.xlu0 %938  ;;  %v971_v51 = vmul.f32 %v2445_v48, %v3173_v60  ;;  %v2014_v48 = vld [vmem:[%s3675_s4 + $0x8] sm:$0xff] }
 0x48b   :  { %2199 = vmatprep.subr.bf16.mxu0 %v2704_v42  ;;  %v941_v23 = vpop.xlane.xlu1 %940  ;;  %2452 = vrcp.f32 %v939_v37  ;;  %v970_v57 = vmul.f32 %v2447_v56, %v3168_v46 }
 0x48c   :  { %2454 = vrcp.f32 %v941_v23 }
 0x48d   :  { %v983_v29 = vpack.c.bf16 %v971_v51, %v970_v57 }
 0x48e   :  { %v943_v54 = vpop.xlane.xlu0 %942 }
 0x48f   :  { %v945_v30 = vpop.xlane.xlu1 %944  ;;  %2456 = vrcp.f32 %v943_v54 }
 0x490   :  { %2458 = vrcp.f32 %v945_v30 }
 0x491   :  { %v2449_v49 = vpop.eup %2448 }
 0x492   :  { %2200 = vmatpush3.bf16.xpose.msra.mxu0 %v983_v29  ;;  %v2451_v5 = vpop.eup %2450  ;;  %v973_v45 = vmul.f32 %v2449_v49, %v3181_v41 }
 0x493   :  { %2201 = vmatprep.subr.bf16.mxu0 %v2704_v42  ;;  %v972_v50 = vmul.f32 %v2451_v5, %v3178_v31  ;;  %v1046_v17 = vpop.permute.xlu1 %1045 }
 0x495   :  { %v2453_v53 = vpop.eup %2452  ;;  %v984_v60 = vpack.c.bf16 %v973_v45, %v972_v50 }
 0x496   :  { %v2455_v47 = vpop.eup %2454  ;;  %v974_v46 = vmul.f32 %v2453_v53, %v3186_v33  ;;  %v95_v61 = vpop.permute.xlu0 %94 }
 0x497   :  { %v975_v55 = vmul.f32 %v2455_v47, %v3184_v6  ;;  %v159_v8 = vadd.f32 %v2862_v25, %v95_v61  ;;  %v2393_v6 = vld [vmem:[%s3672_s1 + $0xc] sm:$0xff]   ;;  %v1134_v62 = vpop.permute.xlu1 %1133 }
 0x498   :  { %2213 = vmatprep.mubr.msk.bf16.mxu1 %vm105_vm1, %v2393_v6 }
 0x499   :  { %v2457_v40 = vpop.eup %2456  ;;  %v985_v35 = vpack.c.bf16 %v975_v55, %v974_v46  ;;  %v978_v33 = vpack.c.bf16 %v159_v8, %v159_v8 }
 0x49a   :  { %2202 = vmatpush3.bf16.xpose.msra.mxu0 %v984_v60  ;;  %v2459_v52 = vpop.eup %2458  ;;  %v976_v41 = vmul.f32 %v2457_v40, %v3192_v63 }
 0x49b   :  { %2203 = vmatprep.subr.bf16.mxu0 %v2704_v42  ;;  %v977_v31 = vmul.f32 %v2459_v52, %v3190_v3  ;;  %v1031_v3 = vld [vmem:[%s3671_s0 + $0x4] sm:$0xf]  ;;  %v1156_v2 = vpop.permute.xlu1 %1155  ;;  %s3724_s0 = smov 107   ;;  %v1145_v23 = vpop.permute.xlu0 %1144 }
 0x49c   :  { %v1032_v63 = vunpack.c.l.bf16 %v1031_v3 }
 0x49d   :  { %v986_v0 = vpack.c.bf16 %v977_v31, %v976_v41  ;;  %v2525_v41 = vld [vmem:[#allocation5] ss:$0 sm:$0xff] }
 0x49f   :  { %v1167_v27 = vpop.permute.xlu1 %1166 }
 0x4a0   :  { %v3382_v57 = vpop.permute.xlu0 %1294 }
 0x4a2   :  { %2204 = vmatpush3.bf16.xpose.msra.mxu0 %v985_v35  ;;  %v2524_v35 = vld [vmem:[#allocation5 + $0x1] ss:$0 sm:$0xff] }
 0x4a3   :  { %2205 = vmatprep.subr.bf16.mxu0 %v2704_v42 }
 0x4a4   :  { %v1178_v36 = vpop.permute.xlu1 %1177 }
 0x4a9   :  { %v3353_v34 = vpop.permute.xlu1 %1188 }
 0x4aa   :  { %2206 = vmatpush3.bf16.xpose.msra.mxu0 %v986_v0  ;;  %v2526_v0 = vld [vmem:[#allocation5 + $0x2] ss:$0 sm:$0xff] }
 0x4ab   :  { %2255 = vmatprep.subr.bf16.mxu0 %v2704_v42 }
 0x4b1   :  { %2208 = vmatmul.mubr.bf16.vlgmr.msra.gmra.mrb[16].mxu0 %v978_v33 }
 0x4b2   :  { %2257 = vmatprep.mubr.msk.bf16.mxu0 %vm2705_vm14, %v2704_v42 }
 0x584   :  { %v3273_v9 = vpop.f32.mrb[16].mxu0 }
 0x585   :  { %v1033_v25 = vadd.f32 %v1032_v63, %v3273_v9  ;;  %v2209_v10 = vpop.f32.mrb[17].mxu0 }
 0x586   :  { %v1024_v11 = vpop.f32.mrb[18].mxu0 }
 0x587   :  { %v1038_v12 = vpack.c.bf16 %v1033_v25, %v1033_v25  ;;  %v2210_v13 = vpop.f32.mrb[19].mxu0  ;;  %v2527_v25 = vld [vmem:[#allocation5 + $0x3] ss:$0 sm:$0xff] }
 0x589   :  { %2269 = vmatprep.subr.msk.bf16.mxu1 %vm112_vm0, %v1038_v12  ;;  %v1073_v14 = vsel %vm112_vm0, %v1038_v12, 0 }
 0x58a   :  { %2212 = vmatpush3.bf16.msra.mxu1 %v1073_v14  ;;  %v2528_v14 = vld [vmem:[#allocation5 + $0x4] ss:$0 sm:$0xff] }
 0x58d   :  { %2214 = vmatmul.mubr.msk.bf16.vlgmr.msra.gmra.mrb[4].mxu1 %vm105_vm1, %v2394_v15 }
 0x660   :  { %v3282_v16 = vpop.f32.mrb[4].mxu1 }
 0x661   :  { %v1109_v18 = vpop.f32.mrb[5].mxu1 }
 0x662   :  { %v3284_v19 = vadd.f32 %v1109_v18, %v1046_v17  ;;  %v2216_v20 = vpop.f32.mrb[6].mxu1 }
 0x663   :  { %v3286_v21 = vpop.f32.mrb[7].mxu1 }
 0x664   :  { %1138 = vrot.lane.b32.xlu0 %v3284_v19, %s2670_s14  ;;  %1126 = vrot.lane.b32.xlu1 %v3284_v19, %s2671_s15  ;;  %s3725_s14 = smov 116   ;;  %s3726_s15 = smov 115  }
 0x668   :  { %1149 = vrot.lane.b32.xlu0 %v3284_v19, %s2672_s16  ;;  %1305 = vperm.xlu1 %2378, %v3199_v39   ;;  %s3727_s16 = smov 113  }
 0x66c   :  { %1160 = vrot.lane.b32.xlu0 %v3284_v19, %s2673_s17  ;;  %2379 = vset.pattern.permute.xlu1 %v3714_v22  ;;  %s3728_s17 = smov 112  }
 0x66d   :  { %1316 = vperm.xlu1 %2379, %v3199_v39  }
 0x670   :  { %1171 = vrot.lane.b32.xlu0 %v3284_v19, %s2674_s18  ;;  %s3729_s18 = smov 111  }
 0x671   :  { %2380 = vset.pattern.permute.xlu1 %v3715_v26  ;;  %v2529_v26 = vld [vmem:[#allocation5 + $0x5] ss:$0 sm:$0xff] }
 0x672   :  { %1327 = vperm.xlu1 %2380, %v3199_v39  }
 0x674   :  { %1182 = vrot.lane.b32.xlu0 %v3284_v19, %s2676_s19  ;;  %s3730_s19 = smov 109  }
 0x676   :  { %2381 = vset.pattern.permute.xlu1 %v3716_v44 }
 0x677   :  { %1338 = vperm.xlu1 %2381, %v3199_v39  }
 0x678   :  { %1193 = vrot.lane.b32.xlu0 %v3284_v19, %s2677_s20  ;;  %s3731_s20 = smov 108  }
 0x67b   :  { %2382 = vset.pattern.permute.xlu1 %v3717_v43 }
 0x67c   :  { %1204 = vrot.lane.b32.xlu0 %v3284_v19, %s2679_s23  ;;  %1349 = vperm.xlu1 %2382, %v3199_v39  }
 0x680   :  { %1215 = vrot.lane.b32.xlu0 %v3284_v19, %s2681_s24  ;;  %2383 = vset.pattern.permute.xlu1 %v3718_v4 }
 0x681   :  { %1360 = vperm.xlu1 %2383, %v3199_v39  }
 0x684   :  { %1226 = vrot.lane.b32.xlu0 %v3284_v19, %s2683_s25 }
 0x685   :  { %1277 = vrot.lane.b32.xlu1 %v3284_v19, %s2684_s3 }
 0x686   :  { %2384 = vset.pattern.permute.xlu1 %v3719_v38 }
 0x688   :  { %1237 = vrot.lane.b32.xlu0 %v3284_v19, %s2651_s12 }
 0x689   :  { %1371 = vperm.xlu1 %2384, %v3199_v39  }
 0x68c   :  { %1248 = vrot.lane.b32.xlu0 %v3284_v19, %s2686_s26 }
 0x68d   :  { %2385 = vset.pattern.permute.xlu1 %v3720_v58 }
 0x68e   :  { %1382 = vperm.xlu1 %2385, %v3199_v39  }
 0x690   :  { %1259 = vrot.lane.b32.xlu0 %v3284_v19, %s2688_s27 }
 0x692   :  { %2386 = vset.pattern.permute.xlu1 %v3721_v24 }
 0x693   :  { %1393 = vperm.xlu1 %2386, %v3199_v39  }
 0x694   :  { %1288 = vrot.lane.b32.xlu0 %v3284_v19, %s2689_s28 }
 0x697   :  { %2387 = vset.pattern.permute.xlu1 %v3722_v28 }
 0x698   :  { %1299 = vrot.lane.b32.xlu0 %v3284_v19, %s2691_s29  ;;  %1404 = vperm.xlu1 %2387, %v3199_v39  }
 0x69c   :  { %1310 = vrot.lane.b32.xlu0 %v3284_v19, %s2693_s7  ;;  %2388 = vset.pattern.permute.xlu1 %v3723_v32 }
 0x69d   :  { %1415 = vperm.xlu1 %2388, %v3199_v39   ;;  %v3359_v39 = vpop.permute.xlu1 %1199 }
 0x6a0   :  { %1321 = vrot.lane.b32.xlu0 %v3284_v19, %s2695_s30 }
 0x6a1   :  { %1409 = vrot.lane.b32.xlu1 %v3284_v19, %s3724_s0 }
 0x6a2   :  { %2390 = vset.pattern.permute.xlu1 %v2653_v1  ;;  %v3363_v1 = vpop.permute.xlu1 %1210 }
 0x6a4   :  { %1332 = vrot.lane.b32.xlu0 %v3284_v19, %s3725_s14 }
 0x6a5   :  { %1050 = vperm.xlu1 %2390, %v2008_v59  }
 0x6a6   :  { %v3369_v7 = vpop.permute.xlu1 %1221 }
 0x6a8   :  { %1343 = vrot.lane.b32.xlu0 %v3284_v19, %s3726_s15 }
 0x6aa   :  { %v3376_v56 = vpop.permute.xlu1 %1232 }
 0x6ac   :  { %1354 = vrot.lane.b32.xlu0 %v3284_v19, %s3727_s16 }
 0x6ae   :  { %v3378_v37 = vpop.permute.xlu1 %1243 }
 0x6b0   :  { %1365 = vrot.lane.b32.xlu0 %v3284_v19, %s3728_s17 }
 0x6b2   :  { %v3380_v51 = vpop.permute.xlu1 %1254 }
 0x6b4   :  { %1376 = vrot.lane.b32.xlu0 %v3284_v19, %s3729_s18 }
 0x6b6   :  { %v3384_v29 = vpop.permute.xlu1 %1265 }
 0x6b8   :  { %1387 = vrot.lane.b32.xlu0 %v3284_v19, %s3730_s19 }
 0x6ba   :  { %v3386_v5 = vpop.permute.xlu1 %1272 }
 0x6bc   :  { %1398 = vrot.lane.b32.xlu0 %v3284_v19, %s3731_s20 }
 0x6be   :  { %v3388_v30 = vpop.permute.xlu1 %1283 }
 0x6c0   :  { %1424 = vperm.xlu0 %2389, %v2014_v48   ;;  %v2531_v48 = vld [vmem:[#allocation5 + $0x7] ss:$0 sm:$0xff] }
 0x6d6   :  { %v1139_v49 = vpop.permute.xlu0 %1138  ;;  %v1127_v50 = vpop.permute.xlu1 %1126 }
 0x6d7   :  { %v1141_v60 = vsel %vm187_vm2, 0.0, %v1139_v49  ;;  %v1129_v47 = vsel %vm169_vm3, 0.0, %v1127_v50  ;;  %vm3732_vm2 = vcmask 31744   ;;  %vm3733_vm3 = vcmask 23552  }
 0x6d8   :  { %v1142_v52 = vmul.f32 %v2524_v35, %v1141_v60  ;;  %v1130_v31 = vmul.f32 %v2525_v41, %v1129_v47 }
 0x6da   :  { %v1150_v54 = vpop.permute.xlu0 %1149  ;;  %v1147_v3 = vmul.f32 %v1145_v23, %v1142_v52  ;;  %v1136_v63 = vmul.f32 %v1134_v62, %v1130_v31  ;;  %v2530_v62 = vld [vmem:[#allocation5 + $0x6] ss:$0 sm:$0xff] }
 0x6db   :  { %v1152_v55 = vsel %vm204_vm4, 0.0, %v1150_v54  ;;  %v2532_v54 = vld [vmem:[#allocation5 + $0x8] ss:$0 sm:$0xff]  ;;  %vm3734_vm4 = vcmask 7168  }
 0x6dc   :  { %v1153_v8 = vmul.f32 %v2526_v0, %v1152_v55  ;;  %v1148_v20 = vadd.f32 %v1147_v3, %v1136_v63  ;;  %v2534_v0 = vld [vmem:[#allocation5 + $0xa] ss:$0 sm:$0xff] }
 0x6de   :  { %v1161_v45 = vpop.permute.xlu0 %1160  ;;  %v1158_v13 = vmul.f32 %v1156_v2, %v1153_v8 }
 0x6df   :  { %v1163_v61 = vsel %vm221_vm5, 0.0, %v1161_v45  ;;  %vm3735_vm5 = vcmask 1039360  }
 0x6e0   :  { %v1164_v10 = vmul.f32 %v2527_v25, %v1163_v61  ;;  %v1159_v38 = vadd.f32 %v1158_v13, %v1148_v20  ;;  %v2535_v25 = vld [vmem:[#allocation5 + $0xb] ss:$0 sm:$0xff]  ;;  %v2537_v20 = vld [vmem:[#allocation5 + $0xc] ss:$0 sm:$0xff] }
 0x6e2   :  { %v1172_v53 = vpop.permute.xlu0 %1171  ;;  %v1169_v22 = vmul.f32 %v1167_v27, %v1164_v10 }
 0x6e3   :  { %v1174_v6 = vsel %vm238_vm6, 0.0, %v1172_v53  ;;  %vm3736_vm6 = vcmask 1022976  }
 0x6e4   :  { %v1175_v15 = vmul.f32 %v2528_v14, %v1174_v6  ;;  %v1170_v32 = vadd.f32 %v1169_v22, %v1159_v38 }
 0x6e6   :  { %v1183_v46 = vpop.permute.xlu0 %1182  ;;  %v1180_v58 = vmul.f32 %v1178_v36, %v1175_v15 }
 0x6e7   :  { %v3393_v40 = vpop.permute.xlu1 %1305  ;;  %v1185_v12 = vsel %vm255_vm7, 0.0, %v1183_v46  ;;  %v2533_v46 = vld [vmem:[#allocation5 + $0x9] ss:$0 sm:$0xff]  ;;  %vm3737_vm7 = vcmask 1014784  }
 0x6e8   :  { %v1186_v44 = vmul.f32 %v2529_v26, %v1185_v12  ;;  %v1181_v49 = vadd.f32 %v1180_v58, %v1170_v32 }
 0x6ea   :  { %v1194_v33 = vpop.permute.xlu0 %1193  ;;  %v1191_v59 = vmul.f32 %v3353_v34, %v1186_v44 }
 0x6eb   :  { %v1196_v18 = vsel %vm272_vm8, 0.0, %v1194_v33  ;;  %vm3738_vm8 = vcmask 1006592  }
 0x6ec   :  { %v3397_v11 = vpop.permute.xlu1 %1316  ;;  %v1197_v24 = vmul.f32 %v2530_v62, %v1196_v18  ;;  %v1192_v60 = vadd.f32 %v1191_v59, %v1181_v49 }
 0x6ee   :  { %v1205_v17 = vpop.permute.xlu0 %1204  ;;  %v1202_v27 = vmul.f32 %v3359_v39, %v1197_v24 }
 0x6ef   :  { %v1207_v43 = vsel %vm289_vm9, 0.0, %v1205_v17  ;;  %vm3739_vm9 = vcmask 957440  }
 0x6f0   :  { %v1208_v23 = vmul.f32 %v2531_v48, %v1207_v43  ;;  %v1203_v35 = vadd.f32 %v1202_v27, %v1192_v60  ;;  %v2538_v43 = vld [vmem:[#allocation5 + $0xe] ss:$0 sm:$0xff] }
 0x6f1   :  { %v3402_v4 = vpop.permute.xlu1 %1327 }
 0x6f2   :  { %v1216_v28 = vpop.permute.xlu0 %1215  ;;  %v1213_v47 = vmul.f32 %v3363_v1, %v1208_v23 }
 0x6f3   :  { %v1218_v2 = vsel %vm306_vm10, 0.0, %v1216_v28  ;;  %v2539_v28 = vld [vmem:[#allocation5 + $0xf] ss:$0 sm:$0xff]  ;;  %vm3740_vm10 = vcmask 949248  }
 0x6f4   :  { %v1219_v45 = vmul.f32 %v2532_v54, %v1218_v2  ;;  %v1214_v39 = vadd.f32 %v1213_v47, %v1203_v35  ;;  %v2540_v35 = vld [vmem:[#allocation5 + $0x10] ss:$0 sm:$0xff] }
 0x6f6   :  { %v1227_v50 = vpop.permute.xlu0 %1226  ;;  %v3407_v53 = vpop.permute.xlu1 %1338  ;;  %v1224_v34 = vmul.f32 %v3369_v7, %v1219_v45 }
 0x6f7   :  { %v1229_v36 = vsel %vm323_vm11, 0.0, %v1227_v50  ;;  %vm3741_vm11 = vcmask 941056  }
 0x6f8   :  { %v1230_v55 = vmul.f32 %v2533_v46, %v1229_v36  ;;  %v1225_v33 = vadd.f32 %v1224_v34, %v1214_v39 }
 0x6fa   :  { %v1238_v52 = vpop.permute.xlu0 %1237  ;;  %v1235_v61 = vmul.f32 %v3376_v56, %v1230_v55  ;;  %v2536_v56 = vld [vmem:[#allocation5 + $0xd] ss:$0 sm:$0xff] }
 0x6fb   :  { %v1240_v41 = vsel %vm3732_vm2, 0.0, %v1238_v52  ;;  %v3413_v31 = vpop.permute.xlu1 %1349  ;;  %v1270_v17 = vmul.f32 %v2536_v56, %v3284_v19  ;;  %vm3742_vm2 = vcmask 924672  }
 0x6fc   :  { %v1241_v8 = vmul.f32 %v2534_v0, %v1240_v41  ;;  %v1236_v63 = vadd.f32 %v1235_v61, %v1225_v33  ;;  %v2541_v41 = vld [vmem:[#allocation5 + $0x11] ss:$0 sm:$0xff]  ;;  %v2542_v33 = vld [vmem:[#allocation5 + $0x12] ss:$0 sm:$0xff] }
 0x6fe   :  { %v1246_v6 = vmul.f32 %v3378_v37, %v1241_v8  ;;  %v1249_v3 = vpop.permute.xlu0 %1248 }
 0x6ff   :  { %v1251_v1 = vsel %vm3733_vm3, 0.0, %v1249_v3  ;;  %vm3743_vm3 = vcmask 908288  }
 0x700   :  { %v1252_v10 = vmul.f32 %v2535_v25, %v1251_v1  ;;  %v3418_v7 = vpop.permute.xlu1 %1360  ;;  %v1247_v12 = vadd.f32 %v1246_v6, %v1236_v63 }
 0x702   :  { %v1257_v13 = vmul.f32 %v3380_v51, %v1252_v10  ;;  %v1260_v14 = vpop.permute.xlu0 %1259  ;;  %v1275_v51 = vmul.f32 %v3386_v5, %v1270_v17  ;;  %v2543_v10 = vld [vmem:[#allocation5 + $0x13] ss:$0 sm:$0xff] }
 0x703   :  { %v1262_v15 = vsel %vm3734_vm4, 0.0, %v1260_v14 }
 0x704   :  { %v1258_v18 = vadd.f32 %v1257_v13, %v1247_v12  ;;  %v1263_v37 = vmul.f32 %v2537_v20, %v1262_v15  ;;  %v1278_v22 = vpop.permute.xlu1 %1277 }
 0x705   :  { %v1280_v26 = vsel %vm3735_vm5, %v1278_v22, 0.0  ;;  %v2545_v22 = vld [vmem:[#allocation5 + $0x15] ss:$0 sm:$0xff] }
 0x706   :  { %v1268_v44 = vmul.f32 %v3384_v29, %v1263_v37  ;;  %v1281_v38 = vmul.f32 %v2538_v43, %v1280_v26  ;;  %v1289_v58 = vpop.permute.xlu0 %1288 }
 0x707   :  { %v1291_v62 = vsel %vm3736_vm6, %v1289_v58, 0.0  ;;  %v2546_v58 = vld [vmem:[#allocation5 + $0x16] ss:$0 sm:$0xff] }
 0x708   :  { %v1269_v24 = vadd.f32 %v1268_v44, %v1258_v18  ;;  %v1292_v2 = vmul.f32 %v2539_v28, %v1291_v62  ;;  %v3427_v32 = vpop.permute.xlu1 %1371  ;;  %v1286_v59 = vmul.f32 %v3388_v30, %v1281_v38  ;;  %v2544_v18 = vld [vmem:[#allocation5 + $0x14] ss:$0 sm:$0xff] }
 0x70a   :  { %v1276_v19 = vadd.f32 %v1275_v51, %v1269_v24  ;;  %v1300_v48 = vpop.permute.xlu0 %1299  ;;  %v1297_v49 = vmul.f32 %v3382_v57, %v1292_v2  ;;  %v2547_v2 = vld [vmem:[#allocation5 + $0x17] ss:$0 sm:$0xff] }
 0x70b   :  { %v1302_v46 = vsel %vm3737_vm7, %v1300_v48, 0.0 }
 0x70c   :  { %v1287_v23 = vadd.f32 %v1286_v59, %v1276_v19  ;;  %v1303_v57 = vmul.f32 %v2540_v35, %v1302_v46  ;;  %v2550_v35 = vld [vmem:[#allocation5 + $0x1a] ss:$0 sm:$0xff] }
 0x70d   :  { %v3431_v29 = vpop.permute.xlu1 %1382 }
 0x70e   :  { %v1298_v27 = vadd.f32 %v1297_v49, %v1287_v23  ;;  %v1311_v54 = vpop.permute.xlu0 %1310  ;;  %v1308_v8 = vmul.f32 %v3393_v40, %v1303_v57  ;;  %v2548_v49 = vld [vmem:[#allocation5 + $0x18] ss:$0 sm:$0xff] }
 0x70f   :  { %v1313_v55 = vsel %vm3738_vm8, %v1311_v54, 0.0 }
 0x710   :  { %v1314_v39 = vmul.f32 %v2541_v41, %v1313_v55  ;;  %v1309_v56 = vadd.f32 %v1308_v8, %v1298_v27 }
 0x712   :  { %v1322_v45 = vpop.permute.xlu0 %1321  ;;  %v3433_v50 = vpop.permute.xlu1 %1393  ;;  %v1319_v25 = vmul.f32 %v3397_v11, %v1314_v39 }
 0x713   :  { %v1324_v52 = vsel %vm3739_vm9, %v1322_v45, 0.0  ;;  %v2549_v45 = vld [vmem:[#allocation5 + $0x19] ss:$0 sm:$0xff] }
 0x714   :  { %v1325_v6 = vmul.f32 %v2542_v33, %v1324_v52 }
 0x716   :  { %v1333_v5 = vpop.permute.xlu0 %1332  ;;  %v1330_v17 = vmul.f32 %v3402_v4, %v1325_v6 }
 0x717   :  { %v3435_v36 = vpop.permute.xlu1 %1404  ;;  %v1335_v0 = vsel %vm3740_vm10, %v1333_v5, 0.0 }
 0x718   :  { %v1336_v12 = vmul.f32 %v2543_v10, %v1335_v0 }
 0x71a   :  { %v1344_v60 = vpop.permute.xlu0 %1343  ;;  %v1341_v11 = vmul.f32 %v3407_v53, %v1336_v12 }
 0x71b   :  { %v1346_v1 = vsel %vm3741_vm11, %v1344_v60, 0.0 }
 0x71c   :  { %v3437_v47 = vpop.permute.xlu1 %1415  ;;  %v1347_v40 = vmul.f32 %v2544_v18, %v1346_v1  ;;  %v2114_v1 = vld [vmem:[%s3677_s6 + $0x48] sm:$0xff]  }
 0x71e   :  { %v1355_v30 = vpop.permute.xlu0 %1354  ;;  %v1352_v38 = vmul.f32 %v3413_v31, %v1347_v40 }
 0x71f   :  { %v1357_v14 = vsel %vm3742_vm2, %v1355_v30, 0.0 }
 0x720   :  { %v1410_v34 = vpop.permute.xlu1 %1409  ;;  %v1358_v26 = vmul.f32 %v2545_v22, %v1357_v14  ;;  %v2081_v22 = vunpack.c.h.bf16 %v2114_v1 }
 0x722   :  { %v1366_v61 = vpop.permute.xlu0 %1365  ;;  %v1363_v28 = vmul.f32 %v3418_v7, %v1358_v26 }
 0x723   :  { %v1368_v20 = vsel %vm539_vm12, %v1366_v61, 0.0  ;;  %vm3744_vm12 = vcmask 875520  }
 0x724   :  { %v1051_v3 = vpop.permute.xlu1 %1050  ;;  %v1369_v62 = vmul.f32 %v2546_v58, %v1368_v20  ;;  %v1412_v7 = vsel %vm3744_vm12, %v1410_v34, 0.0 }
 0x725   :  { %v1113_v63 = vadd.f32 %v3286_v21, %v1051_v3  ;;  %v1320_v21 = vadd.f32 %v1319_v25, %v1309_v56  ;;  %v1413_v57 = vmul.f32 %v2550_v35, %v1412_v7  ;;  %v2080_v25 = vunpack.c.l.bf16 %v2114_v1 }
 0x726   :  { %v1377_v13 = vpop.permute.xlu0 %1376  ;;  %v1374_v23 = vmul.f32 %v3427_v32, %v1369_v62 }
 0x727   :  { %v1429_v15 = vpack.c.bf16 %v1113_v63, %v1113_v63  ;;  %v1379_v43 = vsel %vm3743_vm3, %v1377_v13, 0.0  ;;  %v1331_v4 = vadd.f32 %v1330_v17, %v1320_v21  ;;  %v1418_v32 = vmul.f32 %v3437_v47, %v1413_v57  ;;  %v2113_v63 = vld [vmem:[%s3677_s6 + $0x40] sm:$0xff]   ;;  %v2115_v21 = vld [vmem:[%s3677_s6 + $0x50] sm:$0xff]  }
 0x728   :  { %v1380_v53 = vmul.f32 %v2547_v2, %v1379_v43  ;;  %v2076_v12 = vunpack.c.l.bf16 %v2113_v63  ;;  %v2085_v2 = vunpack.c.h.bf16 %v2115_v21 }
 0x729   :  { %v1471_v37 = vsel %vm112_vm0, %v1429_v15, 0  ;;  %2270 = vmatprep.subr.msk.bf16.mxu1 %vm112_vm0, %v1429_v15  ;;  %v1342_v24 = vadd.f32 %v1341_v11, %v1331_v4 }
 0x72a   :  { %v1388_v44 = vpop.permute.xlu0 %1387  ;;  %2218 = vmatpush3.bf16.msra.mxu1 %v1471_v37  ;;  %v1385_v31 = vmul.f32 %v3431_v29, %v1380_v53  ;;  %v2077_v37 = vunpack.c.h.bf16 %v2113_v63 }
 0x72b   :  { %2235 = vmatprep.subr.bf16.mxu1 %v2704_v42  ;;  %v1390_v51 = vsel %vm573_vm13, %v1388_v44, 0.0  ;;  %v1353_v48 = vadd.f32 %v1352_v38, %v1342_v24  ;;  %v2084_v38 = vunpack.c.l.bf16 %v2115_v21 }
 0x72c   :  { %v1391_v27 = vmul.f32 %v2548_v49, %v1390_v51 }
 0x72d   :  { %v1364_v54 = vadd.f32 %v1363_v28, %v1353_v48 }
 0x72e   :  { %v1399_v19 = vpop.permute.xlu0 %1398  ;;  %v1396_v46 = vmul.f32 %v3433_v50, %v1391_v27 }
 0x72f   :  { %v1401_v59 = vsel %vm590_vm15, %v1399_v19, 0.0  ;;  %v1375_v60 = vadd.f32 %v1374_v23, %v1364_v54  ;;  %v2116_v19 = vld [vmem:[%s3677_s6 + $0x58] sm:$0xff]  }
 0x730   :  { %v1402_v5 = vmul.f32 %v2549_v45, %v1401_v59  ;;  %v2088_v54 = vunpack.c.l.bf16 %v2116_v19  ;;  %v2119_v45 = vld [vmem:[%s3677_s6 + $0x70] sm:$0xff]  }
 0x731   :  { %v1386_v30 = vadd.f32 %v1385_v31, %v1375_v60  ;;  %v2117_v31 = vld [vmem:[%s3677_s6 + $0x60] sm:$0xff]  }
 0x732   :  { %v1407_v55 = vmul.f32 %v3435_v36, %v1402_v5  ;;  %v2092_v57 = vunpack.c.l.bf16 %v2117_v31 }
 0x733   :  { %v1397_v52 = vadd.f32 %v1396_v46, %v1386_v30  ;;  %v2089_v46 = vunpack.c.h.bf16 %v2116_v19  ;;  %v2120_v30 = vld [vmem:[%s3677_s6 + $0x78] sm:$0xff]  }
 0x735   :  { %v1408_v41 = vadd.f32 %v1407_v55, %v1397_v52 }
 0x737   :  { %v1419_v39 = vadd.f32 %v1418_v32, %v1408_v41  ;;  %v2101_v41 = vunpack.c.h.bf16 %v2119_v45 }
 0x73f   :  { %v1425_v61 = vpop.permute.xlu0 %1424 }
 0x740   :  { %v1427_v0 = vadd.f32 %v1425_v61, %v1419_v39 }
 0x742   :  { %v1428_v29 = vpack.c.bf16 %v1427_v0, %v1427_v0  ;;  %v2105_v0 = vunpack.c.h.bf16 %v2120_v30 }
 0x744   :  { %1430 = vxpose.xlu1.c.b16.start.end [1/1] (short) %v1428_v29, 128 }
 0x7aa   :  { %v1438_v8 = vpop.trf.xlu1 }
 0x7ab   :  { %2219 = vmatprep.mubr.msk.bf16.mxu1 %vm105_vm1, %v1438_v8 }
 0x7ae   :  { %v1439_v50 = vpop.trf.xlu1 }
 0x7af   :  { %2220 = vmatmul.mubr.msk.bf16.vlgmr.msra.gmra.mrb[8].mxu1 %vm105_vm1, %v1439_v50 }
 0x7b2   :  { %v1440_v34 = vpop.trf.xlu1 }
 0x7b3   :  { %2223 = vmatprep.mubr.msk.bf16.mxu1 %vm105_vm1, %v1440_v34  ;;  %v2093_v34 = vunpack.c.h.bf16 %v2117_v31 }
 0x7b6   :  { %v1441_v36 = vpop.trf.xlu1 }
 0x7b7   :  { %2224 = vmatmul.mubr.msk.bf16.gmra.mrb[12].mxu1 %vm105_vm1, %v1441_v36 }
 0x7ba   :  { %v1442_v33 = vpop.trf.xlu1 }
 0x7bb   :  { %2227 = vmatprep.mubr.msk.bf16.mxu1 %vm105_vm1, %v1442_v33 }
 0x7be   :  { %v1443_v47 = vpop.trf.xlu1 }
 0x7bf   :  { %2228 = vmatmul.mubr.msk.bf16.gmra.mrb[16].mxu1 %vm105_vm1, %v1443_v47  ;;  %v2118_v47 = vld [vmem:[%s3677_s6 + $0x68] sm:$0xff]   ;;  %s2706_s6 = smov 120  }
 0x7c0   :  { %v2096_v1 = vunpack.c.l.bf16 %v2118_v47 }
 0x7c2   :  { %v1444_v6 = vpop.trf.xlu1 }
 0x7c3   :  { %2231 = vmatprep.mubr.msk.bf16.mxu1 %vm105_vm1, %v1444_v6 }
 0x7c6   :  { %v1445_v3 = vpop.trf.xlu1 }
 0x7c7   :  { %2232 = vmatmul.mubr.msk.bf16.gmra.mrb[20].mxu1 %vm105_vm1, %v1445_v3 }
 0x7c8   :  { %2251 = vmatprep.mubr.msk.bf16.mxu1 %vm2705_vm14, %v2704_v42 }
 0x882   :  { %v2221_v10 = vpop.f32.mrb[8].mxu1 }
 0x883   :  { %v1572_v13 = vmul.f32 0.35355338, %v2221_v10  ;;  %v1507_v14 = vpop.f32.mrb[9].mxu1  ;;  %v2097_v10 = vunpack.c.h.bf16 %v2118_v47 }
 0x884   :  { %v1570_v15 = vmul.f32 0.35355338, %v1507_v14  ;;  %v2222_v56 = vpop.f32.mrb[10].mxu1 }
 0x885   :  { %v3481_v17 = vadd.f32 %v2080_v25, %v1572_v13  ;;  %v1510_v18 = vpop.f32.mrb[11].mxu1  ;;  %v1573_v11 = vmul.f32 0.35355338, %v2222_v56  ;;  %v2100_v13 = vunpack.c.l.bf16 %v2119_v45  ;;  %v2104_v56 = vunpack.c.l.bf16 %v2120_v30 }
 0x886   :  { %v3483_v40 = vadd.f32 %v2076_v12, %v1570_v15  ;;  %v1571_v20 = vmul.f32 0.35355338, %v1510_v18 }
 0x887   :  { %1639 = vmax.xlane.f32.xlu1 %v3481_v17  ;;  %v3493_v51 = vadd.f32 %v2081_v22, %v1573_v11 }
 0x888   :  { %1635 = vmax.xlane.f32.xlu0 %v3483_v40  ;;  %v3490_v26 = vadd.f32 %v2077_v37, %v1571_v20 }
 0x88a   :  { %v2225_v44 = vpop.f32.mrb[12].mxu1 }
 0x88b   :  { %v1523_v43 = vpop.f32.mrb[13].mxu1  ;;  %v1576_v27 = vmul.f32 0.35355338, %v2225_v44 }
 0x88c   :  { %1637 = vmax.xlane.f32.xlu0 %v3490_v26  ;;  %v1574_v4 = vmul.f32 0.35355338, %v1523_v43  ;;  %v2226_v58 = vpop.f32.mrb[14].mxu1 }
 0x88d   :  { %v1526_v62 = vpop.f32.mrb[15].mxu1  ;;  %v3511_v5 = vadd.f32 %v2088_v54, %v1576_v27  ;;  %v1577_v60 = vmul.f32 0.35355338, %v2226_v58 }
 0x88e   :  { %v3495_v24 = vadd.f32 %v2084_v38, %v1574_v4  ;;  %v1575_v28 = vmul.f32 0.35355338, %v1526_v62 }
 0x88f   :  { %v3517_v39 = vadd.f32 %v2089_v46, %v1577_v60 }
 0x890   :  { %1641 = vmax.xlane.f32.xlu0 %v3493_v51  ;;  %v3501_v48 = vadd.f32 %v2085_v2, %v1575_v28 }
 0x892   :  { %v2229_v53 = vpop.f32.mrb[16].mxu1 }
 0x893   :  { %v1539_v59 = vpop.f32.mrb[17].mxu1  ;;  %v1580_v3 = vmul.f32 0.35355338, %v2229_v53 }
 0x894   :  { %1643 = vmax.xlane.f32.xlu0 %v3495_v24  ;;  %v2230_v23 = vpop.f32.mrb[18].mxu1  ;;  %v1578_v35 = vmul.f32 0.35355338, %v1539_v59 }
 0x895   :  { %v1542_v49 = vpop.f32.mrb[19].mxu1  ;;  %v3535_v63 = vadd.f32 %v2096_v1, %v1580_v3  ;;  %v1581_v25 = vmul.f32 0.35355338, %v2230_v23 }
 0x896   :  { %v3519_v8 = vadd.f32 %v2092_v57, %v1578_v35  ;;  %v1579_v50 = vmul.f32 0.35355338, %v1542_v49 }
 0x897   :  { %v3538_v14 = vadd.f32 %v2097_v10, %v1581_v25 }
 0x898   :  { %1645 = vmax.xlane.f32.xlu0 %v3501_v48  ;;  %v3530_v6 = vadd.f32 %v2093_v34, %v1579_v50 }
 0x89a   :  { %v2233_v7 = vpop.f32.mrb[20].mxu1 }
 0x89b   :  { %v1555_v55 = vpop.f32.mrb[21].mxu1  ;;  %v1584_v15 = vmul.f32 0.35355338, %v2233_v7 }
 0x89c   :  { %1647 = vmax.xlane.f32.xlu0 %v3511_v5  ;;  %v2234_v52 = vpop.f32.mrb[22].mxu1  ;;  %v1582_v12 = vmul.f32 0.35355338, %v1555_v55 }
 0x89d   :  { %v1558_v32 = vpop.f32.mrb[23].mxu1  ;;  %v1585_v61 = vmul.f32 0.35355338, %v2234_v52  ;;  %v3543_v20 = vadd.f32 %v2104_v56, %v1584_v15 }
 0x89e   :  { %v1583_v29 = vmul.f32 0.35355338, %v1558_v32  ;;  %v3540_v18 = vadd.f32 %v2100_v13, %v1582_v12 }
 0x89f   :  { %v3524_v33 = vadd.f32 %v2105_v0, %v1585_v61 }
 0x8a0   :  { %v3521_v36 = vadd.f32 %v2101_v41, %v1583_v29  ;;  %1649 = vmax.xlane.f32.xlu0 %v3517_v39 }
 0x8a2   :  { %1661 = vmax.xlane.f32.xlu1 %v3521_v36 }
 0x8a4   :  { %1651 = vmax.xlane.f32.xlu0 %v3519_v8 }
 0x8a6   :  { %1665 = vmax.xlane.f32.xlu1 %v3524_v33 }
 0x8a8   :  { %1653 = vmax.xlane.f32.xlu0 %v3530_v6 }
 0x8ac   :  { %1655 = vmax.xlane.f32.xlu0 %v3535_v63 }
 0x8b0   :  { %1657 = vmax.xlane.f32.xlu0 %v3538_v14 }
 0x8b4   :  { %1659 = vmax.xlane.f32.xlu0 %v3540_v18 }
 0x8b8   :  { %1663 = vmax.xlane.f32.xlu0 %v3543_v20 }
 0x914   :  { %v1640_v37 = vpop.xlane.xlu1 %1639 }
 0x915   :  { %v1669_v21 = vsub.f32 %v3481_v17, %v1640_v37  ;;  %v1636_v11 = vpop.xlane.xlu0 %1635 }
 0x916   :  { %v1667_v22 = vsub.f32 %v3483_v40, %v1636_v11 }
 0x917   :  { %v1687_v43 = vmul.f32 1.442695, %v1669_v21 }
 0x918   :  { %v1683_v44 = vmul.f32 1.442695, %v1667_v22  ;;  %v3611_v22 = vld [vmem:[#allocation7] sm:$0xff]  }
 0x919   :  { %v1638_v4 = vpop.xlane.xlu0 %1637 }
 0x91a   :  { %2460 = vpow2.f32 %v1683_v44  ;;  %v1668_v38 = vsub.f32 %v3490_v26, %v1638_v4  ;;  %v1931_v44 = vld [vmem:[%s3679_s8] sm:$0xff]  ;;  %v1932_v4 = vld [vmem:[%s3679_s8 + $0x8] sm:$0xff] }
 0x91b   :  { %2462 = vpow2.f32 %v1687_v43  ;;  %v2009_v43 = vld [vmem:[%s3673_s2 + $0x28] sm:$0xff]  ;;  %s2707_s2 = smov [#allocation8]  }
 0x91c   :  { %v1685_v58 = vmul.f32 1.442695, %v1668_v38  ;;  %s1952_s8 = sshll.u32 %s2707_s2, 4  ;;  %s1953_s8 = int_to_ptr.vmem [resolvable:$true] %s1952_s8 }
 0x91d   :  { %v1642_v62 = vpop.xlane.xlu0 %1641  ;;  %s2617_s18 = scalar_lea.vmem %s1953_s8, 256  ;;  %p2622_p11 = scmp.lt.s32.totalorder %s1953_s8, %s1953_s8 }
 0x91e   :  { %2464 = vpow2.f32 %v1685_v58  ;;  %v1670_v28 = vsub.f32 %v3493_v51, %v1642_v62  ;;  %p2618_p10 = scmp.ne.s32.totalorder %s1953_s8, %s2617_s18  ;;  %p2623_p12 = scmp.lt.s32.totalorder %s2617_s18, %s2617_s18 }
 0x920   :  { %v1689_v2 = vmul.f32 1.442695, %v1670_v28  ;;  %p2624_p13 = por %p2623_p12, %p2622_p11 }
 0x921   :  { %v1644_v53 = vpop.xlane.xlu0 %1643 }
 0x922   :  { %2466 = vpow2.f32 %v1689_v2  ;;  %v1671_v17 = vsub.f32 %v3495_v24, %v1644_v53  ;;  %p2625_p0 = pnand %p2624_p13, %p2618_p10 }
 0x924   :  { %v3552_v19 = vpop.eup %2460  ;;  %v1691_v40 = vmul.f32 1.442695, %v1671_v17 }
 0x925   :  { %v1646_v59 = vpop.xlane.xlu0 %1645  ;;  %1715 = vadd.xlane.f32.xlu0 %v3552_v19  ;;  %v3556_v23 = vpop.eup %2462 }
 0x926   :  { %2468 = vpow2.f32 %v1691_v40  ;;  %v1672_v26 = vsub.f32 %v3501_v48, %v1646_v59 }
 0x928   :  { %v3558_v49 = vpop.eup %2464  ;;  %v1693_v27 = vmul.f32 1.442695, %v1672_v26 }
 0x929   :  { %v1648_v51 = vpop.xlane.xlu0 %1647  ;;  %1717 = vadd.xlane.f32.xlu1 %v3558_v49  ;;  %1719 = vadd.xlane.f32.xlu0 %v3556_v23 }
 0x92a   :  { %2470 = vpow2.f32 %v1693_v27  ;;  %v1673_v24 = vsub.f32 %v3511_v5, %v1648_v51 }
 0x92c   :  { %v3563_v54 = vpop.eup %2466  ;;  %v1695_v31 = vmul.f32 1.442695, %v1673_v24 }
 0x92d   :  { %v1650_v45 = vpop.xlane.xlu0 %1649  ;;  %1721 = vadd.xlane.f32.xlu1 %v3563_v54 }
 0x92e   :  { %2472 = vpow2.f32 %v1695_v31  ;;  %v1674_v48 = vsub.f32 %v3517_v39, %v1650_v45 }
 0x92f   :  { %v1662_v41 = vpop.xlane.xlu1 %1661 }
 0x930   :  { %v3567_v60 = vpop.eup %2468  ;;  %v1697_v46 = vmul.f32 1.442695, %v1674_v48 }
 0x931   :  { %v1652_v7 = vpop.xlane.xlu0 %1651  ;;  %1723 = vadd.xlane.f32.xlu0 %v3567_v60 }
 0x932   :  { %2474 = vpow2.f32 %v1697_v46  ;;  %v1675_v30 = vsub.f32 %v3519_v8, %v1652_v7  ;;  %v1680_v8 = vsub.f32 %v3521_v36, %v1662_v41 }
 0x933   :  { %v1666_v34 = vpop.xlane.xlu1 %1665 }
 0x934   :  { %v3571_v55 = vpop.eup %2470  ;;  %v1699_v5 = vmul.f32 1.442695, %v1675_v30  ;;  %v1709_v1 = vmul.f32 1.442695, %v1680_v8  ;;  %v1682_v25 = vsub.f32 %v3524_v33, %v1666_v34 }
 0x935   :  { %v1654_v35 = vpop.xlane.xlu0 %1653  ;;  %1725 = vadd.xlane.f32.xlu1 %v3571_v55 }
 0x936   :  { %2476 = vpow2.f32 %v1699_v5  ;;  %v1676_v57 = vsub.f32 %v3530_v6, %v1654_v35  ;;  %v1713_v13 = vmul.f32 1.442695, %v1682_v25 }
 0x938   :  { %v3575_v52 = vpop.eup %2472  ;;  %v1701_v32 = vmul.f32 1.442695, %v1676_v57 }
 0x939   :  { %v1656_v39 = vpop.xlane.xlu0 %1655  ;;  %1727 = vadd.xlane.f32.xlu0 %v3575_v52 }
 0x93a   :  { %2478 = vpow2.f32 %v1701_v32  ;;  %v1677_v61 = vsub.f32 %v3535_v63, %v1656_v39 }
 0x93c   :  { %v3579_v0 = vpop.eup %2474  ;;  %v1703_v29 = vmul.f32 1.442695, %v1677_v61 }
 0x93d   :  { %v1658_v50 = vpop.xlane.xlu0 %1657  ;;  %1729 = vadd.xlane.f32.xlu1 %v3579_v0 }
 0x93e   :  { %2480 = vpow2.f32 %v1703_v29  ;;  %v1678_v47 = vsub.f32 %v3538_v14, %v1658_v50 }
 0x940   :  { %v3584_v6 = vpop.eup %2476  ;;  %v1705_v3 = vmul.f32 1.442695, %v1678_v47 }
 0x941   :  { %v1660_v10 = vpop.xlane.xlu0 %1659  ;;  %1731 = vadd.xlane.f32.xlu0 %v3584_v6 }
 0x942   :  { %2482 = vpow2.f32 %v1705_v3  ;;  %v1679_v63 = vsub.f32 %v3540_v18, %v1660_v10 }
 0x943   :  { %2484 = vpow2.f32 %v1709_v1 }
 0x944   :  { %v3589_v36 = vpop.eup %2478  ;;  %v1707_v12 = vmul.f32 1.442695, %v1679_v63 }
 0x945   :  { %v1664_v15 = vpop.xlane.xlu0 %1663  ;;  %1733 = vadd.xlane.f32.xlu1 %v3589_v36 }
 0x946   :  { %2486 = vpow2.f32 %v1707_v12  ;;  %v1681_v14 = vsub.f32 %v3543_v20, %v1664_v15 }
 0x947   :  { %2488 = vpow2.f32 %v1713_v13 }
 0x948   :  { %v3593_v56 = vpop.eup %2480  ;;  %v1711_v33 = vmul.f32 1.442695, %v1681_v14 }
 0x949   :  { %1735 = vadd.xlane.f32.xlu0 %v3593_v56 }
 0x94a   :  { %2490 = vpow2.f32 %v1711_v33 }
 0x94c   :  { %v3596_v37 = vpop.eup %2482 }
 0x94d   :  { %1737 = vadd.xlane.f32.xlu1 %v3596_v37  ;;  %v3599_v18 = vpop.eup %2484 }
 0x950   :  { %v3601_v21 = vpop.eup %2486 }
 0x951   :  { %1739 = vadd.xlane.f32.xlu0 %v3601_v21  ;;  %1741 = vadd.xlane.f32.xlu1 %v3599_v18  ;;  %v3605_v20 = vpop.eup %2488 }
 0x954   :  { %v3607_v11 = vpop.eup %2490 }
 0x955   :  { %1743 = vadd.xlane.f32.xlu0 %v3607_v11  ;;  %1745 = vadd.xlane.f32.xlu1 %v3605_v20 }
 0x966   :  { %1835 = vrot.lane.b32.xlu1 %v3611_v22, %s2706_s6 }
 0x96a   :  { %1935 = vperm.xlu1 %2390, %v1931_v44  }
 0x96b   :  { %1055 = vperm.xlu0 %2389, %v2009_v43  }
 0x96f   :  { %1940 = vperm.xlu0 %2389, %v1932_v4  }
 0x9b2   :  { %v1716_v38 = vpop.xlane.xlu0 %1715 }
 0x9b3   :  { %2492 = vrcp.f32 %v1716_v38 }
 0x9b6   :  { %v1718_v58 = vpop.xlane.xlu1 %1717  ;;  %v1720_v28 = vpop.xlane.xlu0 %1719 }
 0x9b7   :  { %2494 = vrcp.f32 %v1718_v58 }
 0x9ba   :  { %v1722_v62 = vpop.xlane.xlu1 %1721 }
 0x9bb   :  { %2496 = vrcp.f32 %v1722_v62 }
 0x9bc   :  { %2498 = vrcp.f32 %v1720_v28 }
 0x9bd   :  { %v2493_v2 = vpop.eup %2492 }
 0x9be   :  { %v1724_v40 = vpop.xlane.xlu0 %1723  ;;  %v1763_v59 = vmul.f32 %v2493_v2, %v3552_v19 }
 0x9c1   :  { %v2495_v53 = vpop.eup %2494 }
 0x9c2   :  { %v1726_v17 = vpop.xlane.xlu1 %1725  ;;  %v1764_v26 = vmul.f32 %v2495_v53, %v3558_v49 }
 0x9c3   :  { %2500 = vrcp.f32 %v1726_v17 }
 0x9c4   :  { %v1780_v27 = vpack.c.bf16 %v1764_v26, %v1763_v59  ;;  %2502 = vrcp.f32 %v1724_v40 }
 0x9c5   :  { %v2497_v51 = vpop.eup %2496 }
 0x9c6   :  { %2236 = vmatpush3.bf16.xpose.msra.mxu1 %v1780_v27  ;;  %v2499_v24 = vpop.eup %2498  ;;  %v1766_v31 = vmul.f32 %v2497_v51, %v3563_v54  ;;  %v1728_v48 = vpop.xlane.xlu0 %1727 }
 0x9c7   :  { %2237 = vmatprep.subr.bf16.mxu1 %v2704_v42  ;;  %v1765_v46 = vmul.f32 %v2499_v24, %v3556_v23 }
 0x9c9   :  { %v1781_v7 = vpack.c.bf16 %v1766_v31, %v1765_v46 }
 0x9ca   :  { %v1730_v45 = vpop.xlane.xlu1 %1729 }
 0x9cb   :  { %2504 = vrcp.f32 %v1730_v45 }
 0x9cc   :  { %2506 = vrcp.f32 %v1728_v48 }
 0x9cd   :  { %v2501_v30 = vpop.eup %2500 }
 0x9ce   :  { %2238 = vmatpush3.bf16.xpose.msra.mxu1 %v1781_v7  ;;  %v2503_v19 = vpop.eup %2502  ;;  %v1768_v49 = vmul.f32 %v2501_v30, %v3571_v55  ;;  %v1732_v35 = vpop.xlane.xlu0 %1731 }
 0x9cf   :  { %2239 = vmatprep.subr.bf16.mxu1 %v2704_v42  ;;  %v1767_v57 = vmul.f32 %v2503_v19, %v3567_v60 }
 0x9d1   :  { %v1782_v54 = vpack.c.bf16 %v1768_v49, %v1767_v57 }
 0x9d2   :  { %v1734_v5 = vpop.xlane.xlu1 %1733 }
 0x9d3   :  { %2508 = vrcp.f32 %v1734_v5 }
 0x9d4   :  { %2510 = vrcp.f32 %v1732_v35 }
 0x9d5   :  { %v2505_v41 = vpop.eup %2504 }
 0x9d6   :  { %2240 = vmatpush3.bf16.xpose.msra.mxu1 %v1782_v54  ;;  %v2507_v23 = vpop.eup %2506  ;;  %v1770_v32 = vmul.f32 %v2505_v41, %v3579_v0  ;;  %v1736_v61 = vpop.xlane.xlu0 %1735 }
 0x9d7   :  { %2241 = vmatprep.subr.bf16.mxu1 %v2704_v42  ;;  %v1769_v29 = vmul.f32 %v2507_v23, %v3575_v52 }
 0x9d9   :  { %v1783_v55 = vpack.c.bf16 %v1770_v32, %v1769_v29 }
 0x9da   :  { %v1738_v39 = vpop.xlane.xlu1 %1737 }
 0x9db   :  { %2512 = vrcp.f32 %v1738_v39 }
 0x9dc   :  { %2514 = vrcp.f32 %v1736_v61 }
 0x9dd   :  { %v2509_v8 = vpop.eup %2508 }
 0x9de   :  { %2242 = vmatpush3.bf16.xpose.msra.mxu1 %v1783_v55  ;;  %v2511_v60 = vpop.eup %2510  ;;  %v1740_v50 = vpop.xlane.xlu0 %1739  ;;  %v1772_v47 = vmul.f32 %v2509_v8, %v3589_v36 }
 0x9df   :  { %2243 = vmatprep.subr.bf16.mxu1 %v2704_v42  ;;  %v1742_v34 = vpop.xlane.xlu1 %1741  ;;  %2516 = vrcp.f32 %v1740_v50  ;;  %v1771_v3 = vmul.f32 %v2511_v60, %v3584_v6 }
 0x9e0   :  { %2518 = vrcp.f32 %v1742_v34 }
 0x9e1   :  { %v1784_v0 = vpack.c.bf16 %v1772_v47, %v1771_v3 }
 0x9e2   :  { %v1744_v25 = vpop.xlane.xlu0 %1743 }
 0x9e3   :  { %v1746_v10 = vpop.xlane.xlu1 %1745  ;;  %2520 = vrcp.f32 %v1744_v25 }
 0x9e4   :  { %2522 = vrcp.f32 %v1746_v10 }
 0x9e5   :  { %v2513_v1 = vpop.eup %2512 }
 0x9e6   :  { %2244 = vmatpush3.bf16.xpose.msra.mxu1 %v1784_v0  ;;  %v2515_v52 = vpop.eup %2514  ;;  %v1774_v63 = vmul.f32 %v2513_v1, %v3596_v37 }
 0x9e7   :  { %2245 = vmatprep.subr.bf16.mxu1 %v2704_v42  ;;  %v1773_v12 = vmul.f32 %v2515_v52, %v3593_v56 }
 0x9e9   :  { %v2517_v13 = vpop.eup %2516  ;;  %v1785_v36 = vpack.c.bf16 %v1774_v63, %v1773_v12 }
 0x9ea   :  { %v2519_v15 = vpop.eup %2518  ;;  %v1775_v6 = vmul.f32 %v2517_v13, %v3601_v21  ;;  %v1056_v4 = vpop.permute.xlu0 %1055 }
 0x9eb   :  { %v1776_v14 = vmul.f32 %v2519_v15, %v3599_v18  ;;  %v1118_v58 = vadd.f32 %v3282_v16, %v1056_v4  ;;  %v1029_v18 = vmax.f32 %v3273_v9, 0.0 }
 0x9ed   :  { %v2521_v33 = vpop.eup %2520  ;;  %v1786_v44 = vpack.c.bf16 %v1776_v14, %v1775_v6  ;;  %v1779_v62 = vpack.c.bf16 %v1118_v58, %v1118_v58  ;;  %v1030_v59 = vpack.c.bf16 %v1029_v18, %v1029_v18 }
 0x9ee   :  { %2246 = vmatpush3.bf16.xpose.msra.mxu1 %v1785_v36  ;;  %v2523_v43 = vpop.eup %2522  ;;  %v1777_v37 = vmul.f32 %v2521_v33, %v3607_v11  ;;  %v1941_v49 = vpop.permute.xlu0 %1940 }
 0x9ef   :  { %2247 = vmatprep.subr.bf16.mxu1 %v2704_v42  ;;  %v1778_v56 = vmul.f32 %v2523_v43, %v3605_v20  ;;  %v1836_v20 = vpop.permute.xlu1 %1835  ;;  %v1888_v16 = vsel %vm112_vm0, %v1030_v59, 0 }
 0x9f1   :  { %v1787_v38 = vpack.c.bf16 %v1778_v56, %v1777_v37 }
 0x9f3   :  { %v1936_v48 = vpop.permute.xlu1 %1935 }
 0x9f6   :  { %2248 = vmatpush3.bf16.xpose.msra.mxu1 %v1786_v44 }
 0x9f7   :  { %2249 = vmatprep.subr.bf16.mxu1 %v2704_v42 }
 0x9fe   :  { %2250 = vmatpush3.bf16.xpose.msra.mxu1 %v1787_v38 }
 0xa05   :  { %2252 = vmatmul.mubr.bf16.vlgmr.msra.gmra.mrb[24].mxu1 %v1779_v62 }
 0xad8   :  { %v1822_v21 = vpop.f32.mrb[24].mxu1 }
 0xad9   :  { %v1828_v28 = vmax.f32 %v1822_v21, 0.0  ;;  %v2253_v2 = vpop.f32.mrb[25].mxu1 }
 0xada   :  { %v1825_v53 = vpop.f32.mrb[26].mxu1 }
 0xadb   :  { %v1829_v17 = vpack.c.bf16 %v1828_v28, %v1828_v28  ;;  %v2254_v40 = vpop.f32.mrb[27].mxu1 }
 0xadd   :  { %v1841_v11 = vsel %vm112_vm0, %v1829_v17, 0 }
 0xade   :  { %2256 = vmatpush3.bf16.msra.mxu0 %v1841_v11 }
 0xadf   :  { %2261 = vmatprep.subr.bf16.mxu0 %v2704_v42 }
 0xae1   :  { %2258 = vmatmul.mubr.msk.bf16.vlgmr.msra.gmra.mrb[20].mxu0 %vm105_vm1, %v1836_v20 }
 0xae2   :  { %2262 = vmatpush3.bf16.msra.mxu0 %v1888_v16  ;;  %2263 = vmatprep.mubr.msk.bf16.mxu0 %vm2705_vm14, %v2704_v42 }
 0xae9   :  { %2264 = vmatmul.mubr.msk.bf16.vlgmr.msra.gmra.mrb[24].mxu0 %vm105_vm1, %v3611_v22 }
 0xbb4   :  { %v1877_v9 = vpop.f32.mrb[20].mxu0 }
 0xbb5   :  { %v2259_v26 = vpop.f32.mrb[21].mxu0 }
 0xbb6   :  { %v1880_v27 = vpop.f32.mrb[22].mxu0 }
 0xbb7   :  { %v2260_v51 = vpop.f32.mrb[23].mxu0 }
 0xbbc   :  { %v1924_v24 = vpop.f32.mrb[24].mxu0 }
 0xbbd   :  { %v1925_v31 = vadd.f32 %v1924_v24, %v1877_v9  ;;  %v2265_v45 = vpop.f32.mrb[25].mxu0 }
 0xbbe   :  { %v1927_v46 = vpop.f32.mrb[26].mxu0 }
 0xbbf   :  { %v1943_v7 = vadd.f32 %v1936_v48, %v1925_v31  ;;  %v1928_v30 = vadd.f32 %v1927_v46, %v1880_v27  ;;  %v2266_v19 = vpop.f32.mrb[27].mxu0 }
 0xbc1   :  { %1945 = vst [vmem:[#allocation8] sm:$0xff] %v1943_v7  ;;  %v1944_v42 = vadd.f32 %v1941_v49, %v1928_v30 }
 0xbc3   :  { %1946 = vst [vmem:[#allocation8 + $0x8] sm:$0xff] %v1944_v42 }
 0xbc4   :  { %2628 = shalt.err (!%p2625_p0)
}
 0xbc5   :  { %s2629_s23 = scalar_lea.hbm %s3680_s9, 256 }
 0xbc6   :  { %p2630_p1 = scmp.ne.s32.totalorder %s3680_s9, %s2629_s23  ;;  %p2633_p2 = scmp.lt.u32.totalorder %s2629_s23, %s3680_s9 }
 0xbc8   :  { %p2635_p3 = pnand %p2633_p2, %p2630_p1 }
 0xbca   :  { %2638 = shalt.err (!%p2635_p3)
}
 0xbcb   :  { %s3745_s26 = smov 8   ;;  %s3746_s27 = smov 128  }
 0xbcc   :  { %1958 = dma.vmem_to_hbm [thread:$0]  %s1953_s8, 256, %s3680_s9, [#allocation4], %s3746_s27, %s3746_s27, %s3745_s26  }
 0xbcd   :  { %2643 = dma.done.wait [#allocation4], 256  }
 0xbce   :  { %2644 = vsyncadd [#allocation4], 4294967040 }
 0xbcf   :  { %1962 = vsyncpa [#allocation3], 1 }
 0xbd0   :  { %1963 = vsyncpa [#allocation6], 1 }
 0xbd1   :  { %1964 = vsyncpa [#allocation4], 1 }

</bundles_post_ra>
